<compile_context>
chip_gen: v7x
topology: tpu7x:2x2x1
jax: 0.10.0
libtpu: 0.0.40
codegen_flags: <defaults>
</compile_context>

<pallas_src>
import functools

import jax
import jax.numpy as jnp
from jax.experimental import pallas as pl
from jax.experimental.pallas import tpu as pltpu


def _round_up(x, m):
    return (x + m - 1) // m * m


# ----------------------------------------------------------------------------
# Pallas kernels
# ----------------------------------------------------------------------------
def _linear_act_kernel(x_ref, w_ref, b_ref, o_ref, *, act):
    # Fused: out = act(x @ w + b); bf16 operands on the MXU, f32 accumulate.
    acc = jnp.dot(x_ref[...], w_ref[...], preferred_element_type=jnp.float32)
    acc = acc + b_ref[...]
    if act == "relu":
        acc = jnp.maximum(acc, 0.0)
    elif act == "sigmoid":
        # exp + reciprocal both go to the EUP slot (free next to the MXU).
        acc = pl.reciprocal(1.0 + jnp.exp(-acc), approx=True)
    o_ref[...] = acc.astype(o_ref.dtype)


def _fc_reparam_kernel(h_ref, w_ref, b_ref, eps_ref, mu_ref, lv_ref, z_ref, *, half):
    # One matmul against the concatenated [fc_mu | fc_logvar] weight, then
    # z = mu + eps * exp(0.5 * logvar) in the same body.
    acc = jnp.dot(h_ref[...], w_ref[...], preferred_element_type=jnp.float32)
    acc = acc + b_ref[...]
    mu = acc[:, :half]
    lv = acc[:, half:]
    z = mu + eps_ref[...] * jnp.exp(0.5 * lv)
    mu_ref[...] = mu
    lv_ref[...] = lv
    z_ref[...] = z.astype(z_ref.dtype)


# ----------------------------------------------------------------------------
# Pallas wrappers (M-tiled grid, pre-padded weights)
# ----------------------------------------------------------------------------
_TM_MAX = 256  # 256-row tiles: good pipelining, tiny VMEM footprint (v7x-safe)


def _m_tiling(M):
    Mp16 = _round_up(max(M, 1), 16)
    if Mp16 <= _TM_MAX:
        return Mp16, Mp16          # single full-array block
    return _TM_MAX, _round_up(Mp16, _TM_MAX)


def linear_act(x, w_pad, b_pad, n_out, act="none", out_dtype=jnp.bfloat16):
    """act(x @ w + b). x:[M,K] (any float); w_pad:[Kp,Np] bf16; b_pad:[1,Np] f32."""
    M, K = x.shape
    Kp, Np = w_pad.shape
    TM, Mp = _m_tiling(M)
    x = x.astype(jnp.bfloat16)
    if (Mp, Kp) != (M, K):
        x = jnp.pad(x, ((0, Mp - M), (0, Kp - K)))
    out = pl.pallas_call(
        functools.partial(_linear_act_kernel, act=act),
        out_shape=jax.ShapeDtypeStruct((Mp, Np), out_dtype),
        grid=(Mp // TM,),
        in_specs=[
            pl.BlockSpec((TM, Kp), lambda i: (i, 0)),
            pl.BlockSpec((Kp, Np), lambda i: (0, 0)),   # weight stays resident
            pl.BlockSpec((1, Np), lambda i: (0, 0)),
        ],
        out_specs=pl.BlockSpec((TM, Np), lambda i: (i, 0)),
        compiler_params=pltpu.CompilerParams(dimension_semantics=("parallel",)),
    )(x, w_pad, b_pad)
    if (Mp, Np) != (M, n_out):
        out = out[:M, :n_out]
    return out


def fc_reparam(hf, w_cat, b_cat, eps, latent_dim):
    """Fused fc_mu / fc_logvar / reparameterize. Returns (mu, logvar, z_padded)."""
    B, K = hf.shape
    Kp, Ncat = w_cat.shape
    half = Ncat // 2
    TM, Mp = _m_tiling(B)
    h = hf.astype(jnp.bfloat16)
    if (Mp, Kp) != (B, K):
        h = jnp.pad(h, ((0, Mp - B), (0, Kp - K)))
    e = jnp.zeros((Mp, half), jnp.float32).at[:B, :latent_dim].set(eps)
    mu_p, lv_p, z_p = pl.pallas_call(
        functools.partial(_fc_reparam_kernel, half=half),
        out_shape=(jax.ShapeDtypeStruct((Mp, half), jnp.float32),
                   jax.ShapeDtypeStruct((Mp, half), jnp.float32),
                   jax.ShapeDtypeStruct((Mp, half), jnp.bfloat16)),
        grid=(Mp // TM,),
        in_specs=[
            pl.BlockSpec((TM, Kp), lambda i: (i, 0)),
            pl.BlockSpec((Kp, Ncat), lambda i: (0, 0)),
            pl.BlockSpec((1, Ncat), lambda i: (0, 0)),
            pl.BlockSpec((TM, half), lambda i: (i, 0)),
        ],
        out_specs=(pl.BlockSpec((TM, half), lambda i: (i, 0)),
                   pl.BlockSpec((TM, half), lambda i: (i, 0)),
                   pl.BlockSpec((TM, half), lambda i: (i, 0))),
        compiler_params=pltpu.CompilerParams(dimension_semantics=("parallel",)),
    )(h, w_cat, b_cat, e)
    return mu_p[:B, :latent_dim], lv_p[:B, :latent_dim], z_p


# ----------------------------------------------------------------------------
# im2col glue (NHWC, XLA) + conv / sub-pixel conv-transpose lowerings
# ----------------------------------------------------------------------------
def _im2col_nhwc(x, kh, kw, stride, pad):
    # x: [B, H, W, C] -> rows [B*Ho*Wo, kh*kw*C], column order (kh, kw, C).
    if pad:
        x = jnp.pad(x, ((0, 0), (pad, pad), (pad, pad), (0, 0)))
    B, Hp, Wp, C = x.shape
    Ho = (Hp - kh) // stride + 1
    Wo = (Wp - kw) // stride + 1
    cols = []
    for i in range(kh):
        for j in range(kw):
            cols.append(x[:, i:i + stride * Ho:stride, j:j + stride * Wo:stride, :])
    patches = jnp.stack(cols, axis=3)            # [B, Ho, Wo, kh*kw, C]
    return patches.reshape(B * Ho * Wo, kh * kw * C), (B, Ho, Wo)


def conv2d(x_nhwc, w_pad, b_pad, cout, stride, pad, act, out_dtype=jnp.bfloat16):
    cols, (B, Ho, Wo) = _im2col_nhwc(x_nhwc, 4, 4, stride, pad)
    y = linear_act(cols, w_pad, b_pad, cout, act, out_dtype)
    return y.reshape(B, Ho, Wo, cout)


def _interleave_subpixel(y, B, H, W, cout):
    # y: [B*(H+1)*(W+1), 4*cout] -> [B, 2H, 2W, cout]
    # parity p = 2a+b lives in output block p; parity (a,b) output pixel
    # (2i+a, 2j+b) comes from im2col window (i+a, j+b).
    parts = y.reshape(B, H + 1, W + 1, 4, cout)
    p00 = parts[:, 0:H, 0:W, 0, :]
    p01 = parts[:, 0:H, 1:W + 1, 1, :]
    p10 = parts[:, 1:H + 1, 0:W, 2, :]
    p11 = parts[:, 1:H + 1, 1:W + 1, 3, :]
    row0 = jnp.stack([p00, p01], axis=3)         # [B, H, W, 2, C]
    row1 = jnp.stack([p10, p11], axis=3)
    out = jnp.stack([row0, row1], axis=2)        # [B, H, 2, W, 2, C]
    return out.reshape(B, 2 * H, 2 * W, cout)


def conv_transpose2d(x_nhwc, w_pad, b_pad, cout, act, out_dtype=jnp.bfloat16):
    # Sub-pixel decomposition of ConvTranspose2d(k=4, s=2, p=1): a single
    # 2x2 stride-1 conv on the pad-1 input whose N dim holds all 4 parities.
    B, H, W, _ = x_nhwc.shape
    cols, _ = _im2col_nhwc(x_nhwc, 2, 2, 1, 1)          # [B*(H+1)*(W+1), 4*Cin]
    y = linear_act(cols, w_pad, b_pad, 4 * cout, act, out_dtype)
    return _interleave_subpixel(y, B, H, W, cout)


# ----------------------------------------------------------------------------
# Parameters: PyTorch-layout init + one-time prep (layout convert, pad, bf16)
# ----------------------------------------------------------------------------
def init_params(key, latent_dim):
    ks = jax.random.split(key, 18)
    w = lambda k, shape: jax.random.normal(k, shape, jnp.float32) * 0.02
    return {
        # Encoder (PyTorch layouts)
        "conv1_w": w(ks[0], (32, 3, 4, 4)),        "conv1_b": w(ks[1], (32,)),
        "conv2_w": w(ks[2], (64, 32, 4, 4)),       "conv2_b": w(ks[3], (64,)),
        "conv3_w": w(ks[4], (128, 64, 4, 4)),      "conv3_b": w(ks[5], (128,)),
        "fc_mu_w": w(ks[6], (latent_dim, 128 * 4 * 4)), "fc_mu_b": w(ks[7], (latent_dim,)),
        "fc_lv_w": w(ks[8], (latent_dim, 128 * 4 * 4)), "fc_lv_b": w(ks[9], (latent_dim,)),
        # Decoder
        "dec_fc_w": w(ks[10], (128 * 4 * 4, latent_dim)), "dec_fc_b": w(ks[11], (128 * 4 * 4,)),
        "deconv1_w": w(ks[12], (128, 64, 4, 4)),   "deconv1_b": w(ks[13], (64,)),
        "deconv2_w": w(ks[14], (64, 32, 4, 4)),    "deconv2_b": w(ks[15], (32,)),
        "deconv3_w": w(ks[16], (32, 3, 4, 4)),     "deconv3_b": w(ks[17], (3,)),
    }


def prepare_params(p, latent_dim):
    L = latent_dim

    def pad_w(w):                                   # [K,N] -> bf16 [Kp,Np]
        K, N = w.shape
        Kp, Np = _round_up(K, 128), _round_up(N, 128)
        return jnp.zeros((Kp, Np), jnp.bfloat16).at[:K, :N].set(w.astype(jnp.bfloat16))

    def pad_b(b):                                   # [N] -> f32 [1,Np]
        N = b.shape[0]
        Np = _round_up(N, 128)
        return jnp.zeros((1, Np), jnp.float32).at[0, :N].set(b.astype(jnp.float32))

    def conv_w(w):                                  # [Cout,Cin,kh,kw] -> [kh*kw*Cin, Cout]
        Cout, Cin, kh, kw = w.shape
        return w.transpose(2, 3, 1, 0).reshape(kh * kw * Cin, Cout)

    KH = ((3, 1), (2, 0))                           # kernel taps per output parity

    def deconv_w(w):                                # [Cin,Cout,4,4] -> [4*Cin, 4*Cout]
        Cin, Cout = w.shape[0], w.shape[1]
        subs = []
        for a in range(2):
            for b in range(2):
                taps = [w[:, :, KH[a][dh], KH[b][dw]] for dh in range(2) for dw in range(2)]
                subs.append(jnp.stack(taps, axis=0).reshape(4 * Cin, Cout))
        return jnp.concatenate(subs, axis=1)

    def deconv_b(b):
        return jnp.concatenate([b] * 4, axis=0)

    # fc_mu / fc_logvar: permute input features (C,H,W) -> (H,W,C), concat along N.
    def fc_in_perm(w):                              # [L,2048] -> [2048,L]
        return w.reshape(L, 128, 4, 4).transpose(0, 2, 3, 1).reshape(L, 2048).T

    Lp = 128
    fc_cat_w = jnp.concatenate(
        [jnp.zeros((2048, Lp), jnp.float32).at[:, :L].set(fc_in_perm(p["fc_mu_w"])),
         jnp.zeros((2048, Lp), jnp.float32).at[:, :L].set(fc_in_perm(p["fc_lv_w"]))],
        axis=1).astype(jnp.bfloat16)
    fc_cat_b = jnp.concatenate(
        [jnp.zeros((Lp,), jnp.float32).at[:L].set(p["fc_mu_b"]),
         jnp.zeros((Lp,), jnp.float32).at[:L].set(p["fc_lv_b"])], axis=0)[None, :]

    # dec_fc: permute output features (C,H,W) -> (H,W,C).
    dec_w = p["dec_fc_w"].reshape(128, 4, 4, L).transpose(1, 2, 0, 3).reshape(2048, L).T
    dec_b = p["dec_fc_b"].reshape(128, 4, 4).transpose(1, 2, 0).reshape(2048)

    return {
        "conv1": (pad_w(conv_w(p["conv1_w"])), pad_b(p["conv1_b"])),
        "conv2": (pad_w(conv_w(p["conv2_w"])), pad_b(p["conv2_b"])),
        "conv3": (pad_w(conv_w(p["conv3_w"])), pad_b(p["conv3_b"])),
        "fc": (fc_cat_w, fc_cat_b),
        "dec_fc": (pad_w(dec_w), pad_b(dec_b)),
        "deconv1": (pad_w(deconv_w(p["deconv1_w"])), pad_b(deconv_b(p["deconv1_b"]))),
        "deconv2": (pad_w(deconv_w(p["deconv2_w"])), pad_b(deconv_b(p["deconv2_b"]))),
        "deconv3": (pad_w(deconv_w(p["deconv3_w"])), pad_b(deconv_b(p["deconv3_b"]))),
    }


# ----------------------------------------------------------------------------
# Full VAE forward
# ----------------------------------------------------------------------------
def vae_forward(params, x, eps, latent_dim):
    B = x.shape[0]
    # ---- Encoder (NHWC rows end-to-end) ----
    h = jnp.transpose(x, (0, 2, 3, 1))                                   # [B,32,32,3]
    h = conv2d(h, *params["conv1"], 32, 2, 1, "relu")                    # [B,16,16,32]
    h = conv2d(h, *params["conv2"], 64, 2, 1, "relu")                    # [B, 8, 8,64]
    h = conv2d(h, *params["conv3"], 128, 2, 1, "relu")                   # [B, 4, 4,128]
    hf = h.reshape(B, 128 * 4 * 4)
    # ---- fc_mu + fc_logvar + reparameterize (fused) ----
    mu, logvar, z_pad = fc_reparam(hf, *params["fc"], eps, latent_dim)
    # ---- Decoder ----
    d = linear_act(z_pad, *params["dec_fc"], 2048, "relu")[:B]           # [B, 2048]
    d = d.reshape(B, 4, 4, 128)
    d = conv_transpose2d(d, *params["deconv1"], 64, "relu")              # [B, 8, 8,64]
    d = conv_transpose2d(d, *params["deconv2"], 32, "relu")              # [B,16,16,32]
    xr = conv_transpose2d(d, *params["deconv3"], 3, "sigmoid",
                          out_dtype=jnp.float32)                         # [B,32,32,3]
    return jnp.transpose(xr, (0, 3, 1, 2)), mu, logvar                   # NCHW out


if __name__ == "__main__":
    latent_dim = 32
    key = jax.random.PRNGKey(0)
    k_param, k_x, k_eps = jax.random.split(key, 3)

    raw_params = init_params(k_param, latent_dim)
    params = prepare_params(raw_params, latent_dim)          # one-time prep

    x = jax.random.normal(k_x, (2, 3, 32, 32), jnp.float32)  # NCHW, like PyTorch
    eps = jax.random.normal(k_eps, (2, latent_dim), jnp.float32)

    fwd = jax.jit(functools.partial(vae_forward, latent_dim=latent_dim))
    x_rec, mu, logvar = fwd(params, x, eps)
    jax.block_until_ready((x_rec, mu, logvar))

    assert x_rec.shape == (2, 3, 32, 32)
    assert mu.shape == (2, latent_dim) and logvar.shape == (2, latent_dim)
    assert bool(jnp.all(jnp.isfinite(x_rec)))
    print("KERNEL_OK")
</pallas_src>

<mosaic_0001>
module attributes {stable_mosaic.version = 11 : i64} {
  func.func @_linear_act_kernel(%arg0: i32, %arg1: memref<256x128xbf16, #tpu.memory_space<vmem>>, %arg2: memref<128x128xbf16, #tpu.memory_space<vmem>>, %arg3: memref<1x128xf32, #tpu.memory_space<vmem>>, %arg4: memref<256x128xbf16, #tpu.memory_space<vmem>>) attributes {dimension_semantics = [#tpu.dimension_semantics<parallel>], iteration_bounds = array<i64: 2>, scalar_prefetch = 0 : i64, scratch_operands = 0 : i64, tpu.core_type = #tpu.core_type<tc>, window_params = [{transform_indices = @transform_0, window_bounds = array<i64: 256, 128>}, {pipeline_mode = #tpu.pipeline_mode<synchronous>, transform_indices = @transform_1, window_bounds = array<i64: 128, 128>}, {pipeline_mode = #tpu.pipeline_mode<synchronous>, transform_indices = @transform_2, window_bounds = array<i64: 1, 128>}, {transform_indices = @transform_3, window_bounds = array<i64: 256, 128>}]} {
    %c0 = arith.constant 0 : index
    %c0_0 = arith.constant 0 : index
    %0 = vector.load %arg1[%c0, %c0_0] : memref<256x128xbf16, #tpu.memory_space<vmem>>, vector<256x128xbf16>
    %c0_1 = arith.constant 0 : index
    %c0_2 = arith.constant 0 : index
    %1 = vector.load %arg2[%c0_1, %c0_2] : memref<128x128xbf16, #tpu.memory_space<vmem>>, vector<128x128xbf16>
    %cst = arith.constant dense<0.000000e+00> : vector<256x128xf32>
    %2 = tpu.matmul %0, %1, %cst {dimension_numbers = #tpu.dot_dimension_numbers<[1], [0], [0], [1], [0, 0, 1, 1], [], []>} : vector<256x128xbf16>, vector<128x128xbf16>, vector<256x128xf32> -> vector<256x128xf32>
    %c0_3 = arith.constant 0 : index
    %c0_4 = arith.constant 0 : index
    %3 = vector.load %arg3[%c0_3, %c0_4] : memref<1x128xf32, #tpu.memory_space<vmem>>, vector<1x128xf32>
    %4 = vector.broadcast %3 : vector<1x128xf32> to vector<256x128xf32>
    %5 = arith.addf %2, %4 : vector<256x128xf32>
    %cst_5 = arith.constant 0.000000e+00 : f32
    %6 = vector.broadcast %cst_5 : f32 to vector<256x128xf32>
    %7 = arith.maximumf %5, %6 : vector<256x128xf32>
    %8 = arith.truncf %7 : vector<256x128xf32> to vector<256x128xbf16>
    %c0_6 = arith.constant 0 : index
    %c0_7 = arith.constant 0 : index
    %9 = vector.load %arg4[%c0_6, %c0_7] : memref<256x128xbf16, #tpu.memory_space<vmem>>, vector<256x128xbf16>
    tpu.vector_store %arg4[%c0_6, %c0_7], %8 {strides = array<i32>} : memref<256x128xbf16, #tpu.memory_space<vmem>>, vector<256x128xbf16>,
    return
  }
  func.func @transform_0(%arg0: i32) -> (i32, i32) {
    %c0_i32 = arith.constant 0 : i32
    %c0_i32_0 = arith.constant 0 : i32
    return %arg0, %c0_i32 : i32, i32
  }
  func.func @transform_1(%arg0: i32) -> (i32, i32) {
    %c0_i32 = arith.constant 0 : i32
    %c0_i32_0 = arith.constant 0 : i32
    %c0_i32_1 = arith.constant 0 : i32
    return %c0_i32, %c0_i32_0 : i32, i32
  }
  func.func @transform_2(%arg0: i32) -> (i32, i32) {
    %c0_i32 = arith.constant 0 : i32
    %c0_i32_0 = arith.constant 0 : i32
    %c0_i32_1 = arith.constant 0 : i32
    return %c0_i32, %c0_i32_0 : i32, i32
  }
  func.func @transform_3(%arg0: i32) -> (i32, i32) {
    %c0_i32 = arith.constant 0 : i32
    %c0_i32_0 = arith.constant 0 : i32
    return %arg0, %c0_i32 : i32, i32
  }
}

module attributes {stable_mosaic.version = 11 : i64} {
  func.func @_linear_act_kernel(%arg0: i32, %arg1: memref<128x512xbf16, #tpu.memory_space<vmem>>, %arg2: memref<512x128xbf16, #tpu.memory_space<vmem>>, %arg3: memref<1x128xf32, #tpu.memory_space<vmem>>, %arg4: memref<128x128xbf16, #tpu.memory_space<vmem>>) attributes {dimension_semantics = [#tpu.dimension_semantics<parallel>], iteration_bounds = array<i64: 1>, scalar_prefetch = 0 : i64, scratch_operands = 0 : i64, tpu.core_type = #tpu.core_type<tc>, window_params = [{transform_indices = @transform_0, window_bounds = array<i64: 128, 512>}, {pipeline_mode = #tpu.pipeline_mode<synchronous>, transform_indices = @transform_1, window_bounds = array<i64: 512, 128>}, {pipeline_mode = #tpu.pipeline_mode<synchronous>, transform_indices = @transform_2, window_bounds = array<i64: 1, 128>}, {transform_indices = @transform_3, window_bounds = array<i64: 128, 128>}]} {
    %c0 = arith.constant 0 : index
    %c0_0 = arith.constant 0 : index
    %0 = vector.load %arg1[%c0, %c0_0] : memref<128x512xbf16, #tpu.memory_space<vmem>>, vector<128x512xbf16>
    %c0_1 = arith.constant 0 : index
    %c0_2 = arith.constant 0 : index
    %1 = vector.load %arg2[%c0_1, %c0_2] : memref<512x128xbf16, #tpu.memory_space<vmem>>, vector<512x128xbf16>
    %cst = arith.constant dense<0.000000e+00> : vector<128x128xf32>
    %2 = tpu.matmul %0, %1, %cst {dimension_numbers = #tpu.dot_dimension_numbers<[1], [0], [0], [1], [0, 0, 1, 1], [], []>} : vector<128x512xbf16>, vector<512x128xbf16>, vector<128x128xf32> -> vector<128x128xf32>
    %c0_3 = arith.constant 0 : index
    %c0_4 = arith.constant 0 : index
    %3 = vector.load %arg3[%c0_3, %c0_4] : memref<1x128xf32, #tpu.memory_space<vmem>>, vector<1x128xf32>
    %4 = vector.broadcast %3 : vector<1x128xf32> to vector<128x128xf32>
    %5 = arith.addf %2, %4 : vector<128x128xf32>
    %cst_5 = arith.constant 0.000000e+00 : f32
    %6 = vector.broadcast %cst_5 : f32 to vector<128x128xf32>
    %7 = arith.maximumf %5, %6 : vector<128x128xf32>
    %8 = arith.truncf %7 : vector<128x128xf32> to vector<128x128xbf16>
    %c0_6 = arith.constant 0 : index
    %c0_7 = arith.constant 0 : index
    %9 = vector.load %arg4[%c0_6, %c0_7] : memref<128x128xbf16, #tpu.memory_space<vmem>>, vector<128x128xbf16>
    tpu.vector_store %arg4[%c0_6, %c0_7], %8 {strides = array<i32>} : memref<128x128xbf16, #tpu.memory_space<vmem>>, vector<128x128xbf16>,
    return
  }
  func.func @transform_0(%arg0: i32) -> (i32, i32) {
    %c0_i32 = arith.constant 0 : i32
    %c0_i32_0 = arith.constant 0 : i32
    return %arg0, %c0_i32 : i32, i32
  }
  func.func @transform_1(%arg0: i32) -> (i32, i32) {
    %c0_i32 = arith.constant 0 : i32
    %c0_i32_0 = arith.constant 0 : i32
    %c0_i32_1 = arith.constant 0 : i32
    return %c0_i32, %c0_i32_0 : i32, i32
  }
  func.func @transform_2(%arg0: i32) -> (i32, i32) {
    %c0_i32 = arith.constant 0 : i32
    %c0_i32_0 = arith.constant 0 : i32
    %c0_i32_1 = arith.constant 0 : i32
    return %c0_i32, %c0_i32_0 : i32, i32
  }
  func.func @transform_3(%arg0: i32) -> (i32, i32) {
    %c0_i32 = arith.constant 0 : i32
    %c0_i32_0 = arith.constant 0 : i32
    return %arg0, %c0_i32 : i32, i32
  }
}

module attributes {stable_mosaic.version = 11 : i64} {
  func.func @_linear_act_kernel(%arg0: i32, %arg1: memref<32x1024xbf16, #tpu.memory_space<vmem>>, %arg2: memref<1024x128xbf16, #tpu.memory_space<vmem>>, %arg3: memref<1x128xf32, #tpu.memory_space<vmem>>, %arg4: memref<32x128xbf16, #tpu.memory_space<vmem>>) attributes {dimension_semantics = [#tpu.dimension_semantics<parallel>], iteration_bounds = array<i64: 1>, scalar_prefetch = 0 : i64, scratch_operands = 0 : i64, tpu.core_type = #tpu.core_type<tc>, window_params = [{transform_indices = @transform_0, window_bounds = array<i64: 32, 1024>}, {pipeline_mode = #tpu.pipeline_mode<synchronous>, transform_indices = @transform_1, window_bounds = array<i64: 1024, 128>}, {pipeline_mode = #tpu.pipeline_mode<synchronous>, transform_indices = @transform_2, window_bounds = array<i64: 1, 128>}, {transform_indices = @transform_3, window_bounds = array<i64: 32, 128>}]} {
    %c0 = arith.constant 0 : index
    %c0_0 = arith.constant 0 : index
    %0 = vector.load %arg1[%c0, %c0_0] : memref<32x1024xbf16, #tpu.memory_space<vmem>>, vector<32x1024xbf16>
    %c0_1 = arith.constant 0 : index
    %c0_2 = arith.constant 0 : index
    %1 = vector.load %arg2[%c0_1, %c0_2] : memref<1024x128xbf16, #tpu.memory_space<vmem>>, vector<1024x128xbf16>
    %cst = arith.constant dense<0.000000e+00> : vector<32x128xf32>
    %2 = tpu.matmul %0, %1, %cst {dimension_numbers = #tpu.dot_dimension_numbers<[1], [0], [0], [1], [0, 0, 1, 1], [], []>} : vector<32x1024xbf16>, vector<1024x128xbf16>, vector<32x128xf32> -> vector<32x128xf32>
    %c0_3 = arith.constant 0 : index
    %c0_4 = arith.constant 0 : index
    %3 = vector.load %arg3[%c0_3, %c0_4] : memref<1x128xf32, #tpu.memory_space<vmem>>, vector<1x128xf32>
    %4 = vector.broadcast %3 : vector<1x128xf32> to vector<32x128xf32>
    %5 = arith.addf %2, %4 : vector<32x128xf32>
    %cst_5 = arith.constant 0.000000e+00 : f32
    %6 = vector.broadcast %cst_5 : f32 to vector<32x128xf32>
    %7 = arith.maximumf %5, %6 : vector<32x128xf32>
    %8 = arith.truncf %7 : vector<32x128xf32> to vector<32x128xbf16>
    %c0_6 = arith.constant 0 : index
    %c0_7 = arith.constant 0 : index
    %9 = vector.load %arg4[%c0_6, %c0_7] : memref<32x128xbf16, #tpu.memory_space<vmem>>, vector<32x128xbf16>
    tpu.vector_store %arg4[%c0_6, %c0_7], %8 {strides = array<i32>} : memref<32x128xbf16, #tpu.memory_space<vmem>>, vector<32x128xbf16>,
    return
  }
  func.func @transform_0(%arg0: i32) -> (i32, i32) {
    %c0_i32 = arith.constant 0 : i32
    %c0_i32_0 = arith.constant 0 : i32
    return %arg0, %c0_i32 : i32, i32
  }
  func.func @transform_1(%arg0: i32) -> (i32, i32) {
    %c0_i32 = arith.constant 0 : i32
    %c0_i32_0 = arith.constant 0 : i32
    %c0_i32_1 = arith.constant 0 : i32
    return %c0_i32, %c0_i32_0 : i32, i32
  }
  func.func @transform_2(%arg0: i32) -> (i32, i32) {
    %c0_i32 = arith.constant 0 : i32
    %c0_i32_0 = arith.constant 0 : i32
    %c0_i32_1 = arith.constant 0 : i32
    return %c0_i32, %c0_i32_0 : i32, i32
  }
  func.func @transform_3(%arg0: i32) -> (i32, i32) {
    %c0_i32 = arith.constant 0 : i32
    %c0_i32_0 = arith.constant 0 : i32
    return %arg0, %c0_i32 : i32, i32
  }
}

module attributes {stable_mosaic.version = 11 : i64} {
  func.func @_linear_act_kernel(%arg0: i32, %arg1: memref<16x128xbf16, #tpu.memory_space<vmem>>, %arg2: memref<128x2048xbf16, #tpu.memory_space<vmem>>, %arg3: memref<1x2048xf32, #tpu.memory_space<vmem>>, %arg4: memref<16x2048xbf16, #tpu.memory_space<vmem>>) attributes {dimension_semantics = [#tpu.dimension_semantics<parallel>], iteration_bounds = array<i64: 1>, scalar_prefetch = 0 : i64, scratch_operands = 0 : i64, tpu.core_type = #tpu.core_type<tc>, window_params = [{transform_indices = @transform_0, window_bounds = array<i64: 16, 128>}, {pipeline_mode = #tpu.pipeline_mode<synchronous>, transform_indices = @transform_1, window_bounds = array<i64: 128, 2048>}, {pipeline_mode = #tpu.pipeline_mode<synchronous>, transform_indices = @transform_2, window_bounds = array<i64: 1, 2048>}, {transform_indices = @transform_3, window_bounds = array<i64: 16, 2048>}]} {
    %c0 = arith.constant 0 : index
    %c0_0 = arith.constant 0 : index
    %0 = vector.load %arg1[%c0, %c0_0] : memref<16x128xbf16, #tpu.memory_space<vmem>>, vector<16x128xbf16>
    %c0_1 = arith.constant 0 : index
    %c0_2 = arith.constant 0 : index
    %1 = vector.load %arg2[%c0_1, %c0_2] : memref<128x2048xbf16, #tpu.memory_space<vmem>>, vector<128x2048xbf16>
    %cst = arith.constant dense<0.000000e+00> : vector<16x2048xf32>
    %2 = tpu.matmul %0, %1, %cst {dimension_numbers = #tpu.dot_dimension_numbers<[1], [0], [0], [1], [0, 0, 1, 1], [], []>} : vector<16x128xbf16>, vector<128x2048xbf16>, vector<16x2048xf32> -> vector<16x2048xf32>
    %c0_3 = arith.constant 0 : index
    %c0_4 = arith.constant 0 : index
    %3 = vector.load %arg3[%c0_3, %c0_4] : memref<1x2048xf32, #tpu.memory_space<vmem>>, vector<1x2048xf32>
    %4 = vector.broadcast %3 : vector<1x2048xf32> to vector<16x2048xf32>
    %5 = arith.addf %2, %4 : vector<16x2048xf32>
    %cst_5 = arith.constant 0.000000e+00 : f32
    %6 = vector.broadcast %cst_5 : f32 to vector<16x2048xf32>
    %7 = arith.maximumf %5, %6 : vector<16x2048xf32>
    %8 = arith.truncf %7 : vector<16x2048xf32> to vector<16x2048xbf16>
    %c0_6 = arith.constant 0 : index
    %c0_7 = arith.constant 0 : index
    %9 = vector.load %arg4[%c0_6, %c0_7] : memref<16x2048xbf16, #tpu.memory_space<vmem>>, vector<16x2048xbf16>
    tpu.vector_store %arg4[%c0_6, %c0_7], %8 {strides = array<i32>} : memref<16x2048xbf16, #tpu.memory_space<vmem>>, vector<16x2048xbf16>,
    return
  }
  func.func @transform_0(%arg0: i32) -> (i32, i32) {
    %c0_i32 = arith.constant 0 : i32
    %c0_i32_0 = arith.constant 0 : i32
    return %arg0, %c0_i32 : i32, i32
  }
  func.func @transform_1(%arg0: i32) -> (i32, i32) {
    %c0_i32 = arith.constant 0 : i32
    %c0_i32_0 = arith.constant 0 : i32
    %c0_i32_1 = arith.constant 0 : i32
    return %c0_i32, %c0_i32_0 : i32, i32
  }
  func.func @transform_2(%arg0: i32) -> (i32, i32) {
    %c0_i32 = arith.constant 0 : i32
    %c0_i32_0 = arith.constant 0 : i32
    %c0_i32_1 = arith.constant 0 : i32
    return %c0_i32, %c0_i32_0 : i32, i32
  }
  func.func @transform_3(%arg0: i32) -> (i32, i32) {
    %c0_i32 = arith.constant 0 : i32
    %c0_i32_0 = arith.constant 0 : i32
    return %arg0, %c0_i32 : i32, i32
  }
}

module attributes {stable_mosaic.version = 11 : i64} {
  func.func @_fc_reparam_kernel(%arg0: i32, %arg1: memref<16x2048xbf16, #tpu.memory_space<vmem>>, %arg2: memref<2048x256xbf16, #tpu.memory_space<vmem>>, %arg3: memref<1x256xf32, #tpu.memory_space<vmem>>, %arg4: memref<16x128xf32, #tpu.memory_space<vmem>>, %arg5: memref<16x128xf32, #tpu.memory_space<vmem>>, %arg6: memref<16x128xf32, #tpu.memory_space<vmem>>, %arg7: memref<16x128xbf16, #tpu.memory_space<vmem>>) attributes {dimension_semantics = [#tpu.dimension_semantics<parallel>], iteration_bounds = array<i64: 1>, scalar_prefetch = 0 : i64, scratch_operands = 0 : i64, tpu.core_type = #tpu.core_type<tc>, window_params = [{transform_indices = @transform_0, window_bounds = array<i64: 16, 2048>}, {pipeline_mode = #tpu.pipeline_mode<synchronous>, transform_indices = @transform_1, window_bounds = array<i64: 2048, 256>}, {pipeline_mode = #tpu.pipeline_mode<synchronous>, transform_indices = @transform_2, window_bounds = array<i64: 1, 256>}, {transform_indices = @transform_3, window_bounds = array<i64: 16, 128>}, {transform_indices = @transform_4, window_bounds = array<i64: 16, 128>}, {transform_indices = @transform_5, window_bounds = array<i64: 16, 128>}, {transform_indices = @transform_6, window_bounds = array<i64: 16, 128>}]} {
    %c0 = arith.constant 0 : index
    %c0_0 = arith.constant 0 : index
    %0 = vector.load %arg1[%c0, %c0_0] : memref<16x2048xbf16, #tpu.memory_space<vmem>>, vector<16x2048xbf16>
    %c0_1 = arith.constant 0 : index
    %c0_2 = arith.constant 0 : index
    %1 = vector.load %arg2[%c0_1, %c0_2] : memref<2048x256xbf16, #tpu.memory_space<vmem>>, vector<2048x256xbf16>
    %cst = arith.constant dense<0.000000e+00> : vector<16x256xf32>
    %2 = tpu.matmul %0, %1, %cst {dimension_numbers = #tpu.dot_dimension_numbers<[1], [0], [0], [1], [0, 0, 1, 1], [], []>} : vector<16x2048xbf16>, vector<2048x256xbf16>, vector<16x256xf32> -> vector<16x256xf32>
    %c0_3 = arith.constant 0 : index
    %c0_4 = arith.constant 0 : index
    %3 = vector.load %arg3[%c0_3, %c0_4] : memref<1x256xf32, #tpu.memory_space<vmem>>, vector<1x256xf32>
    %4 = vector.broadcast %3 : vector<1x256xf32> to vector<16x256xf32>
    %5 = arith.addf %2, %4 : vector<16x256xf32>
    %6 = vector.extract_strided_slice %5 {offsets = [0, 0], sizes = [16, 128], strides = [1, 1]} : vector<16x256xf32> to vector<16x128xf32>
    %7 = vector.extract_strided_slice %5 {offsets = [0, 128], sizes = [16, 128], strides = [1, 1]} : vector<16x256xf32> to vector<16x128xf32>
    %c0_5 = arith.constant 0 : index
    %c0_6 = arith.constant 0 : index
    %8 = vector.load %arg4[%c0_5, %c0_6] : memref<16x128xf32, #tpu.memory_space<vmem>>, vector<16x128xf32>
    %cst_7 = arith.constant 5.000000e-01 : f32
    %9 = vector.broadcast %cst_7 : f32 to vector<16x128xf32>
    %10 = arith.mulf %9, %7 : vector<16x128xf32>
    %11 = math.exp %10 : vector<16x128xf32>
    %12 = arith.mulf %8, %11 : vector<16x128xf32>
    %13 = arith.addf %6, %12 : vector<16x128xf32>
    %c0_8 = arith.constant 0 : index
    %c0_9 = arith.constant 0 : index
    %14 = vector.load %arg5[%c0_8, %c0_9] : memref<16x128xf32, #tpu.memory_space<vmem>>, vector<16x128xf32>
    tpu.vector_store %arg5[%c0_8, %c0_9], %6 {strides = array<i32>} : memref<16x128xf32, #tpu.memory_space<vmem>>, vector<16x128xf32>,
    %c0_10 = arith.constant 0 : index
    %c0_11 = arith.constant 0 : index
    %15 = vector.load %arg6[%c0_10, %c0_11] : memref<16x128xf32, #tpu.memory_space<vmem>>, vector<16x128xf32>
    tpu.vector_store %arg6[%c0_10, %c0_11], %7 {strides = array<i32>} : memref<16x128xf32, #tpu.memory_space<vmem>>, vector<16x128xf32>,
    %16 = arith.truncf %13 : vector<16x128xf32> to vector<16x128xbf16>
    %c0_12 = arith.constant 0 : index
    %c0_13 = arith.constant 0 : index
    %17 = vector.load %arg7[%c0_12, %c0_13] : memref<16x128xbf16, #tpu.memory_space<vmem>>, vector<16x128xbf16>
    tpu.vector_store %arg7[%c0_12, %c0_13], %16 {strides = array<i32>} : memref<16x128xbf16, #tpu.memory_space<vmem>>, vector<16x128xbf16>,
    return
  }
  func.func @transform_0(%arg0: i32) -> (i32, i32) {
    %c0_i32 = arith.constant 0 : i32
    %c0_i32_0 = arith.constant 0 : i32
    return %arg0, %c0_i32 : i32, i32
  }
  func.func @transform_1(%arg0: i32) -> (i32, i32) {
    %c0_i32 = arith.constant 0 : i32
    %c0_i32_0 = arith.constant 0 : i32
    %c0_i32_1 = arith.constant 0 : i32
    return %c0_i32, %c0_i32_0 : i32, i32
  }
  func.func @transform_2(%arg0: i32) -> (i32, i32) {
    %c0_i32 = arith.constant 0 : i32
    %c0_i32_0 = arith.constant 0 : i32
    %c0_i32_1 = arith.constant 0 : i32
    return %c0_i32, %c0_i32_0 : i32, i32
  }
  func.func @transform_3(%arg0: i32) -> (i32, i32) {
    %c0_i32 = arith.constant 0 : i32
    %c0_i32_0 = arith.constant 0 : i32
    return %arg0, %c0_i32 : i32, i32
  }
  func.func @transform_4(%arg0: i32) -> (i32, i32) {
    %c0_i32 = arith.constant 0 : i32
    %c0_i32_0 = arith.constant 0 : i32
    return %arg0, %c0_i32 : i32, i32
  }
  func.func @transform_5(%arg0: i32) -> (i32, i32) {
    %c0_i32 = arith.constant 0 : i32
    %c0_i32_0 = arith.constant 0 : i32
    return %arg0, %c0_i32 : i32, i32
  }
  func.func @transform_6(%arg0: i32) -> (i32, i32) {
    %c0_i32 = arith.constant 0 : i32
    %c0_i32_0 = arith.constant 0 : i32
    return %arg0, %c0_i32 : i32, i32
  }
}

module attributes {stable_mosaic.version = 11 : i64} {
  func.func @_linear_act_kernel(%arg0: i32, %arg1: memref<64x512xbf16, #tpu.memory_space<vmem>>, %arg2: memref<512x256xbf16, #tpu.memory_space<vmem>>, %arg3: memref<1x256xf32, #tpu.memory_space<vmem>>, %arg4: memref<64x256xbf16, #tpu.memory_space<vmem>>) attributes {dimension_semantics = [#tpu.dimension_semantics<parallel>], iteration_bounds = array<i64: 1>, scalar_prefetch = 0 : i64, scratch_operands = 0 : i64, tpu.core_type = #tpu.core_type<tc>, window_params = [{transform_indices = @transform_0, window_bounds = array<i64: 64, 512>}, {pipeline_mode = #tpu.pipeline_mode<synchronous>, transform_indices = @transform_1, window_bounds = array<i64: 512, 256>}, {pipeline_mode = #tpu.pipeline_mode<synchronous>, transform_indices = @transform_2, window_bounds = array<i64: 1, 256>}, {transform_indices = @transform_3, window_bounds = array<i64: 64, 256>}]} {
    %c0 = arith.constant 0 : index
    %c0_0 = arith.constant 0 : index
    %0 = vector.load %arg1[%c0, %c0_0] : memref<64x512xbf16, #tpu.memory_space<vmem>>, vector<64x512xbf16>
    %c0_1 = arith.constant 0 : index
    %c0_2 = arith.constant 0 : index
    %1 = vector.load %arg2[%c0_1, %c0_2] : memref<512x256xbf16, #tpu.memory_space<vmem>>, vector<512x256xbf16>
    %cst = arith.constant dense<0.000000e+00> : vector<64x256xf32>
    %2 = tpu.matmul %0, %1, %cst {dimension_numbers = #tpu.dot_dimension_numbers<[1], [0], [0], [1], [0, 0, 1, 1], [], []>} : vector<64x512xbf16>, vector<512x256xbf16>, vector<64x256xf32> -> vector<64x256xf32>
    %c0_3 = arith.constant 0 : index
    %c0_4 = arith.constant 0 : index
    %3 = vector.load %arg3[%c0_3, %c0_4] : memref<1x256xf32, #tpu.memory_space<vmem>>, vector<1x256xf32>
    %4 = vector.broadcast %3 : vector<1x256xf32> to vector<64x256xf32>
    %5 = arith.addf %2, %4 : vector<64x256xf32>
    %cst_5 = arith.constant 0.000000e+00 : f32
    %6 = vector.broadcast %cst_5 : f32 to vector<64x256xf32>
    %7 = arith.maximumf %5, %6 : vector<64x256xf32>
    %8 = arith.truncf %7 : vector<64x256xf32> to vector<64x256xbf16>
    %c0_6 = arith.constant 0 : index
    %c0_7 = arith.constant 0 : index
    %9 = vector.load %arg4[%c0_6, %c0_7] : memref<64x256xbf16, #tpu.memory_space<vmem>>, vector<64x256xbf16>
    tpu.vector_store %arg4[%c0_6, %c0_7], %8 {strides = array<i32>} : memref<64x256xbf16, #tpu.memory_space<vmem>>, vector<64x256xbf16>,
    return
  }
  func.func @transform_0(%arg0: i32) -> (i32, i32) {
    %c0_i32 = arith.constant 0 : i32
    %c0_i32_0 = arith.constant 0 : i32
    return %arg0, %c0_i32 : i32, i32
  }
  func.func @transform_1(%arg0: i32) -> (i32, i32) {
    %c0_i32 = arith.constant 0 : i32
    %c0_i32_0 = arith.constant 0 : i32
    %c0_i32_1 = arith.constant 0 : i32
    return %c0_i32, %c0_i32_0 : i32, i32
  }
  func.func @transform_2(%arg0: i32) -> (i32, i32) {
    %c0_i32 = arith.constant 0 : i32
    %c0_i32_0 = arith.constant 0 : i32
    %c0_i32_1 = arith.constant 0 : i32
    return %c0_i32, %c0_i32_0 : i32, i32
  }
  func.func @transform_3(%arg0: i32) -> (i32, i32) {
    %c0_i32 = arith.constant 0 : i32
    %c0_i32_0 = arith.constant 0 : i32
    return %arg0, %c0_i32 : i32, i32
  }
}

module attributes {stable_mosaic.version = 11 : i64} {
  func.func @_linear_act_kernel(%arg0: i32, %arg1: memref<176x256xbf16, #tpu.memory_space<vmem>>, %arg2: memref<256x128xbf16, #tpu.memory_space<vmem>>, %arg3: memref<1x128xf32, #tpu.memory_space<vmem>>, %arg4: memref<176x128xbf16, #tpu.memory_space<vmem>>) attributes {dimension_semantics = [#tpu.dimension_semantics<parallel>], iteration_bounds = array<i64: 1>, scalar_prefetch = 0 : i64, scratch_operands = 0 : i64, tpu.core_type = #tpu.core_type<tc>, window_params = [{transform_indices = @transform_0, window_bounds = array<i64: 176, 256>}, {pipeline_mode = #tpu.pipeline_mode<synchronous>, transform_indices = @transform_1, window_bounds = array<i64: 256, 128>}, {pipeline_mode = #tpu.pipeline_mode<synchronous>, transform_indices = @transform_2, window_bounds = array<i64: 1, 128>}, {transform_indices = @transform_3, window_bounds = array<i64: 176, 128>}]} {
    %c0 = arith.constant 0 : index
    %c0_0 = arith.constant 0 : index
    %0 = vector.load %arg1[%c0, %c0_0] : memref<176x256xbf16, #tpu.memory_space<vmem>>, vector<176x256xbf16>
    %c0_1 = arith.constant 0 : index
    %c0_2 = arith.constant 0 : index
    %1 = vector.load %arg2[%c0_1, %c0_2] : memref<256x128xbf16, #tpu.memory_space<vmem>>, vector<256x128xbf16>
    %cst = arith.constant dense<0.000000e+00> : vector<176x128xf32>
    %2 = tpu.matmul %0, %1, %cst {dimension_numbers = #tpu.dot_dimension_numbers<[1], [0], [0], [1], [0, 0, 1, 1], [], []>} : vector<176x256xbf16>, vector<256x128xbf16>, vector<176x128xf32> -> vector<176x128xf32>
    %c0_3 = arith.constant 0 : index
    %c0_4 = arith.constant 0 : index
    %3 = vector.load %arg3[%c0_3, %c0_4] : memref<1x128xf32, #tpu.memory_space<vmem>>, vector<1x128xf32>
    %4 = vector.broadcast %3 : vector<1x128xf32> to vector<176x128xf32>
    %5 = arith.addf %2, %4 : vector<176x128xf32>
    %cst_5 = arith.constant 0.000000e+00 : f32
    %6 = vector.broadcast %cst_5 : f32 to vector<176x128xf32>
    %7 = arith.maximumf %5, %6 : vector<176x128xf32>
    %8 = arith.truncf %7 : vector<176x128xf32> to vector<176x128xbf16>
    %c0_6 = arith.constant 0 : index
    %c0_7 = arith.constant 0 : index
    %9 = vector.load %arg4[%c0_6, %c0_7] : memref<176x128xbf16, #tpu.memory_space<vmem>>, vector<176x128xbf16>
    tpu.vector_store %arg4[%c0_6, %c0_7], %8 {strides = array<i32>} : memref<176x128xbf16, #tpu.memory_space<vmem>>, vector<176x128xbf16>,
    return
  }
  func.func @transform_0(%arg0: i32) -> (i32, i32) {
    %c0_i32 = arith.constant 0 : i32
    %c0_i32_0 = arith.constant 0 : i32
    return %arg0, %c0_i32 : i32, i32
  }
  func.func @transform_1(%arg0: i32) -> (i32, i32) {
    %c0_i32 = arith.constant 0 : i32
    %c0_i32_0 = arith.constant 0 : i32
    %c0_i32_1 = arith.constant 0 : i32
    return %c0_i32, %c0_i32_0 : i32, i32
  }
  func.func @transform_2(%arg0: i32) -> (i32, i32) {
    %c0_i32 = arith.constant 0 : i32
    %c0_i32_0 = arith.constant 0 : i32
    %c0_i32_1 = arith.constant 0 : i32
    return %c0_i32, %c0_i32_0 : i32, i32
  }
  func.func @transform_3(%arg0: i32) -> (i32, i32) {
    %c0_i32 = arith.constant 0 : i32
    %c0_i32_0 = arith.constant 0 : i32
    return %arg0, %c0_i32 : i32, i32
  }
}

module attributes {stable_mosaic.version = 11 : i64} {
  func.func @_linear_act_kernel(%arg0: i32, %arg1: memref<256x128xbf16, #tpu.memory_space<vmem>>, %arg2: memref<128x128xbf16, #tpu.memory_space<vmem>>, %arg3: memref<1x128xf32, #tpu.memory_space<vmem>>, %arg4: memref<256x128xf32, #tpu.memory_space<vmem>>) attributes {dimension_semantics = [#tpu.dimension_semantics<parallel>], iteration_bounds = array<i64: 3>, scalar_prefetch = 0 : i64, scratch_operands = 0 : i64, tpu.core_type = #tpu.core_type<tc>, window_params = [{transform_indices = @transform_0, window_bounds = array<i64: 256, 128>}, {pipeline_mode = #tpu.pipeline_mode<synchronous>, transform_indices = @transform_1, window_bounds = array<i64: 128, 128>}, {pipeline_mode = #tpu.pipeline_mode<synchronous>, transform_indices = @transform_2, window_bounds = array<i64: 1, 128>}, {transform_indices = @transform_3, window_bounds = array<i64: 256, 128>}]} {
    %c0 = arith.constant 0 : index
    %c0_0 = arith.constant 0 : index
    %0 = vector.load %arg1[%c0, %c0_0] : memref<256x128xbf16, #tpu.memory_space<vmem>>, vector<256x128xbf16>
    %c0_1 = arith.constant 0 : index
    %c0_2 = arith.constant 0 : index
    %1 = vector.load %arg2[%c0_1, %c0_2] : memref<128x128xbf16, #tpu.memory_space<vmem>>, vector<128x128xbf16>
    %cst = arith.constant dense<0.000000e+00> : vector<256x128xf32>
    %2 = tpu.matmul %0, %1, %cst {dimension_numbers = #tpu.dot_dimension_numbers<[1], [0], [0], [1], [0, 0, 1, 1], [], []>} : vector<256x128xbf16>, vector<128x128xbf16>, vector<256x128xf32> -> vector<256x128xf32>
    %c0_3 = arith.constant 0 : index
    %c0_4 = arith.constant 0 : index
    %3 = vector.load %arg3[%c0_3, %c0_4] : memref<1x128xf32, #tpu.memory_space<vmem>>, vector<1x128xf32>
    %4 = vector.broadcast %3 : vector<1x128xf32> to vector<256x128xf32>
    %5 = arith.addf %2, %4 : vector<256x128xf32>
    %cst_5 = arith.constant 0.000000e+00 : f32
    %6 = vector.broadcast %cst_5 : f32 to vector<256x128xf32>
    %7 = arith.subf %6, %5 : vector<256x128xf32>
    %8 = math.exp %7 : vector<256x128xf32>
    %cst_6 = arith.constant 1.000000e+00 : f32
    %9 = vector.broadcast %cst_6 : f32 to vector<256x128xf32>
    %10 = arith.addf %9, %8 : vector<256x128xf32>
    %11 = tpu.reciprocal %10 {approx = true} : vector<256x128xf32> -> vector<256x128xf32>
    %c0_7 = arith.constant 0 : index
    %c0_8 = arith.constant 0 : index
    %12 = vector.load %arg4[%c0_7, %c0_8] : memref<256x128xf32, #tpu.memory_space<vmem>>, vector<256x128xf32>
    tpu.vector_store %arg4[%c0_7, %c0_8], %11 {strides = array<i32>} : memref<256x128xf32, #tpu.memory_space<vmem>>, vector<256x128xf32>,
    return
  }
  func.func @transform_0(%arg0: i32) -> (i32, i32) {
    %c0_i32 = arith.constant 0 : i32
    %c0_i32_0 = arith.constant 0 : i32
    return %arg0, %c0_i32 : i32, i32
  }
  func.func @transform_1(%arg0: i32) -> (i32, i32) {
    %c0_i32 = arith.constant 0 : i32
    %c0_i32_0 = arith.constant 0 : i32
    %c0_i32_1 = arith.constant 0 : i32
    return %c0_i32, %c0_i32_0 : i32, i32
  }
  func.func @transform_2(%arg0: i32) -> (i32, i32) {
    %c0_i32 = arith.constant 0 : i32
    %c0_i32_0 = arith.constant 0 : i32
    %c0_i32_1 = arith.constant 0 : i32
    return %c0_i32, %c0_i32_0 : i32, i32
  }
  func.func @transform_3(%arg0: i32) -> (i32, i32) {
    %c0_i32 = arith.constant 0 : i32
    %c0_i32_0 = arith.constant 0 : i32
    return %arg0, %c0_i32 : i32, i32
  }
}

</mosaic_0001>

<bundles_post_ra>
// kernel: vae_forward.8
= control target key start
LH: loop header
LB: loop body
LE: loop exit
PB: predicated region body
PF: predicated region fallthrough
CT: control target
= control target key end

     0   :  { %s1126_s12 = smov 0   ;;  %s1247_s0 = inlined_call_operand.vmem [shape: bf16[512,128], index: 0, kind: input, shape index: {}]   ;;  %s1248_s1 = inlined_call_operand.vmem [shape: bf16[128,128], index: 1, kind: input, shape index: {}]   ;;  %s1249_s2 = inlined_call_operand.vmem [shape: f32[1,128], index: 2, kind: input, shape index: {}]   ;;  %s1250_s3 = inlined_call_operand.vmem [shape: bf16[512,128], index: 3, kind: output, shape index: {}]  }
   0x1 LB: > { %s783_s13 = sadd.s32 4294967295, %s1104_s12   ;;  %p787_p0 = scmp.ge.s32.totalorder %s1104_s12, 1  ;;  %s1104_s12 = sphi %s1126_s12, %s13_s12  }
   0x2   : > { %p138_p1 = scmp.lt.s32.totalorder %s1104_s12, 3 }
   0x4   : > { %p139_p2 = pnand %p787_p0, %p138_p1 }
   0x5   : > { %v1074_v0 = vld [vmem:[%s1248_s1] sm:$0xff] (!%p139_p2)   ;;  %s788_s16 = sshll.u32 (!%p139_p2), %s783_s13, 5  ;;  %v1075_v1 = vld [vmem:[%s1248_s1 + $0x8] sm:$0xff] (!%p139_p2)   ;;  %v1076_v2 = vld [vmem:[%s1248_s1 + $0x10] sm:$0xff] (!%p139_p2)  }
   0x6   : > { %142 = sbr.rel (%p139_p2) target bundleno = 284 (0x11c), region = 32  ;;  %p163_p3 = scmp.lt.s32.totalorder (!%p139_p2), %s788_s16, 63  ;;  %1002 = vmatprep.subr.bf16.mxu0 (!%p139_p2), %v1074_v0  ;;  %1050 = vmatprep.subr.bf16.mxu1 (!%p139_p2), %v1074_v0  ;;  %v1077_v3 = vld [vmem:[%s1248_s1 + $0x18] sm:$0xff] (!%p139_p2)   ;;  %v1078_v6 = vld [vmem:[%s1248_s1 + $0x20] sm:$0xff] (!%p139_p2)   ;;  %v1079_v7 = vld [vmem:[%s1248_s1 + $0x28] sm:$0xff] (!%p139_p2)  }
   0x7   : > { %1003 = vmatpush3.bf16.msra.mxu0 (!%p139_p2), %v1074_v0  ;;  %1058 = vmatpush3.bf16.msra.mxu1 (!%p139_p2), %v1074_v0  ;;  %v1080_v8 = vld [vmem:[%s1248_s1 + $0x30] sm:$0xff] (!%p139_p2)   ;;  %v1081_v9 = vld [vmem:[%s1248_s1 + $0x38] sm:$0xff] (!%p139_p2)   ;;  %v1187_v24 = vld [vmem:[%s1249_s2] ss:$0 sm:$0xff] (!%p139_p2) }
   0x8   : > { %1004 = vmatprep.subr.bf16.mxu0 (!%p139_p2), %v1075_v1  ;;  %1051 = vmatprep.subr.bf16.mxu1 (!%p139_p2), %v1075_v1 }
   0xb   : > { %1005 = vmatpush3.bf16.msra.mxu0 (!%p139_p2), %v1075_v1  ;;  %1059 = vmatpush3.bf16.msra.mxu1 (!%p139_p2), %v1075_v1 }
   0xc   : > { %1006 = vmatprep.subr.bf16.mxu0 (!%p139_p2), %v1076_v2  ;;  %1052 = vmatprep.subr.bf16.mxu1 (!%p139_p2), %v1076_v2 }
   0xd   : > { %s1252_s16 = smov (!%p163_p3, %s788_s16), 63 }
   0xe   : > { %s789_s21 = sshll.u32 %s1252_s16, 2 }
   0xf   : > { %s1151_s24 = scalar_lea.vmem %s1247_s0, %s789_s21  ;;  %1007 = vmatpush3.bf16.msra.mxu0 %v1076_v2  ;;  %1060 = vmatpush3.bf16.msra.mxu1 %v1076_v2  ;;  %s1202_s13 = scalar_lea.vmem %s1250_s3, %s789_s21 }
  0x10   : > { %v1082_v4 = vld [vmem:[%s1151_s24] sm:$0xff]   ;;  %1008 = vmatprep.subr.bf16.mxu0 %v1077_v3  ;;  %1053 = vmatprep.subr.bf16.mxu1 %v1077_v3  ;;  %v1084_v10 = vld [vmem:[%s1151_s24 + $0x8] sm:$0xff]   ;;  %v1086_v12 = vld [vmem:[%s1151_s24 + $0x10] sm:$0xff]  }
  0x11   : > { %v1083_v5 = vld [vmem:[%s1151_s24 + $0x40] sm:$0xff]   ;;  %1018 = vmatprep.mubr.bf16.mxu0 %v1082_v4  ;;  %v1085_v11 = vld [vmem:[%s1151_s24 + $0x48] sm:$0xff]   ;;  %v1087_v13 = vld [vmem:[%s1151_s24 + $0x50] sm:$0xff]  }
  0x12   : > { %1034 = vmatprep.mubr.bf16.mxu1 %v1083_v5  ;;  %v1088_v14 = vld [vmem:[%s1151_s24 + $0x18] sm:$0xff]   ;;  %v1090_v16 = vld [vmem:[%s1151_s24 + $0x20] sm:$0xff]   ;;  %v1092_v18 = vld [vmem:[%s1151_s24 + $0x28] sm:$0xff]  }
  0x13   : > { %1009 = vmatpush3.bf16.msra.mxu0 %v1077_v3  ;;  %1061 = vmatpush3.bf16.msra.mxu1 %v1077_v3  ;;  %v1089_v15 = vld [vmem:[%s1151_s24 + $0x58] sm:$0xff]   ;;  %v1091_v17 = vld [vmem:[%s1151_s24 + $0x60] sm:$0xff]   ;;  %v1093_v19 = vld [vmem:[%s1151_s24 + $0x68] sm:$0xff]  }
  0x14   : > { %1010 = vmatprep.subr.bf16.mxu0 %v1078_v6  ;;  %1054 = vmatprep.subr.bf16.mxu1 %v1078_v6  ;;  %v1094_v20 = vld [vmem:[%s1151_s24 + $0x30] sm:$0xff]   ;;  %v1096_v22 = vld [vmem:[%s1151_s24 + $0x38] sm:$0xff]  }
  0x15   : > { %v1095_v21 = vld [vmem:[%s1151_s24 + $0x70] sm:$0xff]   ;;  %v1097_v23 = vld [vmem:[%s1151_s24 + $0x78] sm:$0xff]  }
  0x17   : > { %1011 = vmatpush3.bf16.msra.mxu0 %v1078_v6  ;;  %1062 = vmatpush3.bf16.msra.mxu1 %v1078_v6 }
  0x18   : > { %1012 = vmatprep.subr.bf16.mxu0 %v1079_v7  ;;  %1055 = vmatprep.subr.bf16.mxu1 %v1079_v7 }
  0x1b   : > { %1013 = vmatpush3.bf16.msra.mxu0 %v1079_v7  ;;  %1063 = vmatpush3.bf16.msra.mxu1 %v1079_v7 }
  0x1c   : > { %1014 = vmatprep.subr.bf16.mxu0 %v1080_v8  ;;  %1056 = vmatprep.subr.bf16.mxu1 %v1080_v8 }
  0x1f   : > { %1015 = vmatpush3.bf16.msra.mxu0 %v1080_v8  ;;  %1064 = vmatpush3.bf16.msra.mxu1 %v1080_v8 }
  0x20   : > { %1016 = vmatprep.subr.bf16.mxu0 %v1081_v9  ;;  %1057 = vmatprep.subr.bf16.mxu1 %v1081_v9 }
  0x23   : > { %1017 = vmatpush3.bf16.msra.mxu0 %v1081_v9  ;;  %1065 = vmatpush3.bf16.msra.mxu1 %v1081_v9 }
  0x26   : > { %1019 = vmatmul.mubr.bf16.vlgmr.msra.gmra.mrb[0].mxu0 %v1084_v10  ;;  %1035 = vmatmul.mubr.bf16.vlgmr.msra.gmra.mrb[0].mxu1 %v1085_v11 }
  0x27   : > { %1022 = vmatprep.mubr.bf16.mxu0 %v1086_v12  ;;  %1038 = vmatprep.mubr.bf16.mxu1 %v1087_v13 }
  0x2e   : > { %1023 = vmatmul.mubr.bf16.gmra.mrb[4].mxu0 %v1088_v14  ;;  %1039 = vmatmul.mubr.bf16.gmra.mrb[4].mxu1 %v1089_v15 }
  0x2f   : > { %1026 = vmatprep.mubr.bf16.mxu0 %v1090_v16  ;;  %1042 = vmatprep.mubr.bf16.mxu1 %v1091_v17 }
  0x36   : > { %1027 = vmatmul.mubr.bf16.gmra.mrb[8].mxu0 %v1092_v18  ;;  %1043 = vmatmul.mubr.bf16.gmra.mrb[8].mxu1 %v1093_v19 }
  0x37   : > { %1030 = vmatprep.mubr.bf16.mxu0 %v1094_v20  ;;  %1046 = vmatprep.mubr.bf16.mxu1 %v1095_v21 }
  0x3e   : > { %1031 = vmatmul.mubr.bf16.gmra.mrb[12].mxu0 %v1096_v22  ;;  %1047 = vmatmul.mubr.bf16.gmra.mrb[12].mxu1 %v1097_v23 }
  0xf9   : > { %v1020_v25 = vpop.f32.mrb[0].mxu0  ;;  %v1036_v26 = vpop.f32.mrb[0].mxu1 }
  0xfa   : > { %v417_v27 = vadd.f32 %v1020_v25, %v1187_v24  ;;  %v481_v28 = vadd.f32 %v1036_v26, %v1187_v24  ;;  %v408_v29 = vpop.f32.mrb[1].mxu0  ;;  %v472_v30 = vpop.f32.mrb[1].mxu1 }
  0xfb   : > { %v409_v31 = vadd.f32 %v1187_v24, %v408_v29  ;;  %v473_v32 = vadd.f32 %v1187_v24, %v472_v30  ;;  %v1021_v33 = vpop.f32.mrb[2].mxu0  ;;  %v1037_v34 = vpop.f32.mrb[2].mxu1 }
  0xfc   : > { %v420_v35 = vadd.f32 %v1021_v33, %v1187_v24  ;;  %v484_v36 = vadd.f32 %v1037_v34, %v1187_v24  ;;  %v411_v37 = vpop.f32.mrb[3].mxu0  ;;  %v475_v38 = vpop.f32.mrb[3].mxu1  ;;  %v537_v41 = vmax.f32 %v417_v27, 0.0  ;;  %v553_v42 = vmax.f32 %v481_v28, 0.0 }
  0xfd   : > { %v412_v39 = vadd.f32 %v1187_v24, %v411_v37  ;;  %v476_v40 = vadd.f32 %v1187_v24, %v475_v38  ;;  %v535_v45 = vmax.f32 %v409_v31, 0.0  ;;  %v551_v46 = vmax.f32 %v473_v32, 0.0 }
  0xfe   : > { %v538_v43 = vmax.f32 %v420_v35, 0.0  ;;  %v554_v44 = vmax.f32 %v484_v36, 0.0 }
  0xff   : > { %v536_v47 = vmax.f32 %v412_v39, 0.0  ;;  %v552_v48 = vmax.f32 %v476_v40, 0.0 }
 0x100   : > { %v891_v49 = vpack.c.bf16 %v538_v43, %v537_v41  ;;  %v931_v50 = vpack.c.bf16 %v554_v44, %v553_v42 }
 0x101   : > { %v886_v51 = vpack.c.bf16 %v536_v47, %v535_v45  ;;  %v926_v52 = vpack.c.bf16 %v552_v48, %v551_v46  ;;  %v1024_v53 = vpop.f32.mrb[4].mxu0  ;;  %v1040_v54 = vpop.f32.mrb[4].mxu1 }
 0x102   : > { %963 = vst [vmem:[%s1202_s13 + $0x8] sm:$0xff] %v891_v49   ;;  %971 = vst [vmem:[%s1202_s13 + $0x48] sm:$0xff] %v931_v50   ;;  %v433_v55 = vadd.f32 %v1024_v53, %v1187_v24  ;;  %v497_v56 = vadd.f32 %v1040_v54, %v1187_v24  ;;  %v424_v57 = vpop.f32.mrb[5].mxu0  ;;  %v488_v58 = vpop.f32.mrb[5].mxu1 }
 0x103   : > { %887 = vst [vmem:[%s1202_s13] sm:$0xff] %v886_v51   ;;  %970 = vst [vmem:[%s1202_s13 + $0x40] sm:$0xff] %v926_v52   ;;  %v425_v59 = vadd.f32 %v1187_v24, %v424_v57  ;;  %v489_v60 = vadd.f32 %v1187_v24, %v488_v58  ;;  %v1025_v61 = vpop.f32.mrb[6].mxu0  ;;  %v1041_v62 = vpop.f32.mrb[6].mxu1 }
 0x104   : > { %v436_v63 = vadd.f32 %v1025_v61, %v1187_v24  ;;  %v500_v0 = vadd.f32 %v1041_v62, %v1187_v24  ;;  %v427_v1 = vpop.f32.mrb[7].mxu0  ;;  %v491_v2 = vpop.f32.mrb[7].mxu1  ;;  %v541_v5 = vmax.f32 %v433_v55, 0.0  ;;  %v557_v6 = vmax.f32 %v497_v56, 0.0 }
 0x105   : > { %v428_v3 = vadd.f32 %v1187_v24, %v427_v1  ;;  %v492_v4 = vadd.f32 %v1187_v24, %v491_v2  ;;  %v539_v9 = vmax.f32 %v425_v59, 0.0  ;;  %v555_v10 = vmax.f32 %v489_v60, 0.0 }
 0x106   : > { %v542_v7 = vmax.f32 %v436_v63, 0.0  ;;  %v558_v8 = vmax.f32 %v500_v0, 0.0 }
 0x107   : > { %v540_v11 = vmax.f32 %v428_v3, 0.0  ;;  %v556_v12 = vmax.f32 %v492_v4, 0.0 }
 0x108   : > { %v901_v13 = vpack.c.bf16 %v542_v7, %v541_v5  ;;  %v941_v14 = vpack.c.bf16 %v558_v8, %v557_v6 }
 0x109   : > { %v896_v15 = vpack.c.bf16 %v540_v11, %v539_v9  ;;  %v936_v16 = vpack.c.bf16 %v556_v12, %v555_v10  ;;  %v1028_v17 = vpop.f32.mrb[8].mxu0  ;;  %v1044_v18 = vpop.f32.mrb[8].mxu1 }
 0x10a   : > { %965 = vst [vmem:[%s1202_s13 + $0x18] sm:$0xff] %v901_v13   ;;  %973 = vst [vmem:[%s1202_s13 + $0x58] sm:$0xff] %v941_v14   ;;  %v449_v19 = vadd.f32 %v1028_v17, %v1187_v24  ;;  %v513_v20 = vadd.f32 %v1044_v18, %v1187_v24  ;;  %v440_v21 = vpop.f32.mrb[9].mxu0  ;;  %v504_v22 = vpop.f32.mrb[9].mxu1 }
 0x10b   : > { %964 = vst [vmem:[%s1202_s13 + $0x10] sm:$0xff] %v896_v15   ;;  %972 = vst [vmem:[%s1202_s13 + $0x50] sm:$0xff] %v936_v16   ;;  %v441_v23 = vadd.f32 %v1187_v24, %v440_v21  ;;  %v505_v25 = vadd.f32 %v1187_v24, %v504_v22  ;;  %v1029_v26 = vpop.f32.mrb[10].mxu0  ;;  %v1045_v27 = vpop.f32.mrb[10].mxu1 }
 0x10c   : > { %v452_v28 = vadd.f32 %v1029_v26, %v1187_v24  ;;  %v516_v29 = vadd.f32 %v1045_v27, %v1187_v24  ;;  %v443_v30 = vpop.f32.mrb[11].mxu0  ;;  %v507_v31 = vpop.f32.mrb[11].mxu1  ;;  %v545_v34 = vmax.f32 %v449_v19, 0.0  ;;  %v561_v35 = vmax.f32 %v513_v20, 0.0 }
 0x10d   : > { %v444_v32 = vadd.f32 %v1187_v24, %v443_v30  ;;  %v508_v33 = vadd.f32 %v1187_v24, %v507_v31  ;;  %v543_v38 = vmax.f32 %v441_v23, 0.0  ;;  %v559_v39 = vmax.f32 %v505_v25, 0.0 }
 0x10e   : > { %v546_v36 = vmax.f32 %v452_v28, 0.0  ;;  %v562_v37 = vmax.f32 %v516_v29, 0.0 }
 0x10f   : > { %v544_v40 = vmax.f32 %v444_v32, 0.0  ;;  %v560_v41 = vmax.f32 %v508_v33, 0.0 }
 0x110   : > { %v911_v42 = vpack.c.bf16 %v546_v36, %v545_v34  ;;  %v951_v43 = vpack.c.bf16 %v562_v37, %v561_v35 }
 0x111   : > { %v906_v44 = vpack.c.bf16 %v544_v40, %v543_v38  ;;  %v946_v45 = vpack.c.bf16 %v560_v41, %v559_v39  ;;  %v1032_v46 = vpop.f32.mrb[12].mxu0  ;;  %v1048_v47 = vpop.f32.mrb[12].mxu1 }
 0x112   : > { %967 = vst [vmem:[%s1202_s13 + $0x28] sm:$0xff] %v911_v42   ;;  %975 = vst [vmem:[%s1202_s13 + $0x68] sm:$0xff] %v951_v43   ;;  %v465_v48 = vadd.f32 %v1032_v46, %v1187_v24  ;;  %v529_v49 = vadd.f32 %v1048_v47, %v1187_v24  ;;  %v456_v50 = vpop.f32.mrb[13].mxu0  ;;  %v520_v51 = vpop.f32.mrb[13].mxu1 }
 0x113   : > { %966 = vst [vmem:[%s1202_s13 + $0x20] sm:$0xff] %v906_v44   ;;  %974 = vst [vmem:[%s1202_s13 + $0x60] sm:$0xff] %v946_v45   ;;  %v457_v52 = vadd.f32 %v1187_v24, %v456_v50  ;;  %v521_v53 = vadd.f32 %v1187_v24, %v520_v51  ;;  %v1033_v54 = vpop.f32.mrb[14].mxu0  ;;  %v1049_v55 = vpop.f32.mrb[14].mxu1 }
 0x114   : > { %v468_v56 = vadd.f32 %v1033_v54, %v1187_v24  ;;  %v532_v57 = vadd.f32 %v1049_v55, %v1187_v24  ;;  %v459_v58 = vpop.f32.mrb[15].mxu0  ;;  %v523_v59 = vpop.f32.mrb[15].mxu1  ;;  %v549_v62 = vmax.f32 %v465_v48, 0.0  ;;  %v565_v63 = vmax.f32 %v529_v49, 0.0 }
 0x115   : > { %v460_v60 = vadd.f32 %v1187_v24, %v459_v58  ;;  %v524_v61 = vadd.f32 %v1187_v24, %v523_v59  ;;  %v547_v2 = vmax.f32 %v457_v52, 0.0  ;;  %v563_v3 = vmax.f32 %v521_v53, 0.0 }
 0x116   : > { %v550_v0 = vmax.f32 %v468_v56, 0.0  ;;  %v566_v1 = vmax.f32 %v532_v57, 0.0 }
 0x117   : > { %v548_v4 = vmax.f32 %v460_v60, 0.0  ;;  %v564_v5 = vmax.f32 %v524_v61, 0.0 }
 0x118   : > { %v921_v6 = vpack.c.bf16 %v550_v0, %v549_v62  ;;  %v961_v7 = vpack.c.bf16 %v566_v1, %v565_v63 }
 0x119   : > { %v916_v8 = vpack.c.bf16 %v548_v4, %v547_v2  ;;  %v956_v9 = vpack.c.bf16 %v564_v5, %v563_v3 }
 0x11a   : > { %969 = vst [vmem:[%s1202_s13 + $0x38] sm:$0xff] %v921_v6   ;;  %977 = vst [vmem:[%s1202_s13 + $0x78] sm:$0xff] %v961_v7  }
 0x11b   : > { %968 = vst [vmem:[%s1202_s13 + $0x30] sm:$0xff] %v916_v8   ;;  %976 = vst [vmem:[%s1202_s13 + $0x70] sm:$0xff] %v956_v9  }
 0x11c PF: > { %s13_s12 = sadd.s32 1, %s1104_s12  }
 0x11d   : > { %p10_p4 = scmp.ge.s32.totalorder %s13_s12, 4  }
 0x11f   :  { %12 = sbr.rel (!%p10_p4) target bundleno = 1 (0x1), region = 62 }

// kernel: vae_forward.9
= control target key start
LH: loop header
LB: loop body
LE: loop exit
PB: predicated region body
PF: predicated region fallthrough
CT: control target
= control target key end

     0   :  { %s1373_s1 = inlined_call_operand.vmem [shape: bf16[512,128], index: 1, kind: input, shape index: {}]   ;;  %s1374_s0 = inlined_call_operand.vmem [shape: bf16[128,512], index: 0, kind: input, shape index: {}]   ;;  %s1375_s2 = inlined_call_operand.vmem [shape: f32[1,128], index: 2, kind: input, shape index: {}]   ;;  %s1376_s3 = inlined_call_operand.vmem [shape: bf16[128,128], index: 3, kind: output, shape index: {}]  }
   0x1   :  { %v1036_v0 = vld [vmem:[%s1373_s1 + $0x40] sm:$0xff]   ;;  %v1040_v4 = vld [vmem:[%s1373_s1 + $0x48] sm:$0xff]   ;;  %v1044_v8 = vld [vmem:[%s1373_s1 + $0x50] sm:$0xff]  }
   0x2   :  { %v1037_v1 = vld [vmem:[%s1373_s1 + $0xc0] sm:$0xff]   ;;  %908 = vmatprep.subr.bf16.mxu0 %v1036_v0  ;;  %v1041_v5 = vld [vmem:[%s1373_s1 + $0xc8] sm:$0xff]   ;;  %v1045_v9 = vld [vmem:[%s1373_s1 + $0xd0] sm:$0xff]  }
   0x3   :  { %v1038_v2 = vld [vmem:[%s1373_s1] sm:$0xff]   ;;  %972 = vmatprep.subr.bf16.mxu1 %v1037_v1  ;;  %v1042_v6 = vld [vmem:[%s1373_s1 + $0x8] sm:$0xff]   ;;  %v1046_v10 = vld [vmem:[%s1373_s1 + $0x10] sm:$0xff]  }
   0x4   :  { %v1039_v3 = vld [vmem:[%s1373_s1 + $0x80] sm:$0xff]   ;;  %909 = vmatpush3.bf16.msra.mxu0 %v1038_v2  ;;  %v1043_v7 = vld [vmem:[%s1373_s1 + $0x88] sm:$0xff]   ;;  %v1047_v11 = vld [vmem:[%s1373_s1 + $0x90] sm:$0xff]  }
   0x5   :  { %973 = vmatpush3.bf16.msra.mxu1 %v1039_v3  ;;  %910 = vmatprep.subr.bf16.mxu0 %v1040_v4  ;;  %v1048_v12 = vld [vmem:[%s1373_s1 + $0x58] sm:$0xff]   ;;  %v1052_v16 = vld [vmem:[%s1373_s1 + $0x60] sm:$0xff]   ;;  %v1056_v20 = vld [vmem:[%s1373_s1 + $0x68] sm:$0xff]  }
   0x6   :  { %974 = vmatprep.subr.bf16.mxu1 %v1041_v5  ;;  %v1049_v13 = vld [vmem:[%s1373_s1 + $0xd8] sm:$0xff]   ;;  %v1053_v17 = vld [vmem:[%s1373_s1 + $0xe0] sm:$0xff]   ;;  %v1057_v21 = vld [vmem:[%s1373_s1 + $0xe8] sm:$0xff]  }
   0x7   :  { %v1050_v14 = vld [vmem:[%s1373_s1 + $0x18] sm:$0xff]   ;;  %v1054_v18 = vld [vmem:[%s1373_s1 + $0x20] sm:$0xff]   ;;  %v1058_v22 = vld [vmem:[%s1373_s1 + $0x28] sm:$0xff]  }
   0x8   :  { %911 = vmatpush3.bf16.msra.mxu0 %v1042_v6  ;;  %v1051_v15 = vld [vmem:[%s1373_s1 + $0x98] sm:$0xff]   ;;  %v1055_v19 = vld [vmem:[%s1373_s1 + $0xa0] sm:$0xff]   ;;  %v1059_v23 = vld [vmem:[%s1373_s1 + $0xa8] sm:$0xff]  }
   0x9   :  { %975 = vmatpush3.bf16.msra.mxu1 %v1043_v7  ;;  %912 = vmatprep.subr.bf16.mxu0 %v1044_v8  ;;  %v1060_v24 = vld [vmem:[%s1373_s1 + $0x70] sm:$0xff]   ;;  %v1064_v28 = vld [vmem:[%s1373_s1 + $0x78] sm:$0xff]   ;;  %v1331_v2 = vld [vmem:[%s1375_s2] ss:$0 sm:$0xff] }
   0xa   :  { %976 = vmatprep.subr.bf16.mxu1 %v1045_v9  ;;  %v1061_v25 = vld [vmem:[%s1373_s1 + $0xf0] sm:$0xff]   ;;  %v1065_v29 = vld [vmem:[%s1373_s1 + $0xf8] sm:$0xff]  }
   0xb   :  { %v1062_v26 = vld [vmem:[%s1373_s1 + $0x30] sm:$0xff]   ;;  %v1066_v30 = vld [vmem:[%s1373_s1 + $0x38] sm:$0xff]  }
   0xc   :  { %913 = vmatpush3.bf16.msra.mxu0 %v1046_v10  ;;  %v1063_v27 = vld [vmem:[%s1373_s1 + $0xb0] sm:$0xff]   ;;  %v1067_v31 = vld [vmem:[%s1373_s1 + $0xb8] sm:$0xff]  }
   0xd   :  { %977 = vmatpush3.bf16.msra.mxu1 %v1047_v11  ;;  %914 = vmatprep.subr.bf16.mxu0 %v1048_v12  ;;  %v1068_v32 = vld [vmem:[%s1374_s0] ss:$16 sps:$4 sm:$0xff]   ;;  %v1070_v33 = vld [vmem:[%s1374_s0 + $0x4] ss:$16 sps:$4 sm:$0xff]   ;;  %v1071_v34 = vld [vmem:[%s1374_s0 + $0x8] ss:$16 sps:$4 sm:$0xff]  }
   0xe   :  { %978 = vmatprep.subr.bf16.mxu1 %v1049_v13  ;;  %v1073_v35 = vld [vmem:[%s1374_s0 + $0xc] ss:$16 sps:$4 sm:$0xff]   ;;  %502 = vmatprep.mubr.bf16.mxu0 %v1070_v33  ;;  %v1074_v36 = vld [vmem:[%s1374_s0 + $0x24] ss:$16 sps:$4 sm:$0xff]   ;;  %v1078_v38 = vld [vmem:[%s1374_s0 + $0x20] ss:$16 sps:$4 sm:$0xff]  }
   0xf   :  { %599 = vmatprep.mubr.bf16.mxu1 %v1073_v35  ;;  %v1076_v37 = vld [vmem:[%s1374_s0 + $0x2c] ss:$16 sps:$4 sm:$0xff]   ;;  %v1079_v39 = vld [vmem:[%s1374_s0 + $0x28] ss:$16 sps:$4 sm:$0xff]   ;;  %v1080_v40 = vld [vmem:[%s1374_s0 + $0x44] ss:$16 sps:$4 sm:$0xff]  }
  0x10   :  { %915 = vmatpush3.bf16.msra.mxu0 %v1050_v14  ;;  %v1082_v41 = vld [vmem:[%s1374_s0 + $0x4c] ss:$16 sps:$4 sm:$0xff]   ;;  %v1084_v42 = vld [vmem:[%s1374_s0 + $0x40] ss:$16 sps:$4 sm:$0xff]   ;;  %v1085_v43 = vld [vmem:[%s1374_s0 + $0x48] ss:$16 sps:$4 sm:$0xff]  }
  0x11   :  { %979 = vmatpush3.bf16.msra.mxu1 %v1051_v15  ;;  %916 = vmatprep.subr.bf16.mxu0 %v1052_v16  ;;  %v1086_v44 = vld [vmem:[%s1374_s0 + $0x64] ss:$16 sps:$4 sm:$0xff]   ;;  %v1088_v45 = vld [vmem:[%s1374_s0 + $0x6c] ss:$16 sps:$4 sm:$0xff]   ;;  %v1090_v46 = vld [vmem:[%s1374_s0 + $0x60] ss:$16 sps:$4 sm:$0xff]  }
  0x12   :  { %980 = vmatprep.subr.bf16.mxu1 %v1053_v17  ;;  %v1091_v47 = vld [vmem:[%s1374_s0 + $0x68] ss:$16 sps:$4 sm:$0xff]   ;;  %v1092_v48 = vld [vmem:[%s1374_s0 + $0x84] ss:$16 sps:$4 sm:$0xff]   ;;  %v1094_v49 = vld [vmem:[%s1374_s0 + $0x8c] ss:$16 sps:$4 sm:$0xff]  }
  0x13   :  { %v1096_v50 = vld [vmem:[%s1374_s0 + $0x80] ss:$16 sps:$4 sm:$0xff]   ;;  %v1097_v51 = vld [vmem:[%s1374_s0 + $0x88] ss:$16 sps:$4 sm:$0xff]   ;;  %v1098_v52 = vld [vmem:[%s1374_s0 + $0xa4] ss:$16 sps:$4 sm:$0xff]  }
  0x14   :  { %917 = vmatpush3.bf16.msra.mxu0 %v1054_v18  ;;  %v1100_v53 = vld [vmem:[%s1374_s0 + $0xac] ss:$16 sps:$4 sm:$0xff]   ;;  %v1102_v54 = vld [vmem:[%s1374_s0 + $0xa0] ss:$16 sps:$4 sm:$0xff]   ;;  %v1103_v55 = vld [vmem:[%s1374_s0 + $0xa8] ss:$16 sps:$4 sm:$0xff]  }
  0x15   :  { %981 = vmatpush3.bf16.msra.mxu1 %v1055_v19  ;;  %918 = vmatprep.subr.bf16.mxu0 %v1056_v20  ;;  %v1104_v56 = vld [vmem:[%s1374_s0 + $0xc4] ss:$16 sps:$4 sm:$0xff]   ;;  %v1106_v57 = vld [vmem:[%s1374_s0 + $0xcc] ss:$16 sps:$4 sm:$0xff]   ;;  %v1108_v58 = vld [vmem:[%s1374_s0 + $0xc0] ss:$16 sps:$4 sm:$0xff]  }
  0x16   :  { %982 = vmatprep.subr.bf16.mxu1 %v1057_v21  ;;  %v1109_v59 = vld [vmem:[%s1374_s0 + $0xc8] ss:$16 sps:$4 sm:$0xff]   ;;  %v1110_v60 = vld [vmem:[%s1374_s0 + $0xe4] ss:$16 sps:$4 sm:$0xff]   ;;  %v1112_v61 = vld [vmem:[%s1374_s0 + $0xec] ss:$16 sps:$4 sm:$0xff]  }
  0x17   :  { %v1114_v62 = vld [vmem:[%s1374_s0 + $0xe0] ss:$16 sps:$4 sm:$0xff]   ;;  %v1115_v63 = vld [vmem:[%s1374_s0 + $0xe8] ss:$16 sps:$4 sm:$0xff]  }
  0x18   :  { %919 = vmatpush3.bf16.msra.mxu0 %v1058_v22 }
  0x19   :  { %983 = vmatpush3.bf16.msra.mxu1 %v1059_v23  ;;  %920 = vmatprep.subr.bf16.mxu0 %v1060_v24 }
  0x1a   :  { %984 = vmatprep.subr.bf16.mxu1 %v1061_v25 }
  0x1c   :  { %921 = vmatpush3.bf16.msra.mxu0 %v1062_v26 }
  0x1d   :  { %985 = vmatpush3.bf16.msra.mxu1 %v1063_v27  ;;  %922 = vmatprep.subr.bf16.mxu0 %v1064_v28 }
  0x1e   :  { %986 = vmatprep.subr.bf16.mxu1 %v1065_v29 }
  0x20   :  { %923 = vmatpush3.bf16.msra.mxu0 %v1066_v30 }
  0x21   :  { %987 = vmatpush3.bf16.msra.mxu1 %v1067_v31 }
  0x23   :  { %503 = vmatmul.mubr.bf16.vlgmr.msra.gmra.mrb[0].mxu0 %v1068_v32 }
  0x24   :  { %600 = vmatmul.mubr.bf16.vlgmr.msra.gmra.mrb[0].mxu1 %v1071_v34  ;;  %510 = vmatprep.mubr.bf16.mxu0 %v1074_v36 }
  0x25   :  { %607 = vmatprep.mubr.bf16.mxu1 %v1076_v37 }
  0x2b   :  { %511 = vmatmul.mubr.bf16.gmra.mrb[4].mxu0 %v1078_v38 }
  0x2c   :  { %608 = vmatmul.mubr.bf16.gmra.mrb[4].mxu1 %v1079_v39  ;;  %518 = vmatprep.mubr.bf16.mxu0 %v1080_v40 }
  0x2d   :  { %615 = vmatprep.mubr.bf16.mxu1 %v1082_v41 }
  0x33   :  { %519 = vmatmul.mubr.bf16.gmra.mrb[8].mxu0 %v1084_v42 }
  0x34   :  { %616 = vmatmul.mubr.bf16.gmra.mrb[8].mxu1 %v1085_v43  ;;  %526 = vmatprep.mubr.bf16.mxu0 %v1086_v44 }
  0x35   :  { %623 = vmatprep.mubr.bf16.mxu1 %v1088_v45 }
  0x3b   :  { %527 = vmatmul.mubr.bf16.gmra.mrb[12].mxu0 %v1090_v46 }
  0x3c   :  { %624 = vmatmul.mubr.bf16.gmra.mrb[12].mxu1 %v1091_v47  ;;  %534 = vmatprep.mubr.bf16.mxu0 %v1092_v48 }
  0x3d   :  { %631 = vmatprep.mubr.bf16.mxu1 %v1094_v49 }
  0x43   :  { %535 = vmatmul.mubr.bf16.gmra.mrb[16].mxu0 %v1096_v50 }
  0x44   :  { %632 = vmatmul.mubr.bf16.gmra.mrb[16].mxu1 %v1097_v51  ;;  %542 = vmatprep.mubr.bf16.mxu0 %v1098_v52 }
  0x45   :  { %639 = vmatprep.mubr.bf16.mxu1 %v1100_v53 }
  0x4b   :  { %543 = vmatmul.mubr.bf16.gmra.mrb[20].mxu0 %v1102_v54 }
  0x4c   :  { %640 = vmatmul.mubr.bf16.gmra.mrb[20].mxu1 %v1103_v55  ;;  %550 = vmatprep.mubr.bf16.mxu0 %v1104_v56 }
  0x4d   :  { %647 = vmatprep.mubr.bf16.mxu1 %v1106_v57 }
  0x53   :  { %551 = vmatmul.mubr.bf16.gmra.mrb[24].mxu0 %v1108_v58 }
  0x54   :  { %648 = vmatmul.mubr.bf16.gmra.mrb[24].mxu1 %v1109_v59  ;;  %558 = vmatprep.mubr.bf16.mxu0 %v1110_v60 }
  0x55   :  { %655 = vmatprep.mubr.bf16.mxu1 %v1112_v61 }
  0x5b   :  { %559 = vmatmul.mubr.bf16.gmra.mrb[28].mxu0 %v1114_v62 }
  0x5c   :  { %656 = vmatmul.mubr.bf16.gmra.mrb[28].mxu1 %v1115_v63 }
  0xf6   :  { %v924_v0 = vpop.f32.mrb[0].mxu0 }
  0xf7   :  { %v988_v1 = vpop.f32.mrb[0].mxu1  ;;  %v925_v3 = vpop.f32.mrb[1].mxu0 }
  0xf8   :  { %v926_v4 = vadd.f32 %v925_v3, %v924_v0  ;;  %v989_v5 = vpop.f32.mrb[1].mxu1  ;;  %v927_v6 = vpop.f32.mrb[2].mxu0 }
  0xf9   :  { %v990_v7 = vadd.f32 %v989_v5, %v988_v1  ;;  %v991_v8 = vpop.f32.mrb[2].mxu1  ;;  %v928_v9 = vpop.f32.mrb[3].mxu0 }
  0xfa   :  { %v505_v10 = vadd.f32 %v926_v4, %v1331_v2  ;;  %v929_v11 = vadd.f32 %v928_v9, %v927_v6  ;;  %v992_v12 = vpop.f32.mrb[3].mxu1 }
  0xfb   :  { %v993_v13 = vadd.f32 %v992_v12, %v991_v8 }
  0xfc   :  { %v602_v14 = vadd.f32 %v990_v7, %v505_v10  ;;  %v508_v15 = vadd.f32 %v929_v11, %v1331_v2 }
  0xfe   :  { %v605_v16 = vadd.f32 %v993_v13, %v508_v15  ;;  %v930_v17 = vpop.f32.mrb[4].mxu0  ;;  %v664_v20 = vmax.f32 %v602_v14, 0.0 }
  0xff   :  { %v994_v18 = vpop.f32.mrb[4].mxu1  ;;  %v931_v19 = vpop.f32.mrb[5].mxu0 }
 0x100   :  { %v665_v21 = vmax.f32 %v605_v16, 0.0  ;;  %v932_v22 = vadd.f32 %v931_v19, %v930_v17  ;;  %v995_v23 = vpop.f32.mrb[5].mxu1  ;;  %v933_v24 = vpop.f32.mrb[6].mxu0 }
 0x101   :  { %v996_v25 = vadd.f32 %v995_v23, %v994_v18  ;;  %v997_v26 = vpop.f32.mrb[6].mxu1  ;;  %v934_v27 = vpop.f32.mrb[7].mxu0 }
 0x102   :  { %v864_v28 = vpack.c.bf16 %v665_v21, %v664_v20  ;;  %v513_v29 = vadd.f32 %v932_v22, %v1331_v2  ;;  %v935_v30 = vadd.f32 %v934_v27, %v933_v24  ;;  %v998_v31 = vpop.f32.mrb[7].mxu1 }
 0x103   :  { %v999_v32 = vadd.f32 %v998_v31, %v997_v26 }
 0x104   :  { %865 = vst [vmem:[%s1376_s3] sm:$0xff] %v864_v28   ;;  %v610_v33 = vadd.f32 %v996_v25, %v513_v29  ;;  %v516_v34 = vadd.f32 %v935_v30, %v1331_v2 }
 0x106   :  { %v613_v35 = vadd.f32 %v999_v32, %v516_v34  ;;  %v936_v36 = vpop.f32.mrb[8].mxu0  ;;  %v666_v39 = vmax.f32 %v610_v33, 0.0 }
 0x107   :  { %v1000_v37 = vpop.f32.mrb[8].mxu1  ;;  %v937_v38 = vpop.f32.mrb[9].mxu0 }
 0x108   :  { %v667_v40 = vmax.f32 %v613_v35, 0.0  ;;  %v938_v41 = vadd.f32 %v937_v38, %v936_v36  ;;  %v1001_v42 = vpop.f32.mrb[9].mxu1  ;;  %v939_v43 = vpop.f32.mrb[10].mxu0 }
 0x109   :  { %v1002_v44 = vadd.f32 %v1001_v42, %v1000_v37  ;;  %v1003_v45 = vpop.f32.mrb[10].mxu1  ;;  %v940_v46 = vpop.f32.mrb[11].mxu0 }
 0x10a   :  { %v869_v47 = vpack.c.bf16 %v667_v40, %v666_v39  ;;  %v521_v48 = vadd.f32 %v938_v41, %v1331_v2  ;;  %v941_v49 = vadd.f32 %v940_v46, %v939_v43  ;;  %v1004_v50 = vpop.f32.mrb[11].mxu1 }
 0x10b   :  { %v1005_v51 = vadd.f32 %v1004_v50, %v1003_v45 }
 0x10c   :  { %901 = vst [vmem:[%s1376_s3 + $0x8] sm:$0xff] %v869_v47   ;;  %v618_v52 = vadd.f32 %v1002_v44, %v521_v48  ;;  %v524_v53 = vadd.f32 %v941_v49, %v1331_v2 }
 0x10e   :  { %v621_v54 = vadd.f32 %v1005_v51, %v524_v53  ;;  %v942_v55 = vpop.f32.mrb[12].mxu0  ;;  %v668_v58 = vmax.f32 %v618_v52, 0.0 }
 0x10f   :  { %v1006_v56 = vpop.f32.mrb[12].mxu1  ;;  %v943_v57 = vpop.f32.mrb[13].mxu0 }
 0x110   :  { %v669_v59 = vmax.f32 %v621_v54, 0.0  ;;  %v944_v60 = vadd.f32 %v943_v57, %v942_v55  ;;  %v1007_v61 = vpop.f32.mrb[13].mxu1  ;;  %v945_v62 = vpop.f32.mrb[14].mxu0 }
 0x111   :  { %v1008_v63 = vadd.f32 %v1007_v61, %v1006_v56  ;;  %v1009_v0 = vpop.f32.mrb[14].mxu1  ;;  %v946_v1 = vpop.f32.mrb[15].mxu0 }
 0x112   :  { %v874_v3 = vpack.c.bf16 %v669_v59, %v668_v58  ;;  %v529_v4 = vadd.f32 %v944_v60, %v1331_v2  ;;  %v947_v5 = vadd.f32 %v946_v1, %v945_v62  ;;  %v1010_v6 = vpop.f32.mrb[15].mxu1 }
 0x113   :  { %v1011_v7 = vadd.f32 %v1010_v6, %v1009_v0 }
 0x114   :  { %902 = vst [vmem:[%s1376_s3 + $0x10] sm:$0xff] %v874_v3   ;;  %v626_v8 = vadd.f32 %v1008_v63, %v529_v4  ;;  %v532_v9 = vadd.f32 %v947_v5, %v1331_v2 }
 0x116   :  { %v629_v10 = vadd.f32 %v1011_v7, %v532_v9  ;;  %v948_v11 = vpop.f32.mrb[16].mxu0  ;;  %v670_v14 = vmax.f32 %v626_v8, 0.0 }
 0x117   :  { %v1012_v12 = vpop.f32.mrb[16].mxu1  ;;  %v949_v13 = vpop.f32.mrb[17].mxu0 }
 0x118   :  { %v671_v15 = vmax.f32 %v629_v10, 0.0  ;;  %v950_v16 = vadd.f32 %v949_v13, %v948_v11  ;;  %v1013_v17 = vpop.f32.mrb[17].mxu1  ;;  %v951_v18 = vpop.f32.mrb[18].mxu0 }
 0x119   :  { %v1014_v19 = vadd.f32 %v1013_v17, %v1012_v12  ;;  %v1015_v20 = vpop.f32.mrb[18].mxu1  ;;  %v952_v21 = vpop.f32.mrb[19].mxu0 }
 0x11a   :  { %v879_v22 = vpack.c.bf16 %v671_v15, %v670_v14  ;;  %v537_v23 = vadd.f32 %v950_v16, %v1331_v2  ;;  %v953_v24 = vadd.f32 %v952_v21, %v951_v18  ;;  %v1016_v25 = vpop.f32.mrb[19].mxu1 }
 0x11b   :  { %v1017_v26 = vadd.f32 %v1016_v25, %v1015_v20 }
 0x11c   :  { %903 = vst [vmem:[%s1376_s3 + $0x18] sm:$0xff] %v879_v22   ;;  %v634_v27 = vadd.f32 %v1014_v19, %v537_v23  ;;  %v540_v28 = vadd.f32 %v953_v24, %v1331_v2 }
 0x11e   :  { %v637_v29 = vadd.f32 %v1017_v26, %v540_v28  ;;  %v954_v30 = vpop.f32.mrb[20].mxu0  ;;  %v672_v33 = vmax.f32 %v634_v27, 0.0 }
 0x11f   :  { %v1018_v31 = vpop.f32.mrb[20].mxu1  ;;  %v955_v32 = vpop.f32.mrb[21].mxu0 }
 0x120   :  { %v673_v34 = vmax.f32 %v637_v29, 0.0  ;;  %v956_v35 = vadd.f32 %v955_v32, %v954_v30  ;;  %v1019_v36 = vpop.f32.mrb[21].mxu1  ;;  %v957_v37 = vpop.f32.mrb[22].mxu0 }
 0x121   :  { %v1020_v38 = vadd.f32 %v1019_v36, %v1018_v31  ;;  %v1021_v39 = vpop.f32.mrb[22].mxu1  ;;  %v958_v40 = vpop.f32.mrb[23].mxu0 }
 0x122   :  { %v884_v41 = vpack.c.bf16 %v673_v34, %v672_v33  ;;  %v545_v42 = vadd.f32 %v956_v35, %v1331_v2  ;;  %v959_v43 = vadd.f32 %v958_v40, %v957_v37  ;;  %v1022_v44 = vpop.f32.mrb[23].mxu1 }
 0x123   :  { %v1023_v45 = vadd.f32 %v1022_v44, %v1021_v39 }
 0x124   :  { %904 = vst [vmem:[%s1376_s3 + $0x20] sm:$0xff] %v884_v41   ;;  %v642_v46 = vadd.f32 %v1020_v38, %v545_v42  ;;  %v548_v47 = vadd.f32 %v959_v43, %v1331_v2 }
 0x126   :  { %v645_v48 = vadd.f32 %v1023_v45, %v548_v47  ;;  %v960_v49 = vpop.f32.mrb[24].mxu0  ;;  %v674_v52 = vmax.f32 %v642_v46, 0.0 }
 0x127   :  { %v1024_v50 = vpop.f32.mrb[24].mxu1  ;;  %v961_v51 = vpop.f32.mrb[25].mxu0 }
 0x128   :  { %v675_v53 = vmax.f32 %v645_v48, 0.0  ;;  %v962_v54 = vadd.f32 %v961_v51, %v960_v49  ;;  %v1025_v55 = vpop.f32.mrb[25].mxu1  ;;  %v963_v56 = vpop.f32.mrb[26].mxu0 }
 0x129   :  { %v1026_v57 = vadd.f32 %v1025_v55, %v1024_v50  ;;  %v1027_v58 = vpop.f32.mrb[26].mxu1  ;;  %v964_v59 = vpop.f32.mrb[27].mxu0 }
 0x12a   :  { %v889_v60 = vpack.c.bf16 %v675_v53, %v674_v52  ;;  %v553_v61 = vadd.f32 %v962_v54, %v1331_v2  ;;  %v965_v62 = vadd.f32 %v964_v59, %v963_v56  ;;  %v1028_v63 = vpop.f32.mrb[27].mxu1 }
 0x12b   :  { %v1029_v0 = vadd.f32 %v1028_v63, %v1027_v58 }
 0x12c   :  { %905 = vst [vmem:[%s1376_s3 + $0x28] sm:$0xff] %v889_v60   ;;  %v650_v1 = vadd.f32 %v1026_v57, %v553_v61  ;;  %v556_v3 = vadd.f32 %v965_v62, %v1331_v2 }
 0x12e   :  { %v653_v4 = vadd.f32 %v1029_v0, %v556_v3  ;;  %v966_v5 = vpop.f32.mrb[28].mxu0  ;;  %v676_v8 = vmax.f32 %v650_v1, 0.0 }
 0x12f   :  { %v1030_v6 = vpop.f32.mrb[28].mxu1  ;;  %v967_v7 = vpop.f32.mrb[29].mxu0 }
 0x130   :  { %v677_v9 = vmax.f32 %v653_v4, 0.0  ;;  %v968_v10 = vadd.f32 %v967_v7, %v966_v5  ;;  %v1031_v11 = vpop.f32.mrb[29].mxu1  ;;  %v969_v12 = vpop.f32.mrb[30].mxu0 }
 0x131   :  { %v1032_v13 = vadd.f32 %v1031_v11, %v1030_v6  ;;  %v1033_v14 = vpop.f32.mrb[30].mxu1  ;;  %v970_v15 = vpop.f32.mrb[31].mxu0 }
 0x132   :  { %v894_v16 = vpack.c.bf16 %v677_v9, %v676_v8  ;;  %v561_v17 = vadd.f32 %v968_v10, %v1331_v2  ;;  %v971_v18 = vadd.f32 %v970_v15, %v969_v12  ;;  %v1034_v19 = vpop.f32.mrb[31].mxu1 }
 0x133   :  { %v1035_v20 = vadd.f32 %v1034_v19, %v1033_v14 }
 0x134   :  { %906 = vst [vmem:[%s1376_s3 + $0x30] sm:$0xff] %v894_v16   ;;  %v658_v21 = vadd.f32 %v1032_v13, %v561_v17  ;;  %v564_v22 = vadd.f32 %v971_v18, %v1331_v2 }
 0x136   :  { %v661_v23 = vadd.f32 %v1035_v20, %v564_v22  ;;  %v678_v24 = vmax.f32 %v658_v21, 0.0 }
 0x138   :  { %v679_v25 = vmax.f32 %v661_v23, 0.0 }
 0x13a   :  { %v899_v26 = vpack.c.bf16 %v679_v25, %v678_v24 }
 0x13c   :  { %907 = vst [vmem:[%s1376_s3 + $0x38] sm:$0xff] %v899_v26  }

// kernel: vae_forward.10
= control target key start
LH: loop header
LB: loop body
LE: loop exit
PB: predicated region body
PF: predicated region fallthrough
CT: control target
= control target key end

     0   :  { %s1399_s1 = inlined_call_operand.vmem [shape: bf16[1024,128], index: 1, kind: input, shape index: {}]   ;;  %s1400_s0 = inlined_call_operand.vmem [shape: bf16[32,1024], index: 0, kind: input, shape index: {}]   ;;  %s1401_s2 = inlined_call_operand.vmem [shape: f32[1,128], index: 2, kind: input, shape index: {}]   ;;  %s1402_s3 = inlined_call_operand.vmem [shape: bf16[32,128], index: 3, kind: output, shape index: {}]  }
   0x1   :  { %v1066_v0 = vld [vmem:[%s1399_s1 + $0x40] sm:$0xff]   ;;  %v1070_v4 = vld [vmem:[%s1399_s1 + $0x48] sm:$0xff]   ;;  %v1074_v8 = vld [vmem:[%s1399_s1 + $0x50] sm:$0xff]  }
   0x2   :  { %v1067_v1 = vld [vmem:[%s1399_s1 + $0xc0] sm:$0xff]   ;;  %954 = vmatprep.subr.bf16.mxu0 %v1066_v0  ;;  %v1071_v5 = vld [vmem:[%s1399_s1 + $0xc8] sm:$0xff]   ;;  %v1075_v9 = vld [vmem:[%s1399_s1 + $0xd0] sm:$0xff]  }
   0x3   :  { %v1068_v2 = vld [vmem:[%s1399_s1] sm:$0xff]   ;;  %982 = vmatprep.subr.bf16.mxu1 %v1067_v1  ;;  %v1072_v6 = vld [vmem:[%s1399_s1 + $0x8] sm:$0xff]   ;;  %v1076_v10 = vld [vmem:[%s1399_s1 + $0x10] sm:$0xff]  }
   0x4   :  { %v1069_v3 = vld [vmem:[%s1399_s1 + $0x80] sm:$0xff]   ;;  %955 = vmatpush3.bf16.msra.mxu0 %v1068_v2  ;;  %v1073_v7 = vld [vmem:[%s1399_s1 + $0x88] sm:$0xff]   ;;  %v1077_v11 = vld [vmem:[%s1399_s1 + $0x90] sm:$0xff]  }
   0x5   :  { %983 = vmatpush3.bf16.msra.mxu1 %v1069_v3  ;;  %956 = vmatprep.subr.bf16.mxu0 %v1070_v4  ;;  %v1078_v12 = vld [vmem:[%s1399_s1 + $0x58] sm:$0xff]   ;;  %v1082_v16 = vld [vmem:[%s1399_s1 + $0x60] sm:$0xff]   ;;  %v1086_v20 = vld [vmem:[%s1399_s1 + $0x68] sm:$0xff]  }
   0x6   :  { %984 = vmatprep.subr.bf16.mxu1 %v1071_v5  ;;  %v1079_v13 = vld [vmem:[%s1399_s1 + $0xd8] sm:$0xff]   ;;  %v1083_v17 = vld [vmem:[%s1399_s1 + $0xe0] sm:$0xff]   ;;  %v1087_v21 = vld [vmem:[%s1399_s1 + $0xe8] sm:$0xff]  }
   0x7   :  { %v1080_v14 = vld [vmem:[%s1399_s1 + $0x18] sm:$0xff]   ;;  %v1084_v18 = vld [vmem:[%s1399_s1 + $0x20] sm:$0xff]   ;;  %v1088_v22 = vld [vmem:[%s1399_s1 + $0x28] sm:$0xff]  }
   0x8   :  { %957 = vmatpush3.bf16.msra.mxu0 %v1072_v6  ;;  %v1081_v15 = vld [vmem:[%s1399_s1 + $0x98] sm:$0xff]   ;;  %v1085_v19 = vld [vmem:[%s1399_s1 + $0xa0] sm:$0xff]   ;;  %v1089_v23 = vld [vmem:[%s1399_s1 + $0xa8] sm:$0xff]  }
   0x9   :  { %985 = vmatpush3.bf16.msra.mxu1 %v1073_v7  ;;  %958 = vmatprep.subr.bf16.mxu0 %v1074_v8  ;;  %v1090_v24 = vld [vmem:[%s1399_s1 + $0x70] sm:$0xff]   ;;  %v1094_v28 = vld [vmem:[%s1399_s1 + $0x78] sm:$0xff]   ;;  %v15_v32 = vld [vmem:[%s1400_s0] sm:$0xff] }
   0xa   :  { %986 = vmatprep.subr.bf16.mxu1 %v1075_v9  ;;  %v1091_v25 = vld [vmem:[%s1399_s1 + $0xf0] sm:$0xff]   ;;  %v1095_v29 = vld [vmem:[%s1399_s1 + $0xf8] sm:$0xff]   ;;  %v19_v33 = vld [vmem:[%s1400_s0 + $0x20] sm:$0xff] }
   0xb   :  { %v1092_v26 = vld [vmem:[%s1399_s1 + $0x30] sm:$0xff]   ;;  %v1096_v30 = vld [vmem:[%s1399_s1 + $0x38] sm:$0xff]   ;;  %v16_v34 = vld [vmem:[%s1400_s0 + $0x8] sm:$0xff]  ;;  %v855_v35 = vcombine.low %v15_v32, %v19_v33  ;;  %v856_v36 = vcombine.high %v15_v32, %v19_v33 }
   0xc   :  { %959 = vmatpush3.bf16.msra.mxu0 %v1076_v10  ;;  %v1093_v27 = vld [vmem:[%s1399_s1 + $0xb0] sm:$0xff]   ;;  %v1097_v31 = vld [vmem:[%s1399_s1 + $0xb8] sm:$0xff]   ;;  %v20_v37 = vld [vmem:[%s1400_s0 + $0x28] sm:$0xff] }
   0xd   :  { %987 = vmatpush3.bf16.msra.mxu1 %v1077_v11  ;;  %960 = vmatprep.subr.bf16.mxu0 %v1078_v12  ;;  %v857_v38 = vcombine.low %v16_v34, %v20_v37  ;;  %v858_v39 = vcombine.high %v16_v34, %v20_v37  ;;  %v1098_v40 = vld [vmem:[%s1399_s1 + $0x140] sm:$0xff]   ;;  %v1102_v44 = vld [vmem:[%s1399_s1 + $0x148] sm:$0xff]   ;;  %v1106_v48 = vld [vmem:[%s1399_s1 + $0x150] sm:$0xff]  }
   0xe   :  { %988 = vmatprep.subr.bf16.mxu1 %v1079_v13  ;;  %662 = vmatprep.mubr.bf16.mxu0 %v856_v36  ;;  %v1099_v41 = vld [vmem:[%s1399_s1 + $0x1c0] sm:$0xff]   ;;  %v1103_v45 = vld [vmem:[%s1399_s1 + $0x1c8] sm:$0xff]   ;;  %v1107_v49 = vld [vmem:[%s1399_s1 + $0x1d0] sm:$0xff]  }
   0xf   :  { %711 = vmatprep.mubr.bf16.mxu1 %v858_v39  ;;  %v1100_v42 = vld [vmem:[%s1399_s1 + $0x100] sm:$0xff]   ;;  %v1104_v46 = vld [vmem:[%s1399_s1 + $0x108] sm:$0xff]   ;;  %v1108_v50 = vld [vmem:[%s1399_s1 + $0x110] sm:$0xff]  }
  0x10   :  { %961 = vmatpush3.bf16.msra.mxu0 %v1080_v14  ;;  %v1101_v43 = vld [vmem:[%s1399_s1 + $0x180] sm:$0xff]   ;;  %v1105_v47 = vld [vmem:[%s1399_s1 + $0x188] sm:$0xff]   ;;  %v1109_v51 = vld [vmem:[%s1399_s1 + $0x190] sm:$0xff]  }
  0x11   :  { %989 = vmatpush3.bf16.msra.mxu1 %v1081_v15  ;;  %962 = vmatprep.subr.bf16.mxu0 %v1082_v16  ;;  %v1110_v52 = vld [vmem:[%s1399_s1 + $0x158] sm:$0xff]   ;;  %v1114_v56 = vld [vmem:[%s1399_s1 + $0x160] sm:$0xff]   ;;  %v1118_v63 = vld [vmem:[%s1399_s1 + $0x168] sm:$0xff]  }
  0x12   :  { %990 = vmatprep.subr.bf16.mxu1 %v1083_v17  ;;  %v1111_v53 = vld [vmem:[%s1399_s1 + $0x1d8] sm:$0xff]   ;;  %v1115_v57 = vld [vmem:[%s1399_s1 + $0x1e0] sm:$0xff]   ;;  %v1119_v1 = vld [vmem:[%s1399_s1 + $0x1e8] sm:$0xff]  }
  0x13   :  { %v1112_v54 = vld [vmem:[%s1399_s1 + $0x118] sm:$0xff]   ;;  %v1116_v58 = vld [vmem:[%s1399_s1 + $0x120] sm:$0xff]   ;;  %v1120_v2 = vld [vmem:[%s1399_s1 + $0x128] sm:$0xff]  }
  0x14   :  { %963 = vmatpush3.bf16.msra.mxu0 %v1084_v18  ;;  %v1113_v55 = vld [vmem:[%s1399_s1 + $0x198] sm:$0xff]   ;;  %v1117_v59 = vld [vmem:[%s1399_s1 + $0x1a0] sm:$0xff]   ;;  %v1121_v3 = vld [vmem:[%s1399_s1 + $0x1a8] sm:$0xff]  }
  0x15   :  { %991 = vmatpush3.bf16.msra.mxu1 %v1085_v19  ;;  %964 = vmatprep.subr.bf16.mxu0 %v1086_v20  ;;  %v23_v60 = vld [vmem:[%s1400_s0 + $0x40] sm:$0xff]  ;;  %v24_v4 = vld [vmem:[%s1400_s0 + $0x48] sm:$0xff]  ;;  %v1122_v8 = vld [vmem:[%s1399_s1 + $0x170] sm:$0xff]  }
  0x16   :  { %992 = vmatprep.subr.bf16.mxu1 %v1087_v21  ;;  %v27_v61 = vld [vmem:[%s1400_s0 + $0x60] sm:$0xff]  ;;  %v28_v5 = vld [vmem:[%s1400_s0 + $0x68] sm:$0xff]  ;;  %v1123_v9 = vld [vmem:[%s1399_s1 + $0x1f0] sm:$0xff]  }
  0x17   :  { %v864_v62 = vcombine.high %v23_v60, %v27_v61  ;;  %v863_v0 = vcombine.low %v23_v60, %v27_v61  ;;  %v866_v6 = vcombine.high %v24_v4, %v28_v5  ;;  %v865_v7 = vcombine.low %v24_v4, %v28_v5  ;;  %v1124_v10 = vld [vmem:[%s1399_s1 + $0x130] sm:$0xff]   ;;  %v1126_v12 = vld [vmem:[%s1399_s1 + $0x178] sm:$0xff]   ;;  %v854_v34 = vld [vmem:[%s1401_s2] ss:$0 sm:$0xff] }
  0x18   :  { %965 = vmatpush3.bf16.msra.mxu0 %v1088_v22  ;;  %v1125_v11 = vld [vmem:[%s1399_s1 + $0x1b0] sm:$0xff]   ;;  %v1127_v13 = vld [vmem:[%s1399_s1 + $0x1f8] sm:$0xff]  }
  0x19   :  { %993 = vmatpush3.bf16.msra.mxu1 %v1089_v23  ;;  %966 = vmatprep.subr.bf16.mxu0 %v1090_v24  ;;  %v1128_v14 = vld [vmem:[%s1399_s1 + $0x138] sm:$0xff]   ;;  %v17_v16 = vld [vmem:[%s1400_s0 + $0x10] sm:$0xff] }
  0x1a   :  { %994 = vmatprep.subr.bf16.mxu1 %v1091_v25  ;;  %v1129_v15 = vld [vmem:[%s1399_s1 + $0x1b8] sm:$0xff]   ;;  %v21_v17 = vld [vmem:[%s1400_s0 + $0x30] sm:$0xff] }
  0x1b   :  { %v18_v18 = vld [vmem:[%s1400_s0 + $0x18] sm:$0xff]  ;;  %v859_v20 = vcombine.low %v17_v16, %v21_v17  ;;  %v860_v21 = vcombine.high %v17_v16, %v21_v17  ;;  %v25_v24 = vld [vmem:[%s1400_s0 + $0x50] sm:$0xff] }
  0x1c   :  { %967 = vmatpush3.bf16.msra.mxu0 %v1092_v26  ;;  %v22_v19 = vld [vmem:[%s1400_s0 + $0x38] sm:$0xff]  ;;  %v29_v25 = vld [vmem:[%s1400_s0 + $0x70] sm:$0xff] }
  0x1d   :  { %995 = vmatpush3.bf16.msra.mxu1 %v1093_v27  ;;  %968 = vmatprep.subr.bf16.mxu0 %v1094_v28  ;;  %v861_v22 = vcombine.low %v18_v18, %v22_v19  ;;  %v862_v23 = vcombine.high %v18_v18, %v22_v19  ;;  %v26_v26 = vld [vmem:[%s1400_s0 + $0x58] sm:$0xff]  ;;  %v868_v27 = vcombine.high %v25_v24, %v29_v25 }
  0x1e   :  { %996 = vmatprep.subr.bf16.mxu1 %v1095_v29  ;;  %v30_v28 = vld [vmem:[%s1400_s0 + $0x78] sm:$0xff] }
  0x1f   :  { %v870_v29 = vcombine.high %v26_v26, %v30_v28 }
  0x20   :  { %969 = vmatpush3.bf16.msra.mxu0 %v1096_v30  ;;  %v867_v30 = vcombine.low %v25_v24, %v29_v25 }
  0x21   :  { %997 = vmatpush3.bf16.msra.mxu1 %v1097_v31  ;;  %1010 = vmatprep.subr.bf16.mxu0 %v1098_v40  ;;  %v869_v31 = vcombine.low %v26_v26, %v30_v28 }
  0x22   :  { %1038 = vmatprep.subr.bf16.mxu1 %v1099_v41 }
  0x23   :  { %663 = vmatmul.mubr.bf16.vlgmr.msra.gmra.mrb[0].mxu0 %v855_v35 }
  0x24   :  { %712 = vmatmul.mubr.bf16.vlgmr.msra.gmra.mrb[0].mxu1 %v857_v38  ;;  %1011 = vmatpush3.bf16.msra.mxu0 %v1100_v42 }
  0x25   :  { %1039 = vmatpush3.bf16.msra.mxu1 %v1101_v43  ;;  %1012 = vmatprep.subr.bf16.mxu0 %v1102_v44 }
  0x26   :  { %1040 = vmatprep.subr.bf16.mxu1 %v1103_v45  ;;  %670 = vmatprep.mubr.bf16.mxu0 %v864_v62 }
  0x27   :  { %719 = vmatprep.mubr.bf16.mxu1 %v866_v6 }
  0x28   :  { %1013 = vmatpush3.bf16.msra.mxu0 %v1104_v46 }
  0x29   :  { %1041 = vmatpush3.bf16.msra.mxu1 %v1105_v47  ;;  %1014 = vmatprep.subr.bf16.mxu0 %v1106_v48 }
  0x2a   :  { %1042 = vmatprep.subr.bf16.mxu1 %v1107_v49 }
  0x2b   :  { %671 = vmatmul.mubr.bf16.gmra.mrb[4].mxu0 %v863_v0 }
  0x2c   :  { %1015 = vmatpush3.bf16.msra.mxu0 %v1108_v50  ;;  %720 = vmatmul.mubr.bf16.gmra.mrb[4].mxu1 %v865_v7 }
  0x2d   :  { %1043 = vmatpush3.bf16.msra.mxu1 %v1109_v51  ;;  %1016 = vmatprep.subr.bf16.mxu0 %v1110_v52 }
  0x2e   :  { %1044 = vmatprep.subr.bf16.mxu1 %v1111_v53  ;;  %760 = vmatprep.mubr.bf16.mxu0 %v860_v21 }
  0x2f   :  { %809 = vmatprep.mubr.bf16.mxu1 %v862_v23 }
  0x30   :  { %1017 = vmatpush3.bf16.msra.mxu0 %v1112_v54 }
  0x31   :  { %1045 = vmatpush3.bf16.msra.mxu1 %v1113_v55  ;;  %1018 = vmatprep.subr.bf16.mxu0 %v1114_v56 }
  0x32   :  { %1046 = vmatprep.subr.bf16.mxu1 %v1115_v57 }
  0x34   :  { %1019 = vmatpush3.bf16.msra.mxu0 %v1116_v58 }
  0x35   :  { %1047 = vmatpush3.bf16.msra.mxu1 %v1117_v59  ;;  %1020 = vmatprep.subr.bf16.mxu0 %v1118_v63 }
  0x36   :  { %1048 = vmatprep.subr.bf16.mxu1 %v1119_v1 }
  0x38   :  { %1021 = vmatpush3.bf16.msra.mxu0 %v1120_v2 }
  0x39   :  { %1049 = vmatpush3.bf16.msra.mxu1 %v1121_v3  ;;  %1022 = vmatprep.subr.bf16.mxu0 %v1122_v8 }
  0x3a   :  { %1050 = vmatprep.subr.bf16.mxu1 %v1123_v9 }
  0x3c   :  { %1023 = vmatpush3.bf16.msra.mxu0 %v1124_v10 }
  0x3d   :  { %1051 = vmatpush3.bf16.msra.mxu1 %v1125_v11  ;;  %1024 = vmatprep.subr.bf16.mxu0 %v1126_v12 }
  0x3e   :  { %1052 = vmatprep.subr.bf16.mxu1 %v1127_v13 }
  0x40   :  { %1025 = vmatpush3.bf16.msra.mxu0 %v1128_v14 }
  0x41   :  { %1053 = vmatpush3.bf16.msra.mxu1 %v1129_v15 }
  0x43   :  { %761 = vmatmul.mubr.bf16.vlgmr.msra.gmra.mrb[8].mxu0 %v859_v20 }
  0x44   :  { %810 = vmatmul.mubr.bf16.vlgmr.msra.gmra.mrb[8].mxu1 %v861_v22  ;;  %768 = vmatprep.mubr.bf16.mxu0 %v868_v27 }
  0x45   :  { %817 = vmatprep.mubr.bf16.mxu1 %v870_v29 }
  0x4b   :  { %769 = vmatmul.mubr.bf16.gmra.mrb[12].mxu0 %v867_v30 }
  0x4c   :  { %818 = vmatmul.mubr.bf16.gmra.mrb[12].mxu1 %v869_v31 }
  0xf6   :  { %v970_v32 = vpop.f32.mrb[0].mxu0 }
  0xf7   :  { %v998_v33 = vpop.f32.mrb[0].mxu1  ;;  %v971_v35 = vpop.f32.mrb[1].mxu0 }
  0xf8   :  { %v972_v36 = vadd.f32 %v971_v35, %v970_v32  ;;  %v999_v37 = vpop.f32.mrb[1].mxu1  ;;  %v973_v38 = vpop.f32.mrb[2].mxu0 }
  0xf9   :  { %v1000_v39 = vadd.f32 %v999_v37, %v998_v33  ;;  %v1001_v40 = vpop.f32.mrb[2].mxu1  ;;  %v974_v41 = vpop.f32.mrb[3].mxu0 }
  0xfa   :  { %v665_v42 = vadd.f32 %v972_v36, %v854_v34  ;;  %v975_v43 = vadd.f32 %v974_v41, %v973_v38  ;;  %v1002_v44 = vpop.f32.mrb[3].mxu1 }
  0xfb   :  { %v1003_v45 = vadd.f32 %v1002_v44, %v1001_v40 }
  0xfc   :  { %v714_v46 = vadd.f32 %v1000_v39, %v665_v42  ;;  %v668_v47 = vadd.f32 %v975_v43, %v854_v34 }
  0xfe   :  { %v717_v48 = vadd.f32 %v1003_v45, %v668_v47  ;;  %v976_v49 = vpop.f32.mrb[4].mxu0 }
  0xff   :  { %v977_v50 = vpop.f32.mrb[5].mxu0  ;;  %v1004_v56 = vpop.f32.mrb[4].mxu1 }
 0x100   :  { %v978_v51 = vadd.f32 %v977_v50, %v976_v49  ;;  %v979_v52 = vpop.f32.mrb[6].mxu0  ;;  %v1005_v57 = vpop.f32.mrb[5].mxu1 }
 0x101   :  { %v980_v53 = vpop.f32.mrb[7].mxu0  ;;  %v1006_v59 = vadd.f32 %v1005_v57, %v1004_v56  ;;  %v1007_v60 = vpop.f32.mrb[6].mxu1 }
 0x102   :  { %v981_v54 = vadd.f32 %v980_v53, %v979_v52  ;;  %v673_v55 = vadd.f32 %v978_v51, %v854_v34  ;;  %v1008_v61 = vpop.f32.mrb[7].mxu1 }
 0x103   :  { %v1009_v63 = vadd.f32 %v1008_v61, %v1007_v60 }
 0x104   :  { %v676_v58 = vadd.f32 %v981_v54, %v854_v34  ;;  %v722_v62 = vadd.f32 %v1006_v59, %v673_v55 }
 0x106   :  { %v725_v0 = vadd.f32 %v1009_v63, %v676_v58 }
 0x116   :  { %v1026_v1 = vpop.f32.mrb[8].mxu0 }
 0x117   :  { %v1054_v2 = vpop.f32.mrb[8].mxu1  ;;  %v1027_v3 = vpop.f32.mrb[9].mxu0 }
 0x118   :  { %v1055_v4 = vpop.f32.mrb[9].mxu1  ;;  %v1028_v5 = vadd.f32 %v1027_v3, %v1026_v1  ;;  %v1029_v7 = vpop.f32.mrb[10].mxu0 }
 0x119   :  { %v1056_v6 = vadd.f32 %v1055_v4, %v1054_v2  ;;  %v1057_v8 = vpop.f32.mrb[10].mxu1  ;;  %v1030_v9 = vpop.f32.mrb[11].mxu0 }
 0x11a   :  { %v1058_v10 = vpop.f32.mrb[11].mxu1  ;;  %v763_v11 = vadd.f32 %v1028_v5, %v714_v46  ;;  %v1031_v12 = vadd.f32 %v1030_v9, %v1029_v7 }
 0x11b   :  { %v1059_v13 = vadd.f32 %v1058_v10, %v1057_v8 }
 0x11c   :  { %v812_v14 = vadd.f32 %v1056_v6, %v763_v11  ;;  %v766_v15 = vadd.f32 %v1031_v12, %v717_v48 }
 0x11e   :  { %v815_v16 = vadd.f32 %v1059_v13, %v766_v15  ;;  %v1032_v17 = vpop.f32.mrb[12].mxu0  ;;  %v826_v21 = vmax.f32 %v812_v14, 0.0 }
 0x11f   :  { %v1060_v18 = vpop.f32.mrb[12].mxu1  ;;  %v1033_v19 = vpop.f32.mrb[13].mxu0 }
 0x120   :  { %v1061_v20 = vpop.f32.mrb[13].mxu1  ;;  %v827_v22 = vmax.f32 %v815_v16, 0.0  ;;  %v1034_v23 = vadd.f32 %v1033_v19, %v1032_v17  ;;  %v1035_v25 = vpop.f32.mrb[14].mxu0 }
 0x121   :  { %v1062_v24 = vadd.f32 %v1061_v20, %v1060_v18  ;;  %v1063_v26 = vpop.f32.mrb[14].mxu1  ;;  %v1036_v27 = vpop.f32.mrb[15].mxu0 }
 0x122   :  { %v1064_v28 = vpop.f32.mrb[15].mxu1  ;;  %v946_v29 = vpack.c.bf16 %v827_v22, %v826_v21  ;;  %v771_v30 = vadd.f32 %v1034_v23, %v722_v62  ;;  %v1037_v31 = vadd.f32 %v1036_v27, %v1035_v25 }
 0x123   :  { %v1065_v32 = vadd.f32 %v1064_v28, %v1063_v26 }
 0x124   :  { %947 = vst [vmem:[%s1402_s3] sm:$0xff] %v946_v29   ;;  %v820_v33 = vadd.f32 %v1062_v24, %v771_v30  ;;  %v774_v34 = vadd.f32 %v1037_v31, %v725_v0 }
 0x126   :  { %v823_v35 = vadd.f32 %v1065_v32, %v774_v34  ;;  %v828_v36 = vmax.f32 %v820_v33, 0.0 }
 0x128   :  { %v829_v37 = vmax.f32 %v823_v35, 0.0 }
 0x12a   :  { %v951_v38 = vpack.c.bf16 %v829_v37, %v828_v36 }
 0x12c   :  { %953 = vst [vmem:[%s1402_s3 + $0x8] sm:$0xff] %v951_v38  }

// kernel: vae_forward.12
= control target key start
LH: loop header
LB: loop body
LE: loop exit
PB: predicated region body
PF: predicated region fallthrough
CT: control target
= control target key end

     0   :  { %v1530_v3 = vmov 0   ;;  %s2042_s1 = inlined_call_operand.vmem [shape: bf16[128,2048], index: 1, kind: input, shape index: {}]   ;;  %s2043_s0 = inlined_call_operand.vmem [shape: bf16[16,128], index: 0, kind: input, shape index: {}]   ;;  %s2044_s2 = inlined_call_operand.vmem [shape: f32[1,2048], index: 2, kind: input, shape index: {}]   ;;  %s2045_s3 = inlined_call_operand.vmem [shape: bf16[16,2048], index: 3, kind: output, shape index: {}]  }
   0x1   :  { %v17_v0 = vld [vmem:[%s2042_s1] sm:$0xff]  ;;  %v18_v2 = vld [vmem:[%s2042_s1 + $0x8] sm:$0xff]  ;;  %907 = vmatprep.mubr.bf16.mxu0 %v1530_v3  ;;  %950 = vmatprep.mubr.bf16.mxu1 %v1530_v3  ;;  %v19_v63 = vld [vmem:[%s2042_s1 + $0x10] sm:$0xff] }
   0x2   :  { %v25_v1 = vld [vmem:[%s2042_s1 + $0x40] sm:$0xff]  ;;  %v26_v5 = vld [vmem:[%s2042_s1 + $0x48] sm:$0xff] }
   0x3   :  { %v1369_v4 = vcombine.high %v17_v0, %v25_v1  ;;  %v1368_v6 = vcombine.low %v17_v0, %v25_v1  ;;  %v33_v7 = vld [vmem:[%s2042_s1 + $0x80] sm:$0xff]  ;;  %v1371_v9 = vcombine.high %v18_v2, %v26_v5  ;;  %v1370_v10 = vcombine.low %v18_v2, %v26_v5  ;;  %v34_v12 = vld [vmem:[%s2042_s1 + $0x88] sm:$0xff]  ;;  %v27_v0 = vld [vmem:[%s2042_s1 + $0x50] sm:$0xff] }
   0x4   :  { %v41_v8 = vld [vmem:[%s2042_s1 + $0xc0] sm:$0xff]  ;;  %v42_v13 = vld [vmem:[%s2042_s1 + $0xc8] sm:$0xff]  ;;  %v20_v1 = vld [vmem:[%s2042_s1 + $0x18] sm:$0xff] }
   0x5   :  { %v1385_v11 = vcombine.high %v33_v7, %v41_v8  ;;  %v49_v14 = vld [vmem:[%s2042_s1 + $0x100] sm:$0xff]  ;;  %875 = vmatprep.subr.bf16.mxu0 %v1369_v4  ;;  %v1387_v15 = vcombine.high %v34_v12, %v42_v13  ;;  %v50_v17 = vld [vmem:[%s2042_s1 + $0x108] sm:$0xff]  ;;  %918 = vmatprep.subr.bf16.mxu1 %v1371_v9  ;;  %v1384_v19 = vcombine.low %v33_v7, %v41_v8  ;;  %v28_v2 = vld [vmem:[%s2042_s1 + $0x58] sm:$0xff] }
   0x6   :  { %v57_v16 = vld [vmem:[%s2042_s1 + $0x140] sm:$0xff]  ;;  %v58_v18 = vld [vmem:[%s2042_s1 + $0x148] sm:$0xff]  ;;  %876 = vmatpush1.bf16.msra.mxu0 %v1368_v6  ;;  %919 = vmatpush1.bf16.msra.mxu1 %v1370_v10  ;;  %v1386_v20 = vcombine.low %v34_v12, %v42_v13  ;;  %v1373_v6 = vcombine.high %v19_v63, %v27_v0  ;;  %v1375_v7 = vcombine.high %v20_v1, %v28_v2  ;;  %v35_v8 = vld [vmem:[%s2042_s1 + $0x90] sm:$0xff] }
   0x7   :  { %877 = vmatprep.subr.bf16.mxu0 %v1385_v11  ;;  %v1401_v21 = vcombine.high %v49_v14, %v57_v16  ;;  %920 = vmatprep.subr.bf16.mxu1 %v1387_v15  ;;  %v1403_v22 = vcombine.high %v50_v17, %v58_v18  ;;  %v65_v23 = vld [vmem:[%s2042_s1 + $0x180] sm:$0xff]  ;;  %v66_v25 = vld [vmem:[%s2042_s1 + $0x188] sm:$0xff]  ;;  %v1400_v27 = vcombine.low %v49_v14, %v57_v16  ;;  %v43_v9 = vld [vmem:[%s2042_s1 + $0xd0] sm:$0xff] }
   0x8   :  { %v73_v24 = vld [vmem:[%s2042_s1 + $0x1c0] sm:$0xff]  ;;  %v74_v26 = vld [vmem:[%s2042_s1 + $0x1c8] sm:$0xff]  ;;  %v1402_v28 = vcombine.low %v50_v17, %v58_v18  ;;  %v36_v11 = vld [vmem:[%s2042_s1 + $0x98] sm:$0xff]  ;;  %v1372_v13 = vcombine.low %v19_v63, %v27_v0  ;;  %v1374_v14 = vcombine.low %v20_v1, %v28_v2  ;;  %v1389_v15 = vcombine.high %v35_v8, %v43_v9 }
   0x9   :  { %v1417_v29 = vcombine.high %v65_v23, %v73_v24  ;;  %v1419_v30 = vcombine.high %v66_v25, %v74_v26  ;;  %v81_v31 = vld [vmem:[%s2042_s1 + $0x200] sm:$0xff]  ;;  %v82_v33 = vld [vmem:[%s2042_s1 + $0x208] sm:$0xff]  ;;  %v1416_v35 = vcombine.low %v65_v23, %v73_v24  ;;  %v1418_v36 = vcombine.low %v66_v25, %v74_v26  ;;  %v44_v12 = vld [vmem:[%s2042_s1 + $0xd8] sm:$0xff] }
   0xa   :  { %878 = vmatpush1.bf16.msra.mxu0 %v1384_v19  ;;  %921 = vmatpush1.bf16.msra.mxu1 %v1386_v20  ;;  %v89_v32 = vld [vmem:[%s2042_s1 + $0x240] sm:$0xff]  ;;  %v90_v34 = vld [vmem:[%s2042_s1 + $0x248] sm:$0xff]  ;;  %v1391_v16 = vcombine.high %v36_v11, %v44_v12  ;;  %v51_v17 = vld [vmem:[%s2042_s1 + $0x110] sm:$0xff] }
   0xb   :  { %879 = vmatprep.subr.bf16.mxu0 %v1401_v21  ;;  %922 = vmatprep.subr.bf16.mxu1 %v1403_v22  ;;  %v1433_v37 = vcombine.high %v81_v31, %v89_v32  ;;  %v1435_v38 = vcombine.high %v82_v33, %v90_v34  ;;  %v97_v39 = vld [vmem:[%s2042_s1 + $0x280] sm:$0xff]  ;;  %v98_v41 = vld [vmem:[%s2042_s1 + $0x288] sm:$0xff]  ;;  %v1432_v43 = vcombine.low %v81_v31, %v89_v32  ;;  %v59_v18 = vld [vmem:[%s2042_s1 + $0x150] sm:$0xff] }
   0xc   :  { %v105_v40 = vld [vmem:[%s2042_s1 + $0x2c0] sm:$0xff]  ;;  %v106_v42 = vld [vmem:[%s2042_s1 + $0x2c8] sm:$0xff]  ;;  %v1434_v44 = vcombine.low %v82_v33, %v90_v34  ;;  %v52_v19 = vld [vmem:[%s2042_s1 + $0x118] sm:$0xff]  ;;  %v1388_v21 = vcombine.low %v35_v8, %v43_v9  ;;  %v1390_v22 = vcombine.low %v36_v11, %v44_v12  ;;  %v1405_v23 = vcombine.high %v51_v17, %v59_v18 }
   0xd   :  { %v1449_v45 = vcombine.high %v97_v39, %v105_v40  ;;  %v1451_v46 = vcombine.high %v98_v41, %v106_v42  ;;  %v113_v47 = vld [vmem:[%s2042_s1 + $0x300] sm:$0xff]  ;;  %v114_v49 = vld [vmem:[%s2042_s1 + $0x308] sm:$0xff]  ;;  %v1448_v51 = vcombine.low %v97_v39, %v105_v40  ;;  %v1450_v52 = vcombine.low %v98_v41, %v106_v42  ;;  %v60_v20 = vld [vmem:[%s2042_s1 + $0x158] sm:$0xff] }
   0xe   :  { %880 = vmatpush1.bf16.msra.mxu0 %v1400_v27  ;;  %923 = vmatpush1.bf16.msra.mxu1 %v1402_v28  ;;  %v121_v48 = vld [vmem:[%s2042_s1 + $0x340] sm:$0xff]  ;;  %v122_v50 = vld [vmem:[%s2042_s1 + $0x348] sm:$0xff]  ;;  %v1407_v24 = vcombine.high %v52_v19, %v60_v20  ;;  %v67_v25 = vld [vmem:[%s2042_s1 + $0x190] sm:$0xff] }
   0xf   :  { %881 = vmatprep.subr.bf16.mxu0 %v1417_v29  ;;  %924 = vmatprep.subr.bf16.mxu1 %v1419_v30  ;;  %v1465_v53 = vcombine.high %v113_v47, %v121_v48  ;;  %v1467_v54 = vcombine.high %v114_v49, %v122_v50  ;;  %v129_v55 = vld [vmem:[%s2042_s1 + $0x380] sm:$0xff]  ;;  %v130_v57 = vld [vmem:[%s2042_s1 + $0x388] sm:$0xff]  ;;  %v1464_v59 = vcombine.low %v113_v47, %v121_v48  ;;  %v75_v26 = vld [vmem:[%s2042_s1 + $0x1d0] sm:$0xff] }
  0x10   :  { %v137_v56 = vld [vmem:[%s2042_s1 + $0x3c0] sm:$0xff]  ;;  %v138_v58 = vld [vmem:[%s2042_s1 + $0x3c8] sm:$0xff]  ;;  %v1466_v60 = vcombine.low %v114_v49, %v122_v50  ;;  %v68_v27 = vld [vmem:[%s2042_s1 + $0x198] sm:$0xff]  ;;  %v1404_v29 = vcombine.low %v51_v17, %v59_v18  ;;  %v1406_v30 = vcombine.low %v52_v19, %v60_v20  ;;  %v1421_v31 = vcombine.high %v67_v25, %v75_v26 }
  0x11   :  { %v1481_v61 = vcombine.high %v129_v55, %v137_v56  ;;  %v1483_v62 = vcombine.high %v130_v57, %v138_v58  ;;  %v1480_v4 = vcombine.low %v129_v55, %v137_v56  ;;  %v1482_v5 = vcombine.low %v130_v57, %v138_v58  ;;  %v1670_v10 = vld [vmem:[%s2043_s0] sm:$0xff]   ;;  %v76_v28 = vld [vmem:[%s2042_s1 + $0x1d8] sm:$0xff]  ;;  %v83_v33 = vld [vmem:[%s2042_s1 + $0x210] sm:$0xff] }
  0x12   :  { %882 = vmatpush1.bf16.msra.mxu0 %v1416_v35  ;;  %925 = vmatpush1.bf16.msra.mxu1 %v1418_v36  ;;  %v1423_v32 = vcombine.high %v68_v27, %v76_v28  ;;  %v91_v34 = vld [vmem:[%s2042_s1 + $0x250] sm:$0xff]  ;;  %v84_v35 = vld [vmem:[%s2042_s1 + $0x218] sm:$0xff]  ;;  %v21_v1 = vld [vmem:[%s2042_s1 + $0x20] sm:$0xff] }
  0x13   :  { %883 = vmatprep.subr.bf16.mxu0 %v1433_v37  ;;  %926 = vmatprep.subr.bf16.mxu1 %v1435_v38  ;;  %v92_v36 = vld [vmem:[%s2042_s1 + $0x258] sm:$0xff]  ;;  %v1420_v37 = vcombine.low %v67_v25, %v75_v26  ;;  %v1422_v38 = vcombine.low %v68_v27, %v76_v28  ;;  %v1437_v39 = vcombine.high %v83_v33, %v91_v34  ;;  %v99_v41 = vld [vmem:[%s2042_s1 + $0x290] sm:$0xff]  ;;  %v29_v2 = vld [vmem:[%s2042_s1 + $0x60] sm:$0xff] }
  0x14   :  { %v1439_v40 = vcombine.high %v84_v35, %v92_v36  ;;  %v107_v42 = vld [vmem:[%s2042_s1 + $0x2d0] sm:$0xff]  ;;  %v1377_v8 = vcombine.high %v21_v1, %v29_v2  ;;  %v37_v11 = vld [vmem:[%s2042_s1 + $0xa0] sm:$0xff] }
  0x15   :  { %v1453_v47 = vcombine.high %v99_v41, %v107_v42  ;;  %v115_v49 = vld [vmem:[%s2042_s1 + $0x310] sm:$0xff]  ;;  %v45_v12 = vld [vmem:[%s2042_s1 + $0xe0] sm:$0xff] }
  0x16   :  { %884 = vmatpush1.bf16.msra.mxu0 %v1432_v43  ;;  %927 = vmatpush1.bf16.msra.mxu1 %v1434_v44  ;;  %v100_v43 = vld [vmem:[%s2042_s1 + $0x298] sm:$0xff]  ;;  %v123_v50 = vld [vmem:[%s2042_s1 + $0x350] sm:$0xff]  ;;  %v1393_v17 = vcombine.high %v37_v11, %v45_v12  ;;  %v53_v19 = vld [vmem:[%s2042_s1 + $0x120] sm:$0xff] }
  0x17   :  { %885 = vmatprep.subr.bf16.mxu0 %v1449_v45  ;;  %928 = vmatprep.subr.bf16.mxu1 %v1451_v46  ;;  %v108_v44 = vld [vmem:[%s2042_s1 + $0x2d8] sm:$0xff]  ;;  %v1436_v45 = vcombine.low %v83_v33, %v91_v34  ;;  %v1438_v46 = vcombine.low %v84_v35, %v92_v36  ;;  %v1469_v55 = vcombine.high %v115_v49, %v123_v50  ;;  %v131_v57 = vld [vmem:[%s2042_s1 + $0x390] sm:$0xff]  ;;  %v61_v20 = vld [vmem:[%s2042_s1 + $0x160] sm:$0xff] }
  0x18   :  { %v1455_v48 = vcombine.high %v100_v43, %v108_v44  ;;  %v139_v58 = vld [vmem:[%s2042_s1 + $0x3d0] sm:$0xff]  ;;  %v1409_v25 = vcombine.high %v53_v19, %v61_v20  ;;  %v69_v27 = vld [vmem:[%s2042_s1 + $0x1a0] sm:$0xff] }
  0x19   :  { %v1485_v63 = vcombine.high %v131_v57, %v139_v58  ;;  %v77_v28 = vld [vmem:[%s2042_s1 + $0x1e0] sm:$0xff] }
  0x1a   :  { %886 = vmatpush1.bf16.msra.mxu0 %v1448_v51  ;;  %929 = vmatpush1.bf16.msra.mxu1 %v1450_v52  ;;  %v116_v51 = vld [vmem:[%s2042_s1 + $0x318] sm:$0xff]  ;;  %v1425_v33 = vcombine.high %v69_v27, %v77_v28  ;;  %v85_v35 = vld [vmem:[%s2042_s1 + $0x220] sm:$0xff] }
  0x1b   :  { %887 = vmatprep.subr.bf16.mxu0 %v1465_v53  ;;  %930 = vmatprep.subr.bf16.mxu1 %v1467_v54  ;;  %v124_v52 = vld [vmem:[%s2042_s1 + $0x358] sm:$0xff]  ;;  %v1452_v53 = vcombine.low %v99_v41, %v107_v42  ;;  %v1454_v54 = vcombine.low %v100_v43, %v108_v44  ;;  %v93_v36 = vld [vmem:[%s2042_s1 + $0x260] sm:$0xff] }
  0x1c   :  { %v1471_v56 = vcombine.high %v116_v51, %v124_v52  ;;  %v1441_v41 = vcombine.high %v85_v35, %v93_v36  ;;  %v101_v43 = vld [vmem:[%s2042_s1 + $0x2a0] sm:$0xff] }
  0x1d   :  { %v109_v44 = vld [vmem:[%s2042_s1 + $0x2e0] sm:$0xff] }
  0x1e   :  { %888 = vmatpush1.bf16.msra.mxu0 %v1464_v59  ;;  %931 = vmatpush1.bf16.msra.mxu1 %v1466_v60  ;;  %v132_v59 = vld [vmem:[%s2042_s1 + $0x398] sm:$0xff] }
  0x1f   :  { %889 = vmatprep.subr.bf16.mxu0 %v1481_v61  ;;  %932 = vmatprep.subr.bf16.mxu1 %v1483_v62  ;;  %v140_v60 = vld [vmem:[%s2042_s1 + $0x3d8] sm:$0xff]  ;;  %v1468_v61 = vcombine.low %v115_v49, %v123_v50  ;;  %v1470_v62 = vcombine.low %v116_v51, %v124_v52  ;;  %v1457_v49 = vcombine.high %v101_v43, %v109_v44  ;;  %v117_v51 = vld [vmem:[%s2042_s1 + $0x320] sm:$0xff] }
  0x20   :  { %v1487_v0 = vcombine.high %v132_v59, %v140_v60  ;;  %v125_v52 = vld [vmem:[%s2042_s1 + $0x360] sm:$0xff] }
  0x22   :  { %890 = vmatpush1.bf16.msra.mxu0 %v1480_v4  ;;  %933 = vmatpush1.bf16.msra.mxu1 %v1482_v5  ;;  %v22_v4 = vld [vmem:[%s2042_s1 + $0x28] sm:$0xff] }
  0x23   :  { %961 = vmatprep.subr.bf16.mxu0 %v1373_v6  ;;  %1004 = vmatprep.subr.bf16.mxu1 %v1375_v7  ;;  %v30_v5 = vld [vmem:[%s2042_s1 + $0x68] sm:$0xff]  ;;  %v1484_v6 = vcombine.low %v131_v57, %v139_v58  ;;  %v1486_v7 = vcombine.low %v132_v59, %v140_v60  ;;  %v1473_v57 = vcombine.high %v117_v51, %v125_v52  ;;  %v133_v59 = vld [vmem:[%s2042_s1 + $0x3a0] sm:$0xff] }
  0x24   :  { %v1379_v9 = vcombine.high %v22_v4, %v30_v5  ;;  %v141_v60 = vld [vmem:[%s2042_s1 + $0x3e0] sm:$0xff] }
  0x25   :  { %908 = vmatmul.mubr.bf16.vlgmr.msra.gmra.mrb[0].mxu0 %v1670_v10  ;;  %951 = vmatmul.mubr.bf16.vlgmr.msra.gmra.mrb[0].mxu1 %v1670_v10 }
  0x26   :  { %962 = vmatpush1.bf16.msra.mxu0 %v1372_v13  ;;  %1005 = vmatpush1.bf16.msra.mxu1 %v1374_v14  ;;  %v38_v13 = vld [vmem:[%s2042_s1 + $0xa8] sm:$0xff] }
  0x27   :  { %963 = vmatprep.subr.bf16.mxu0 %v1389_v15  ;;  %1006 = vmatprep.subr.bf16.mxu1 %v1391_v16  ;;  %v46_v14 = vld [vmem:[%s2042_s1 + $0xe8] sm:$0xff]  ;;  %v1376_v15 = vcombine.low %v21_v1, %v29_v2  ;;  %v1378_v16 = vcombine.low %v22_v4, %v30_v5  ;;  %v1489_v1 = vcombine.high %v133_v59, %v141_v60  ;;  %v23_v4 = vld [vmem:[%s2042_s1 + $0x30] sm:$0xff] }
  0x28   :  { %993 = vmatprep.mubr.bf16.mxu0 %v1530_v3  ;;  %1036 = vmatprep.mubr.bf16.mxu1 %v1530_v3  ;;  %v1395_v18 = vcombine.high %v38_v13, %v46_v14  ;;  %v31_v5 = vld [vmem:[%s2042_s1 + $0x70] sm:$0xff] }
  0x2a   :  { %964 = vmatpush1.bf16.msra.mxu0 %v1388_v21  ;;  %1007 = vmatpush1.bf16.msra.mxu1 %v1390_v22  ;;  %v54_v21 = vld [vmem:[%s2042_s1 + $0x128] sm:$0xff] }
  0x2b   :  { %965 = vmatprep.subr.bf16.mxu0 %v1405_v23  ;;  %1008 = vmatprep.subr.bf16.mxu1 %v1407_v24  ;;  %v62_v22 = vld [vmem:[%s2042_s1 + $0x168] sm:$0xff]  ;;  %v1392_v23 = vcombine.low %v37_v11, %v45_v12  ;;  %v1394_v24 = vcombine.low %v38_v13, %v46_v14  ;;  %v1381_v11 = vcombine.high %v23_v4, %v31_v5  ;;  %v39_v13 = vld [vmem:[%s2042_s1 + $0xb0] sm:$0xff] }
  0x2c   :  { %v1411_v26 = vcombine.high %v54_v21, %v62_v22  ;;  %v47_v14 = vld [vmem:[%s2042_s1 + $0xf0] sm:$0xff] }
  0x2e   :  { %966 = vmatpush1.bf16.msra.mxu0 %v1404_v29  ;;  %1009 = vmatpush1.bf16.msra.mxu1 %v1406_v30  ;;  %v70_v29 = vld [vmem:[%s2042_s1 + $0x1a8] sm:$0xff] }
  0x2f   :  { %967 = vmatprep.subr.bf16.mxu0 %v1421_v31  ;;  %1010 = vmatprep.subr.bf16.mxu1 %v1423_v32  ;;  %v78_v30 = vld [vmem:[%s2042_s1 + $0x1e8] sm:$0xff]  ;;  %v1408_v31 = vcombine.low %v53_v19, %v61_v20  ;;  %v1410_v32 = vcombine.low %v54_v21, %v62_v22  ;;  %v1397_v19 = vcombine.high %v39_v13, %v47_v14  ;;  %v55_v21 = vld [vmem:[%s2042_s1 + $0x130] sm:$0xff] }
  0x30   :  { %v1427_v34 = vcombine.high %v70_v29, %v78_v30  ;;  %v63_v22 = vld [vmem:[%s2042_s1 + $0x170] sm:$0xff] }
  0x32   :  { %968 = vmatpush1.bf16.msra.mxu0 %v1420_v37  ;;  %1011 = vmatpush1.bf16.msra.mxu1 %v1422_v38  ;;  %v86_v37 = vld [vmem:[%s2042_s1 + $0x228] sm:$0xff] }
  0x33   :  { %969 = vmatprep.subr.bf16.mxu0 %v1437_v39  ;;  %1012 = vmatprep.subr.bf16.mxu1 %v1439_v40  ;;  %v94_v38 = vld [vmem:[%s2042_s1 + $0x268] sm:$0xff]  ;;  %v1424_v39 = vcombine.low %v69_v27, %v77_v28  ;;  %v1426_v40 = vcombine.low %v70_v29, %v78_v30  ;;  %v1413_v27 = vcombine.high %v55_v21, %v63_v22  ;;  %v71_v29 = vld [vmem:[%s2042_s1 + $0x1b0] sm:$0xff] }
  0x34   :  { %v1443_v42 = vcombine.high %v86_v37, %v94_v38  ;;  %v79_v30 = vld [vmem:[%s2042_s1 + $0x1f0] sm:$0xff] }
  0x36   :  { %970 = vmatpush1.bf16.msra.mxu0 %v1436_v45  ;;  %1013 = vmatpush1.bf16.msra.mxu1 %v1438_v46  ;;  %v102_v45 = vld [vmem:[%s2042_s1 + $0x2a8] sm:$0xff] }
  0x37   :  { %971 = vmatprep.subr.bf16.mxu0 %v1453_v47  ;;  %1014 = vmatprep.subr.bf16.mxu1 %v1455_v48  ;;  %v110_v46 = vld [vmem:[%s2042_s1 + $0x2e8] sm:$0xff]  ;;  %v1440_v47 = vcombine.low %v85_v35, %v93_v36  ;;  %v1442_v48 = vcombine.low %v86_v37, %v94_v38  ;;  %v1429_v35 = vcombine.high %v71_v29, %v79_v30  ;;  %v87_v37 = vld [vmem:[%s2042_s1 + $0x230] sm:$0xff] }
  0x38   :  { %v1459_v50 = vcombine.high %v102_v45, %v110_v46  ;;  %v95_v38 = vld [vmem:[%s2042_s1 + $0x270] sm:$0xff] }
  0x3a   :  { %972 = vmatpush1.bf16.msra.mxu0 %v1452_v53  ;;  %1015 = vmatpush1.bf16.msra.mxu1 %v1454_v54  ;;  %v118_v53 = vld [vmem:[%s2042_s1 + $0x328] sm:$0xff] }
  0x3b   :  { %973 = vmatprep.subr.bf16.mxu0 %v1469_v55  ;;  %1016 = vmatprep.subr.bf16.mxu1 %v1471_v56  ;;  %v126_v54 = vld [vmem:[%s2042_s1 + $0x368] sm:$0xff]  ;;  %v1456_v55 = vcombine.low %v101_v43, %v109_v44  ;;  %v1458_v56 = vcombine.low %v102_v45, %v110_v46  ;;  %v103_v44 = vld [vmem:[%s2042_s1 + $0x2b0] sm:$0xff]  ;;  %v104_v46 = vld [vmem:[%s2042_s1 + $0x2b8] sm:$0xff] }
  0x3c   :  { %v1475_v58 = vcombine.high %v118_v53, %v126_v54  ;;  %v111_v45 = vld [vmem:[%s2042_s1 + $0x2f0] sm:$0xff] }
  0x3e   :  { %974 = vmatpush1.bf16.msra.mxu0 %v1468_v61  ;;  %1017 = vmatpush1.bf16.msra.mxu1 %v1470_v62  ;;  %v134_v61 = vld [vmem:[%s2042_s1 + $0x3a8] sm:$0xff] }
  0x3f   :  { %975 = vmatprep.subr.bf16.mxu0 %v1485_v63  ;;  %1018 = vmatprep.subr.bf16.mxu1 %v1487_v0  ;;  %v142_v62 = vld [vmem:[%s2042_s1 + $0x3e8] sm:$0xff]  ;;  %v1472_v63 = vcombine.low %v117_v51, %v125_v52  ;;  %v1474_v0 = vcombine.low %v118_v53, %v126_v54  ;;  %v119_v52 = vld [vmem:[%s2042_s1 + $0x330] sm:$0xff]  ;;  %v120_v54 = vld [vmem:[%s2042_s1 + $0x338] sm:$0xff] }
  0x40   :  { %v1491_v2 = vcombine.high %v134_v61, %v142_v62  ;;  %v127_v53 = vld [vmem:[%s2042_s1 + $0x370] sm:$0xff] }
  0x42   :  { %976 = vmatpush1.bf16.msra.mxu0 %v1484_v6  ;;  %1019 = vmatpush1.bf16.msra.mxu1 %v1486_v7  ;;  %v24_v6 = vld [vmem:[%s2042_s1 + $0x38] sm:$0xff] }
  0x43   :  { %1047 = vmatprep.subr.bf16.mxu0 %v1377_v8  ;;  %1090 = vmatprep.subr.bf16.mxu1 %v1379_v9  ;;  %v32_v7 = vld [vmem:[%s2042_s1 + $0x78] sm:$0xff]  ;;  %v1488_v8 = vcombine.low %v133_v59, %v141_v60  ;;  %v1490_v9 = vcombine.low %v134_v61, %v142_v62  ;;  %v135_v60 = vld [vmem:[%s2042_s1 + $0x3b0] sm:$0xff] }
  0x44   :  { %v1383_v12 = vcombine.high %v24_v6, %v32_v7  ;;  %v143_v61 = vld [vmem:[%s2042_s1 + $0x3f0] sm:$0xff]  ;;  %v136_v62 = vld [vmem:[%s2042_s1 + $0x3b8] sm:$0xff] }
  0x45   :  { %994 = vmatmul.mubr.bf16.vlgmr.msra.gmra.mrb[4].mxu0 %v1670_v10  ;;  %1037 = vmatmul.mubr.bf16.vlgmr.msra.gmra.mrb[4].mxu1 %v1670_v10 }
  0x46   :  { %1048 = vmatpush1.bf16.msra.mxu0 %v1376_v15  ;;  %1091 = vmatpush1.bf16.msra.mxu1 %v1378_v16  ;;  %v40_v15 = vld [vmem:[%s2042_s1 + $0xb8] sm:$0xff] }
  0x47   :  { %1049 = vmatprep.subr.bf16.mxu0 %v1393_v17  ;;  %1092 = vmatprep.subr.bf16.mxu1 %v1395_v18  ;;  %v48_v16 = vld [vmem:[%s2042_s1 + $0xf8] sm:$0xff]  ;;  %v1380_v17 = vcombine.low %v23_v4, %v31_v5  ;;  %v1382_v18 = vcombine.low %v24_v6, %v32_v7  ;;  %v1492_v5 = vcombine.low %v135_v60, %v143_v61  ;;  %v149_v7 = vlaneseq }
  0x48   :  { %1079 = vmatprep.mubr.bf16.mxu0 %v1530_v3  ;;  %1122 = vmatprep.mubr.bf16.mxu1 %v1530_v3  ;;  %v1399_v20 = vcombine.high %v40_v15, %v48_v16 }
  0x4a   :  { %1050 = vmatpush1.bf16.msra.mxu0 %v1392_v23  ;;  %1093 = vmatpush1.bf16.msra.mxu1 %v1394_v24  ;;  %v56_v23 = vld [vmem:[%s2042_s1 + $0x138] sm:$0xff] }
  0x4b   :  { %1051 = vmatprep.subr.bf16.mxu0 %v1409_v25  ;;  %1094 = vmatprep.subr.bf16.mxu1 %v1411_v26  ;;  %v64_v24 = vld [vmem:[%s2042_s1 + $0x178] sm:$0xff]  ;;  %v1396_v25 = vcombine.low %v39_v13, %v47_v14  ;;  %v1398_v26 = vcombine.low %v40_v15, %v48_v16 }
  0x4c   :  { %v1415_v28 = vcombine.high %v56_v23, %v64_v24 }
  0x4e   :  { %1052 = vmatpush1.bf16.msra.mxu0 %v1408_v31  ;;  %1095 = vmatpush1.bf16.msra.mxu1 %v1410_v32  ;;  %v72_v31 = vld [vmem:[%s2042_s1 + $0x1b8] sm:$0xff] }
  0x4f   :  { %1053 = vmatprep.subr.bf16.mxu0 %v1425_v33  ;;  %1096 = vmatprep.subr.bf16.mxu1 %v1427_v34  ;;  %v80_v32 = vld [vmem:[%s2042_s1 + $0x1f8] sm:$0xff]  ;;  %v1412_v33 = vcombine.low %v55_v21, %v63_v22  ;;  %v1414_v34 = vcombine.low %v56_v23, %v64_v24 }
  0x50   :  { %v1431_v36 = vcombine.high %v72_v31, %v80_v32 }
  0x52   :  { %1054 = vmatpush1.bf16.msra.mxu0 %v1424_v39  ;;  %1097 = vmatpush1.bf16.msra.mxu1 %v1426_v40  ;;  %v96_v39 = vld [vmem:[%s2042_s1 + $0x278] sm:$0xff]  ;;  %v1428_v40 = vcombine.low %v71_v29, %v79_v30 }
  0x53   :  { %1055 = vmatprep.subr.bf16.mxu0 %v1441_v41  ;;  %1098 = vmatprep.subr.bf16.mxu1 %v1443_v42  ;;  %v1430_v41 = vcombine.low %v72_v31, %v80_v32  ;;  %v1445_v42 = vcombine.high %v87_v37, %v95_v38 }
  0x56   :  { %1056 = vmatpush1.bf16.msra.mxu0 %v1440_v47  ;;  %1099 = vmatpush1.bf16.msra.mxu1 %v1442_v48  ;;  %v112_v47 = vld [vmem:[%s2042_s1 + $0x2f8] sm:$0xff]  ;;  %v1444_v48 = vcombine.low %v87_v37, %v95_v38 }
  0x57   :  { %1057 = vmatprep.subr.bf16.mxu0 %v1457_v49  ;;  %1100 = vmatprep.subr.bf16.mxu1 %v1459_v50  ;;  %v1461_v50 = vcombine.high %v103_v44, %v111_v45  ;;  %v1463_v51 = vcombine.high %v104_v46, %v112_v47 }
  0x5a   :  { %1058 = vmatpush1.bf16.msra.mxu0 %v1456_v55  ;;  %1101 = vmatpush1.bf16.msra.mxu1 %v1458_v56  ;;  %v128_v55 = vld [vmem:[%s2042_s1 + $0x378] sm:$0xff]  ;;  %v1460_v56 = vcombine.low %v103_v44, %v111_v45 }
  0x5b   :  { %1059 = vmatprep.subr.bf16.mxu0 %v1473_v57  ;;  %1102 = vmatprep.subr.bf16.mxu1 %v1475_v58  ;;  %v1462_v57 = vcombine.low %v104_v46, %v112_v47  ;;  %v1477_v58 = vcombine.high %v119_v52, %v127_v53  ;;  %v1479_v59 = vcombine.high %v120_v54, %v128_v55 }
  0x5e   :  { %1060 = vmatpush1.bf16.msra.mxu0 %v1472_v63  ;;  %1103 = vmatpush1.bf16.msra.mxu1 %v1474_v0  ;;  %v144_v63 = vld [vmem:[%s2042_s1 + $0x3f8] sm:$0xff]  ;;  %v1476_v0 = vcombine.low %v119_v52, %v127_v53 }
  0x5f   :  { %1061 = vmatprep.subr.bf16.mxu0 %v1489_v1  ;;  %1104 = vmatprep.subr.bf16.mxu1 %v1491_v2  ;;  %v1478_v1 = vcombine.low %v120_v54, %v128_v55  ;;  %v1493_v2 = vcombine.high %v135_v60, %v143_v61  ;;  %v1495_v4 = vcombine.high %v136_v62, %v144_v63 }
  0x60   :  { %v1494_v6 = vcombine.low %v136_v62, %v144_v63 }
  0x62   :  { %1062 = vmatpush1.bf16.msra.mxu0 %v1488_v8  ;;  %1105 = vmatpush1.bf16.msra.mxu1 %v1490_v9  ;;  %v150_v8 = vshrl.u32 %v149_v7, 7 }
  0x63   :  { %1133 = vmatprep.subr.bf16.mxu0 %v1381_v11  ;;  %1176 = vmatprep.subr.bf16.mxu1 %v1383_v12  ;;  %v146_v11 = vld [vmem:[%s2044_s2 + $0x8] sm:$0xff] }
  0x64   :  { %v151_v9 = vsub.s32 0, %v150_v8  ;;  %v159_v13 = vsub.s32 2, %v150_v8  ;;  %v155_v14 = vsub.s32 1, %v150_v8  ;;  %v163_v15 = vsub.s32 3, %v150_v8 }
  0x65   :  { %1080 = vmatmul.mubr.bf16.vlgmr.msra.gmra.mrb[8].mxu0 %v1670_v10  ;;  %1123 = vmatmul.mubr.bf16.vlgmr.msra.gmra.mrb[8].mxu1 %v1670_v10  ;;  %v171_v21 = vsub.s32 5, %v150_v8  ;;  %v179_v22 = vsub.s32 7, %v150_v8 }
  0x66   :  { %1134 = vmatpush1.bf16.msra.mxu0 %v1380_v17  ;;  %1177 = vmatpush1.bf16.msra.mxu1 %v1382_v18  ;;  %v1959_v12 = vrot.slane %v146_v11, %v151_v9  ;;  %v1961_v16 = vrot.slane %v146_v11, %v159_v13  ;;  %v1963_v17 = vrot.slane %v146_v11, %v155_v14 }
  0x67   :  { %1135 = vmatprep.subr.bf16.mxu0 %v1397_v19  ;;  %1178 = vmatprep.subr.bf16.mxu1 %v1399_v20  ;;  %v1965_v18 = vrot.slane %v146_v11, %v163_v15  ;;  %v167_v19 = vsub.s32 4, %v150_v8  ;;  %v175_v20 = vsub.s32 6, %v150_v8  ;;  %v1971_v24 = vrot.slane %v146_v11, %v171_v21 }
  0x68   :  { %1165 = vmatprep.mubr.bf16.mxu0 %v1530_v3  ;;  %1208 = vmatprep.mubr.bf16.mxu1 %v1530_v3  ;;  %v88_v3 = vld [vmem:[%s2042_s1 + $0x238] sm:$0xff] }
  0x69   :  { %v1447_v43 = vcombine.high %v88_v3, %v96_v39  ;;  %v1446_v49 = vcombine.low %v88_v3, %v96_v39  ;;  %v1969_v23 = vrot.slane %v146_v11, %v175_v20 }
  0x6a   :  { %1136 = vmatpush1.bf16.msra.mxu0 %v1396_v25  ;;  %1179 = vmatpush1.bf16.msra.mxu1 %v1398_v26  ;;  %v1973_v25 = vrot.slane %v146_v11, %v179_v22  ;;  %v145_v26 = vld [vmem:[%s2044_s2] sm:$0xff] }
  0x6b   :  { %1137 = vmatprep.subr.bf16.mxu0 %v1413_v27  ;;  %1180 = vmatprep.subr.bf16.mxu1 %v1415_v28  ;;  %v152_v27 = vrot.slane %v145_v26, %v151_v9  ;;  %v160_v28 = vrot.slane %v145_v26, %v159_v13  ;;  %v156_v29 = vrot.slane %v145_v26, %v155_v14 }
  0x6c   :  { %v164_v30 = vrot.slane %v145_v26, %v163_v15  ;;  %v172_v60 = vrot.slane %v145_v26, %v171_v21  ;;  %v180_v61 = vrot.slane %v145_v26, %v179_v22 }
  0x6e   :  { %1138 = vmatpush1.bf16.msra.mxu0 %v1412_v33  ;;  %1181 = vmatpush1.bf16.msra.mxu1 %v1414_v34 }
  0x6f   :  { %1139 = vmatprep.subr.bf16.mxu0 %v1429_v35  ;;  %1182 = vmatprep.subr.bf16.mxu1 %v1431_v36 }
  0x72   :  { %1140 = vmatpush1.bf16.msra.mxu0 %v1428_v40  ;;  %1183 = vmatpush1.bf16.msra.mxu1 %v1430_v41 }
  0x73   :  { %1141 = vmatprep.subr.bf16.mxu0 %v1445_v42  ;;  %1184 = vmatprep.subr.bf16.mxu1 %v1447_v43 }
  0x76   :  { %1142 = vmatpush1.bf16.msra.mxu0 %v1444_v48  ;;  %1185 = vmatpush1.bf16.msra.mxu1 %v1446_v49 }
  0x77   :  { %1143 = vmatprep.subr.bf16.mxu0 %v1461_v50  ;;  %1186 = vmatprep.subr.bf16.mxu1 %v1463_v51 }
  0x7a   :  { %1144 = vmatpush1.bf16.msra.mxu0 %v1460_v56  ;;  %1187 = vmatpush1.bf16.msra.mxu1 %v1462_v57 }
  0x7b   :  { %1145 = vmatprep.subr.bf16.mxu0 %v1477_v58  ;;  %1188 = vmatprep.subr.bf16.mxu1 %v1479_v59  ;;  %v168_v58 = vrot.slane %v145_v26, %v167_v19  ;;  %v176_v59 = vrot.slane %v145_v26, %v175_v20 }
  0x7e   :  { %1146 = vmatpush1.bf16.msra.mxu0 %v1476_v0  ;;  %1189 = vmatpush1.bf16.msra.mxu1 %v1478_v1 }
  0x7f   :  { %1147 = vmatprep.subr.bf16.mxu0 %v1493_v2  ;;  %1190 = vmatprep.subr.bf16.mxu1 %v1495_v4 }
  0x82   :  { %1148 = vmatpush1.bf16.msra.mxu0 %v1492_v5  ;;  %1191 = vmatpush1.bf16.msra.mxu1 %v1494_v6 }
  0x85   :  { %1166 = vmatmul.mubr.bf16.vlgmr.msra.gmra.mrb[12].mxu0 %v1670_v10  ;;  %1209 = vmatmul.mubr.bf16.vlgmr.msra.gmra.mrb[12].mxu1 %v1670_v10  ;;  %v1967_v10 = vrot.slane %v146_v11, %v167_v19 }
  0xf8   :  { %v909_v31 = vpop.f32.mrb[0].mxu0  ;;  %v952_v33 = vpop.f32.mrb[0].mxu1 }
  0xf9   :  { %v910_v32 = vadd.f32 %v909_v31, %v152_v27  ;;  %v911_v34 = vpop.f32.mrb[1].mxu0  ;;  %v953_v35 = vadd.f32 %v952_v33, %v160_v28  ;;  %v954_v37 = vpop.f32.mrb[1].mxu1 }
  0xfa   :  { %v912_v36 = vadd.f32 %v911_v34, %v156_v29  ;;  %v913_v38 = vpop.f32.mrb[2].mxu0  ;;  %v955_v39 = vadd.f32 %v954_v37, %v164_v30  ;;  %v956_v41 = vpop.f32.mrb[2].mxu1 }
  0xfb   :  { %v1219_v3 = vmax.f32 %v910_v32, 0.0  ;;  %v914_v40 = vadd.f32 %v913_v38, %v152_v27  ;;  %v915_v42 = vpop.f32.mrb[3].mxu0  ;;  %v1221_v43 = vmax.f32 %v953_v35, 0.0  ;;  %v957_v45 = vadd.f32 %v956_v41, %v160_v28  ;;  %v958_v47 = vpop.f32.mrb[3].mxu1 }
  0xfc   :  { %v1220_v44 = vmax.f32 %v912_v36, 0.0  ;;  %v916_v46 = vadd.f32 %v915_v42, %v156_v29  ;;  %v1222_v48 = vmax.f32 %v955_v39, 0.0  ;;  %v959_v50 = vadd.f32 %v958_v47, %v164_v30 }
  0xfd   :  { %v1235_v49 = vmax.f32 %v914_v40, 0.0  ;;  %v1237_v52 = vmax.f32 %v957_v45, 0.0 }
  0xfe   :  { %v1512_v51 = vpack.c.bf16 %v1220_v44, %v1219_v3  ;;  %v1236_v53 = vmax.f32 %v916_v46, 0.0  ;;  %v1513_v54 = vpack.c.bf16 %v1222_v48, %v1221_v43  ;;  %v1238_v55 = vmax.f32 %v959_v50, 0.0 }
 0x100   :  { %1347 = vst [vmem:[%s2045_s3] sm:$0xff] %v1512_v51  ;;  %v1520_v56 = vpack.c.bf16 %v1236_v53, %v1235_v49  ;;  %1348 = vst [vmem:[%s2045_s3 + $0x8] sm:$0xff] %v1513_v54  ;;  %v1521_v57 = vpack.c.bf16 %v1238_v55, %v1237_v52 }
 0x102   :  { %1355 = vst [vmem:[%s2045_s3 + $0x40] sm:$0xff] %v1520_v56  ;;  %1356 = vst [vmem:[%s2045_s3 + $0x48] sm:$0xff] %v1521_v57 }
 0x118   :  { %v995_v62 = vpop.f32.mrb[4].mxu0  ;;  %v1038_v0 = vpop.f32.mrb[4].mxu1 }
 0x119   :  { %v996_v63 = vadd.f32 %v995_v62, %v168_v58  ;;  %v997_v1 = vpop.f32.mrb[5].mxu0  ;;  %v1039_v2 = vadd.f32 %v1038_v0, %v176_v59  ;;  %v1040_v5 = vpop.f32.mrb[5].mxu1 }
 0x11a   :  { %v998_v4 = vadd.f32 %v997_v1, %v172_v60  ;;  %v999_v6 = vpop.f32.mrb[6].mxu0  ;;  %v1041_v8 = vadd.f32 %v1040_v5, %v180_v61  ;;  %v1042_v11 = vpop.f32.mrb[6].mxu1 }
 0x11b   :  { %v1223_v7 = vmax.f32 %v996_v63, 0.0  ;;  %v1000_v9 = vadd.f32 %v999_v6, %v168_v58  ;;  %v1001_v13 = vpop.f32.mrb[7].mxu0  ;;  %v1225_v14 = vmax.f32 %v1039_v2, 0.0  ;;  %v1043_v27 = vadd.f32 %v1042_v11, %v176_v59  ;;  %v1044_v20 = vpop.f32.mrb[7].mxu1 }
 0x11c   :  { %v1224_v15 = vmax.f32 %v998_v4, 0.0  ;;  %v1002_v19 = vadd.f32 %v1001_v13, %v172_v60  ;;  %v1226_v21 = vmax.f32 %v1041_v8, 0.0  ;;  %v1045_v26 = vadd.f32 %v1044_v20, %v180_v61 }
 0x11d   :  { %v1239_v22 = vmax.f32 %v1000_v9, 0.0  ;;  %v1241_v29 = vmax.f32 %v1043_v27, 0.0 }
 0x11e   :  { %v1514_v28 = vpack.c.bf16 %v1224_v15, %v1223_v7  ;;  %v1240_v30 = vmax.f32 %v1002_v19, 0.0  ;;  %v1515_v31 = vpack.c.bf16 %v1226_v21, %v1225_v14  ;;  %v1242_v32 = vmax.f32 %v1045_v26, 0.0 }
 0x120   :  { %1349 = vst [vmem:[%s2045_s3 + $0x10] sm:$0xff] %v1514_v28  ;;  %v1522_v33 = vpack.c.bf16 %v1240_v30, %v1239_v22  ;;  %1350 = vst [vmem:[%s2045_s3 + $0x18] sm:$0xff] %v1515_v31  ;;  %v1523_v34 = vpack.c.bf16 %v1242_v32, %v1241_v29 }
 0x122   :  { %1357 = vst [vmem:[%s2045_s3 + $0x50] sm:$0xff] %v1522_v33  ;;  %1358 = vst [vmem:[%s2045_s3 + $0x58] sm:$0xff] %v1523_v34 }
 0x138   :  { %v1081_v35 = vpop.f32.mrb[8].mxu0  ;;  %v1124_v37 = vpop.f32.mrb[8].mxu1 }
 0x139   :  { %v1082_v36 = vadd.f32 %v1081_v35, %v1959_v12  ;;  %v1083_v38 = vpop.f32.mrb[9].mxu0  ;;  %v1125_v3 = vadd.f32 %v1124_v37, %v1961_v16  ;;  %v1126_v40 = vpop.f32.mrb[9].mxu1 }
 0x13a   :  { %v1084_v39 = vadd.f32 %v1083_v38, %v1963_v17  ;;  %v1085_v41 = vpop.f32.mrb[10].mxu0  ;;  %v1127_v43 = vadd.f32 %v1126_v40, %v1965_v18  ;;  %v1128_v45 = vpop.f32.mrb[10].mxu1 }
 0x13b   :  { %v1227_v42 = vmax.f32 %v1082_v36, 0.0  ;;  %v1086_v44 = vadd.f32 %v1085_v41, %v1959_v12  ;;  %v1087_v46 = vpop.f32.mrb[11].mxu0  ;;  %v1229_v47 = vmax.f32 %v1125_v3, 0.0  ;;  %v1129_v49 = vadd.f32 %v1128_v45, %v1961_v16  ;;  %v1130_v51 = vpop.f32.mrb[11].mxu1 }
 0x13c   :  { %v1228_v48 = vmax.f32 %v1084_v39, 0.0  ;;  %v1088_v50 = vadd.f32 %v1087_v46, %v1963_v17  ;;  %v1230_v52 = vmax.f32 %v1127_v43, 0.0  ;;  %v1131_v54 = vadd.f32 %v1130_v51, %v1965_v18 }
 0x13d   :  { %v1243_v53 = vmax.f32 %v1086_v44, 0.0  ;;  %v1245_v56 = vmax.f32 %v1129_v49, 0.0 }
 0x13e   :  { %v1516_v55 = vpack.c.bf16 %v1228_v48, %v1227_v42  ;;  %v1244_v57 = vmax.f32 %v1088_v50, 0.0  ;;  %v1517_v58 = vpack.c.bf16 %v1230_v52, %v1229_v47  ;;  %v1246_v59 = vmax.f32 %v1131_v54, 0.0 }
 0x140   :  { %1351 = vst [vmem:[%s2045_s3 + $0x20] sm:$0xff] %v1516_v55  ;;  %v1524_v12 = vpack.c.bf16 %v1244_v57, %v1243_v53  ;;  %1352 = vst [vmem:[%s2045_s3 + $0x28] sm:$0xff] %v1517_v58  ;;  %v1525_v16 = vpack.c.bf16 %v1246_v59, %v1245_v56 }
 0x142   :  { %1359 = vst [vmem:[%s2045_s3 + $0x60] sm:$0xff] %v1524_v12  ;;  %1360 = vst [vmem:[%s2045_s3 + $0x68] sm:$0xff] %v1525_v16 }
 0x158   :  { %v1167_v17 = vpop.f32.mrb[12].mxu0  ;;  %v1210_v60 = vpop.f32.mrb[12].mxu1 }
 0x159   :  { %v1168_v18 = vadd.f32 %v1167_v17, %v1967_v10  ;;  %v1169_v61 = vpop.f32.mrb[13].mxu0  ;;  %v1211_v62 = vadd.f32 %v1210_v60, %v1969_v23  ;;  %v1212_v0 = vpop.f32.mrb[13].mxu1 }
 0x15a   :  { %v1170_v63 = vadd.f32 %v1169_v61, %v1971_v24  ;;  %v1171_v1 = vpop.f32.mrb[14].mxu0  ;;  %v1213_v4 = vadd.f32 %v1212_v0, %v1973_v25  ;;  %v1214_v6 = vpop.f32.mrb[14].mxu1 }
 0x15b   :  { %v1231_v2 = vmax.f32 %v1168_v18, 0.0  ;;  %v1172_v5 = vadd.f32 %v1171_v1, %v1967_v10  ;;  %v1173_v7 = vpop.f32.mrb[15].mxu0  ;;  %v1233_v8 = vmax.f32 %v1211_v62, 0.0  ;;  %v1215_v11 = vadd.f32 %v1214_v6, %v1969_v23  ;;  %v1216_v14 = vpop.f32.mrb[15].mxu1 }
 0x15c   :  { %v1232_v9 = vmax.f32 %v1170_v63, 0.0  ;;  %v1174_v13 = vadd.f32 %v1173_v7, %v1971_v24  ;;  %v1234_v15 = vmax.f32 %v1213_v4, 0.0  ;;  %v1217_v19 = vadd.f32 %v1216_v14, %v1973_v25 }
 0x15d   :  { %v1247_v27 = vmax.f32 %v1172_v5, 0.0  ;;  %v1249_v21 = vmax.f32 %v1215_v11, 0.0 }
 0x15e   :  { %v1518_v20 = vpack.c.bf16 %v1232_v9, %v1231_v2  ;;  %v1248_v22 = vmax.f32 %v1174_v13, 0.0  ;;  %v1519_v26 = vpack.c.bf16 %v1234_v15, %v1233_v8  ;;  %v1250_v28 = vmax.f32 %v1217_v19, 0.0 }
 0x160   :  { %1353 = vst [vmem:[%s2045_s3 + $0x30] sm:$0xff] %v1518_v20  ;;  %v1526_v10 = vpack.c.bf16 %v1248_v22, %v1247_v27  ;;  %1354 = vst [vmem:[%s2045_s3 + $0x38] sm:$0xff] %v1519_v26  ;;  %v1527_v23 = vpack.c.bf16 %v1250_v28, %v1249_v21 }
 0x162   :  { %1361 = vst [vmem:[%s2045_s3 + $0x70] sm:$0xff] %v1526_v10  ;;  %1362 = vst [vmem:[%s2045_s3 + $0x78] sm:$0xff] %v1527_v23 }

// kernel: vae_forward.13
= control target key start
LH: loop header
LB: loop body
LE: loop exit
PB: predicated region body
PF: predicated region fallthrough
CT: control target
= control target key end

     0   :  { %s1283_s1 = inlined_call_operand.vmem [shape: bf16[512,256], index: 1, kind: input, shape index: {}]   ;;  %s1284_s0 = inlined_call_operand.vmem [shape: bf16[64,512], index: 0, kind: input, shape index: {}]   ;;  %s1285_s2 = inlined_call_operand.vmem [shape: f32[1,256], index: 2, kind: input, shape index: {}]   ;;  %s1286_s3 = inlined_call_operand.vmem [shape: bf16[64,256], index: 3, kind: output, shape index: {}]  }
   0x1   :  { %v856_v0 = vld [vmem:[%s1283_s1 + $0x4] ss:$8 sps:$4 sm:$0xff]   ;;  %v860_v2 = vld [vmem:[%s1283_s1] ss:$8 sps:$4 sm:$0xff]   ;;  %v862_v4 = vld [vmem:[%s1283_s1 + $0x14] ss:$8 sps:$4 sm:$0xff]  }
   0x2   :  { %v858_v1 = vld [vmem:[%s1283_s1 + $0x104] ss:$8 sps:$4 sm:$0xff]   ;;  %506 = vmatprep.subr.bf16.mxu1 %v856_v0  ;;  %v861_v3 = vld [vmem:[%s1283_s1 + $0x100] ss:$8 sps:$4 sm:$0xff]   ;;  %v864_v5 = vld [vmem:[%s1283_s1 + $0x114] ss:$8 sps:$4 sm:$0xff]  }
   0x3   :  { %579 = vmatprep.subr.bf16.mxu0 %v858_v1  ;;  %507 = vmatpush1.bf16.msra.mxu1 %v860_v2  ;;  %v866_v6 = vld [vmem:[%s1283_s1 + $0x10] ss:$8 sps:$4 sm:$0xff]   ;;  %v868_v8 = vld [vmem:[%s1283_s1 + $0x24] ss:$8 sps:$4 sm:$0xff]   ;;  %v872_v10 = vld [vmem:[%s1283_s1 + $0x20] ss:$8 sps:$4 sm:$0xff]  }
   0x4   :  { %580 = vmatpush1.bf16.msra.mxu0 %v861_v3  ;;  %508 = vmatprep.subr.bf16.mxu1 %v862_v4  ;;  %v867_v7 = vld [vmem:[%s1283_s1 + $0x110] ss:$8 sps:$4 sm:$0xff]   ;;  %v870_v9 = vld [vmem:[%s1283_s1 + $0x124] ss:$8 sps:$4 sm:$0xff]   ;;  %v873_v11 = vld [vmem:[%s1283_s1 + $0x120] ss:$8 sps:$4 sm:$0xff]  }
   0x5   :  { %581 = vmatprep.subr.bf16.mxu0 %v864_v5  ;;  %v874_v12 = vld [vmem:[%s1283_s1 + $0x34] ss:$8 sps:$4 sm:$0xff]   ;;  %v878_v14 = vld [vmem:[%s1283_s1 + $0x30] ss:$8 sps:$4 sm:$0xff]   ;;  %v880_v16 = vld [vmem:[%s1283_s1 + $0x44] ss:$8 sps:$4 sm:$0xff]  }
   0x6   :  { %v876_v13 = vld [vmem:[%s1283_s1 + $0x134] ss:$8 sps:$4 sm:$0xff]   ;;  %v879_v15 = vld [vmem:[%s1283_s1 + $0x130] ss:$8 sps:$4 sm:$0xff]   ;;  %v882_v17 = vld [vmem:[%s1283_s1 + $0x144] ss:$8 sps:$4 sm:$0xff]  }
   0x7   :  { %509 = vmatpush1.bf16.msra.mxu1 %v866_v6  ;;  %v884_v18 = vld [vmem:[%s1283_s1 + $0x40] ss:$8 sps:$4 sm:$0xff]   ;;  %v886_v20 = vld [vmem:[%s1283_s1 + $0x54] ss:$8 sps:$4 sm:$0xff]   ;;  %v890_v22 = vld [vmem:[%s1283_s1 + $0x50] ss:$8 sps:$4 sm:$0xff]  }
   0x8   :  { %582 = vmatpush1.bf16.msra.mxu0 %v867_v7  ;;  %510 = vmatprep.subr.bf16.mxu1 %v868_v8  ;;  %v885_v19 = vld [vmem:[%s1283_s1 + $0x140] ss:$8 sps:$4 sm:$0xff]   ;;  %v888_v21 = vld [vmem:[%s1283_s1 + $0x154] ss:$8 sps:$4 sm:$0xff]   ;;  %v891_v23 = vld [vmem:[%s1283_s1 + $0x150] ss:$8 sps:$4 sm:$0xff]  }
   0x9   :  { %583 = vmatprep.subr.bf16.mxu0 %v870_v9  ;;  %v892_v24 = vld [vmem:[%s1283_s1 + $0x64] ss:$8 sps:$4 sm:$0xff]   ;;  %v896_v26 = vld [vmem:[%s1283_s1 + $0x60] ss:$8 sps:$4 sm:$0xff]   ;;  %v898_v28 = vld [vmem:[%s1283_s1 + $0x74] ss:$8 sps:$4 sm:$0xff]  }
   0xa   :  { %v894_v25 = vld [vmem:[%s1283_s1 + $0x164] ss:$8 sps:$4 sm:$0xff]   ;;  %v897_v27 = vld [vmem:[%s1283_s1 + $0x160] ss:$8 sps:$4 sm:$0xff]   ;;  %v900_v29 = vld [vmem:[%s1283_s1 + $0x174] ss:$8 sps:$4 sm:$0xff]  }
   0xb   :  { %511 = vmatpush1.bf16.msra.mxu1 %v872_v10  ;;  %v902_v30 = vld [vmem:[%s1283_s1 + $0x70] ss:$8 sps:$4 sm:$0xff]   ;;  %v904_v32 = vld [vmem:[%s1283_s1 + $0x84] ss:$8 sps:$4 sm:$0xff]   ;;  %v908_v34 = vld [vmem:[%s1283_s1 + $0x80] ss:$8 sps:$4 sm:$0xff]  }
   0xc   :  { %584 = vmatpush1.bf16.msra.mxu0 %v873_v11  ;;  %512 = vmatprep.subr.bf16.mxu1 %v874_v12  ;;  %v903_v31 = vld [vmem:[%s1283_s1 + $0x170] ss:$8 sps:$4 sm:$0xff]   ;;  %v906_v33 = vld [vmem:[%s1283_s1 + $0x184] ss:$8 sps:$4 sm:$0xff]   ;;  %v909_v35 = vld [vmem:[%s1283_s1 + $0x180] ss:$8 sps:$4 sm:$0xff]  }
   0xd   :  { %585 = vmatprep.subr.bf16.mxu0 %v876_v13  ;;  %v910_v36 = vld [vmem:[%s1283_s1 + $0x94] ss:$8 sps:$4 sm:$0xff]   ;;  %v914_v38 = vld [vmem:[%s1283_s1 + $0x90] ss:$8 sps:$4 sm:$0xff]   ;;  %v916_v40 = vld [vmem:[%s1283_s1 + $0xa4] ss:$8 sps:$4 sm:$0xff]  }
   0xe   :  { %v912_v37 = vld [vmem:[%s1283_s1 + $0x194] ss:$8 sps:$4 sm:$0xff]   ;;  %v915_v39 = vld [vmem:[%s1283_s1 + $0x190] ss:$8 sps:$4 sm:$0xff]   ;;  %v918_v41 = vld [vmem:[%s1283_s1 + $0x1a4] ss:$8 sps:$4 sm:$0xff]  }
   0xf   :  { %513 = vmatpush1.bf16.msra.mxu1 %v878_v14  ;;  %v920_v42 = vld [vmem:[%s1283_s1 + $0xa0] ss:$8 sps:$4 sm:$0xff]   ;;  %v922_v44 = vld [vmem:[%s1283_s1 + $0xb4] ss:$8 sps:$4 sm:$0xff]   ;;  %v926_v46 = vld [vmem:[%s1283_s1 + $0xb0] ss:$8 sps:$4 sm:$0xff]  }
  0x10   :  { %586 = vmatpush1.bf16.msra.mxu0 %v879_v15  ;;  %514 = vmatprep.subr.bf16.mxu1 %v880_v16  ;;  %v921_v43 = vld [vmem:[%s1283_s1 + $0x1a0] ss:$8 sps:$4 sm:$0xff]   ;;  %v924_v45 = vld [vmem:[%s1283_s1 + $0x1b4] ss:$8 sps:$4 sm:$0xff]   ;;  %v927_v47 = vld [vmem:[%s1283_s1 + $0x1b0] ss:$8 sps:$4 sm:$0xff]   ;;  %v96_v16 = vlaneseq }
  0x11   :  { %587 = vmatprep.subr.bf16.mxu0 %v882_v17  ;;  %v928_v48 = vld [vmem:[%s1283_s1 + $0xc4] ss:$8 sps:$4 sm:$0xff]   ;;  %v932_v52 = vld [vmem:[%s1283_s1 + $0xc0] ss:$8 sps:$4 sm:$0xff]   ;;  %v934_v54 = vld [vmem:[%s1283_s1 + $0xd4] ss:$8 sps:$4 sm:$0xff]  }
  0x12   :  { %v954_v49 = vld [vmem:[%s1284_s0 + $0x4] ss:$16 sps:$4 sm:$0xff]   ;;  %v957_v51 = vld [vmem:[%s1284_s0 + $0xc] ss:$16 sps:$4 sm:$0xff]   ;;  %v933_v53 = vld [vmem:[%s1283_s1 + $0x1c0] ss:$8 sps:$4 sm:$0xff]  }
  0x13   :  { %515 = vmatpush1.bf16.msra.mxu1 %v884_v18  ;;  %v930_v50 = vld [vmem:[%s1283_s1 + $0x1c4] ss:$8 sps:$4 sm:$0xff]   ;;  %538 = vmatprep.mubr.bf16.mxu1 %v954_v49  ;;  %v936_v55 = vld [vmem:[%s1283_s1 + $0x1d4] ss:$8 sps:$4 sm:$0xff]   ;;  %v938_v56 = vld [vmem:[%s1283_s1 + $0xd0] ss:$8 sps:$4 sm:$0xff]  }
  0x14   :  { %588 = vmatpush1.bf16.msra.mxu0 %v885_v19  ;;  %516 = vmatprep.subr.bf16.mxu1 %v886_v20  ;;  %v939_v57 = vld [vmem:[%s1283_s1 + $0x1d0] ss:$8 sps:$4 sm:$0xff]   ;;  %v940_v58 = vld [vmem:[%s1283_s1 + $0xe4] ss:$8 sps:$4 sm:$0xff]   ;;  %v944_v60 = vld [vmem:[%s1283_s1 + $0xe0] ss:$8 sps:$4 sm:$0xff]  }
  0x15   :  { %589 = vmatprep.subr.bf16.mxu0 %v888_v21  ;;  %611 = vmatprep.mubr.bf16.mxu0 %v957_v51  ;;  %v942_v59 = vld [vmem:[%s1283_s1 + $0x1e4] ss:$8 sps:$4 sm:$0xff]   ;;  %v945_v61 = vld [vmem:[%s1283_s1 + $0x1e0] ss:$8 sps:$4 sm:$0xff]   ;;  %v946_v62 = vld [vmem:[%s1283_s1 + $0xf4] ss:$8 sps:$4 sm:$0xff]  }
  0x16   :  { %v948_v63 = vld [vmem:[%s1283_s1 + $0x1f4] ss:$8 sps:$4 sm:$0xff]   ;;  %v950_v0 = vld [vmem:[%s1283_s1 + $0xf0] ss:$8 sps:$4 sm:$0xff]   ;;  %v97_v17 = vshrl.u32 %v96_v16, 7 }
  0x17   :  { %517 = vmatpush1.bf16.msra.mxu1 %v890_v22  ;;  %v951_v1 = vld [vmem:[%s1283_s1 + $0x1f0] ss:$8 sps:$4 sm:$0xff]   ;;  %v958_v4 = vld [vmem:[%s1284_s0 + $0x24] ss:$16 sps:$4 sm:$0xff]   ;;  %v960_v5 = vld [vmem:[%s1284_s0 + $0x2c] ss:$16 sps:$4 sm:$0xff]  }
  0x18   :  { %590 = vmatpush1.bf16.msra.mxu0 %v891_v23  ;;  %518 = vmatprep.subr.bf16.mxu1 %v892_v24  ;;  %v952_v2 = vld [vmem:[%s1284_s0] ss:$16 sps:$4 sm:$0xff]   ;;  %v955_v3 = vld [vmem:[%s1284_s0 + $0x8] ss:$16 sps:$4 sm:$0xff]   ;;  %v964_v8 = vld [vmem:[%s1284_s0 + $0x44] ss:$16 sps:$4 sm:$0xff]  }
  0x19   :  { %591 = vmatprep.subr.bf16.mxu0 %v894_v25  ;;  %v962_v6 = vld [vmem:[%s1284_s0 + $0x20] ss:$16 sps:$4 sm:$0xff]   ;;  %v963_v7 = vld [vmem:[%s1284_s0 + $0x28] ss:$16 sps:$4 sm:$0xff]   ;;  %v966_v9 = vld [vmem:[%s1284_s0 + $0x4c] ss:$16 sps:$4 sm:$0xff]  }
  0x1a   :  { %v968_v10 = vld [vmem:[%s1284_s0 + $0x40] ss:$16 sps:$4 sm:$0xff]   ;;  %v969_v11 = vld [vmem:[%s1284_s0 + $0x48] ss:$16 sps:$4 sm:$0xff]   ;;  %v970_v12 = vld [vmem:[%s1284_s0 + $0x64] ss:$16 sps:$4 sm:$0xff]  }
  0x1b   :  { %519 = vmatpush1.bf16.msra.mxu1 %v896_v26  ;;  %v972_v13 = vld [vmem:[%s1284_s0 + $0x6c] ss:$16 sps:$4 sm:$0xff]   ;;  %v974_v14 = vld [vmem:[%s1284_s0 + $0x60] ss:$16 sps:$4 sm:$0xff]   ;;  %v975_v15 = vld [vmem:[%s1284_s0 + $0x68] ss:$16 sps:$4 sm:$0xff]  }
  0x1c   :  { %592 = vmatpush1.bf16.msra.mxu0 %v897_v27  ;;  %520 = vmatprep.subr.bf16.mxu1 %v898_v28  ;;  %v98_v18 = vsub.s32 0, %v97_v17  ;;  %v94_v19 = vld [vmem:[%s1285_s2] sm:$0x3]  ;;  %v102_v20 = vsub.s32 1, %v97_v17 }
  0x1d   :  { %593 = vmatprep.subr.bf16.mxu0 %v900_v29 }
  0x1e   :  { %v1239_v21 = vrot.slane %v94_v19, %v98_v18  ;;  %v1241_v22 = vrot.slane %v94_v19, %v102_v20 }
  0x1f   :  { %521 = vmatpush1.bf16.msra.mxu1 %v902_v30 }
  0x20   :  { %594 = vmatpush1.bf16.msra.mxu0 %v903_v31  ;;  %522 = vmatprep.subr.bf16.mxu1 %v904_v32 }
  0x21   :  { %595 = vmatprep.subr.bf16.mxu0 %v906_v33 }
  0x23   :  { %523 = vmatpush1.bf16.msra.mxu1 %v908_v34 }
  0x24   :  { %596 = vmatpush1.bf16.msra.mxu0 %v909_v35  ;;  %524 = vmatprep.subr.bf16.mxu1 %v910_v36 }
  0x25   :  { %597 = vmatprep.subr.bf16.mxu0 %v912_v37 }
  0x27   :  { %525 = vmatpush1.bf16.msra.mxu1 %v914_v38 }
  0x28   :  { %598 = vmatpush1.bf16.msra.mxu0 %v915_v39  ;;  %526 = vmatprep.subr.bf16.mxu1 %v916_v40 }
  0x29   :  { %599 = vmatprep.subr.bf16.mxu0 %v918_v41 }
  0x2b   :  { %527 = vmatpush1.bf16.msra.mxu1 %v920_v42 }
  0x2c   :  { %600 = vmatpush1.bf16.msra.mxu0 %v921_v43  ;;  %528 = vmatprep.subr.bf16.mxu1 %v922_v44 }
  0x2d   :  { %601 = vmatprep.subr.bf16.mxu0 %v924_v45 }
  0x2f   :  { %529 = vmatpush1.bf16.msra.mxu1 %v926_v46 }
  0x30   :  { %602 = vmatpush1.bf16.msra.mxu0 %v927_v47  ;;  %530 = vmatprep.subr.bf16.mxu1 %v928_v48 }
  0x31   :  { %603 = vmatprep.subr.bf16.mxu0 %v930_v50 }
  0x33   :  { %531 = vmatpush1.bf16.msra.mxu1 %v932_v52 }
  0x34   :  { %604 = vmatpush1.bf16.msra.mxu0 %v933_v53  ;;  %532 = vmatprep.subr.bf16.mxu1 %v934_v54 }
  0x35   :  { %605 = vmatprep.subr.bf16.mxu0 %v936_v55 }
  0x37   :  { %533 = vmatpush1.bf16.msra.mxu1 %v938_v56 }
  0x38   :  { %606 = vmatpush1.bf16.msra.mxu0 %v939_v57  ;;  %534 = vmatprep.subr.bf16.mxu1 %v940_v58 }
  0x39   :  { %607 = vmatprep.subr.bf16.mxu0 %v942_v59 }
  0x3b   :  { %535 = vmatpush1.bf16.msra.mxu1 %v944_v60 }
  0x3c   :  { %608 = vmatpush1.bf16.msra.mxu0 %v945_v61  ;;  %536 = vmatprep.subr.bf16.mxu1 %v946_v62 }
  0x3d   :  { %609 = vmatprep.subr.bf16.mxu0 %v948_v63 }
  0x3f   :  { %537 = vmatpush1.bf16.msra.mxu1 %v950_v0 }
  0x40   :  { %610 = vmatpush1.bf16.msra.mxu0 %v951_v1 }
  0x42   :  { %539 = vmatmul.mubr.bf16.vlgmr.msra.gmra.mrb[0].mxu1 %v952_v2 }
  0x43   :  { %612 = vmatmul.mubr.bf16.vlgmr.msra.gmra.mrb[0].mxu0 %v955_v3  ;;  %548 = vmatprep.mubr.bf16.mxu1 %v958_v4 }
  0x44   :  { %621 = vmatprep.mubr.bf16.mxu0 %v960_v5 }
  0x4a   :  { %549 = vmatmul.mubr.bf16.gmra.mrb[4].mxu1 %v962_v6 }
  0x4b   :  { %622 = vmatmul.mubr.bf16.gmra.mrb[4].mxu0 %v963_v7  ;;  %558 = vmatprep.mubr.bf16.mxu1 %v964_v8 }
  0x4c   :  { %631 = vmatprep.mubr.bf16.mxu0 %v966_v9 }
  0x52   :  { %559 = vmatmul.mubr.bf16.gmra.mrb[8].mxu1 %v968_v10 }
  0x53   :  { %632 = vmatmul.mubr.bf16.gmra.mrb[8].mxu0 %v969_v11  ;;  %568 = vmatprep.mubr.bf16.mxu1 %v970_v12 }
  0x54   :  { %641 = vmatprep.mubr.bf16.mxu0 %v972_v13 }
  0x5a   :  { %569 = vmatmul.mubr.bf16.gmra.mrb[12].mxu1 %v974_v14 }
  0x5b   :  { %642 = vmatmul.mubr.bf16.gmra.mrb[12].mxu0 %v975_v15 }
 0x115   :  { %v540_v23 = vpop.f32.mrb[0].mxu1 }
 0x116   :  { %v613_v24 = vpop.f32.mrb[0].mxu0  ;;  %v541_v25 = vadd.f32 %v540_v23, %v1239_v21  ;;  %v542_v26 = vpop.f32.mrb[1].mxu1 }
 0x117   :  { %v615_v27 = vpop.f32.mrb[1].mxu0  ;;  %v543_v28 = vadd.f32 %v542_v26, %v1241_v22  ;;  %v544_v29 = vpop.f32.mrb[2].mxu1 }
 0x118   :  { %v617_v30 = vpop.f32.mrb[2].mxu0  ;;  %v614_v31 = vadd.f32 %v613_v24, %v541_v25  ;;  %v545_v32 = vadd.f32 %v544_v29, %v1239_v21  ;;  %v546_v33 = vpop.f32.mrb[3].mxu1 }
 0x119   :  { %v619_v34 = vpop.f32.mrb[3].mxu0  ;;  %v616_v35 = vadd.f32 %v615_v27, %v543_v28  ;;  %v547_v36 = vadd.f32 %v546_v33, %v1241_v22 }
 0x11a   :  { %v652_v37 = vmax.f32 %v614_v31, 0.0  ;;  %v618_v38 = vadd.f32 %v617_v30, %v545_v32 }
 0x11b   :  { %v653_v39 = vmax.f32 %v616_v35, 0.0  ;;  %v620_v40 = vadd.f32 %v619_v34, %v547_v36 }
 0x11c   :  { %v654_v41 = vmax.f32 %v618_v38, 0.0 }
 0x11d   :  { %v816_v42 = vpack.c.bf16 %v653_v39, %v652_v37  ;;  %v655_v43 = vmax.f32 %v620_v40, 0.0  ;;  %v550_v44 = vpop.f32.mrb[4].mxu1 }
 0x11e   :  { %v623_v45 = vpop.f32.mrb[4].mxu0  ;;  %v551_v46 = vadd.f32 %v550_v44, %v1239_v21  ;;  %v552_v47 = vpop.f32.mrb[5].mxu1 }
 0x11f   :  { %v625_v48 = vpop.f32.mrb[5].mxu0  ;;  %716 = vst [vmem:[%s1286_s3] sm:$0xff] %v816_v42  ;;  %v817_v49 = vpack.c.bf16 %v655_v43, %v654_v41  ;;  %v553_v50 = vadd.f32 %v552_v47, %v1241_v22  ;;  %v554_v51 = vpop.f32.mrb[6].mxu1 }
 0x120   :  { %v627_v52 = vpop.f32.mrb[6].mxu0  ;;  %v624_v53 = vadd.f32 %v623_v45, %v551_v46  ;;  %v555_v54 = vadd.f32 %v554_v51, %v1239_v21  ;;  %v556_v55 = vpop.f32.mrb[7].mxu1 }
 0x121   :  { %v629_v56 = vpop.f32.mrb[7].mxu0  ;;  %717 = vst [vmem:[%s1286_s3 + $0x8] sm:$0xff] %v817_v49  ;;  %v626_v57 = vadd.f32 %v625_v48, %v553_v50  ;;  %v557_v58 = vadd.f32 %v556_v55, %v1241_v22 }
 0x122   :  { %v656_v59 = vmax.f32 %v624_v53, 0.0  ;;  %v628_v60 = vadd.f32 %v627_v52, %v555_v54 }
 0x123   :  { %v657_v61 = vmax.f32 %v626_v57, 0.0  ;;  %v630_v62 = vadd.f32 %v629_v56, %v557_v58 }
 0x124   :  { %v658_v63 = vmax.f32 %v628_v60, 0.0 }
 0x125   :  { %v818_v0 = vpack.c.bf16 %v657_v61, %v656_v59  ;;  %v659_v1 = vmax.f32 %v630_v62, 0.0  ;;  %v560_v2 = vpop.f32.mrb[8].mxu1 }
 0x126   :  { %v633_v3 = vpop.f32.mrb[8].mxu0  ;;  %v561_v4 = vadd.f32 %v560_v2, %v1239_v21  ;;  %v562_v5 = vpop.f32.mrb[9].mxu1 }
 0x127   :  { %v635_v6 = vpop.f32.mrb[9].mxu0  ;;  %718 = vst [vmem:[%s1286_s3 + $0x10] sm:$0xff] %v818_v0  ;;  %v819_v7 = vpack.c.bf16 %v659_v1, %v658_v63  ;;  %v563_v8 = vadd.f32 %v562_v5, %v1241_v22  ;;  %v564_v9 = vpop.f32.mrb[10].mxu1 }
 0x128   :  { %v637_v10 = vpop.f32.mrb[10].mxu0  ;;  %v634_v11 = vadd.f32 %v633_v3, %v561_v4  ;;  %v565_v12 = vadd.f32 %v564_v9, %v1239_v21  ;;  %v566_v13 = vpop.f32.mrb[11].mxu1 }
 0x129   :  { %v639_v14 = vpop.f32.mrb[11].mxu0  ;;  %719 = vst [vmem:[%s1286_s3 + $0x18] sm:$0xff] %v819_v7  ;;  %v636_v15 = vadd.f32 %v635_v6, %v563_v8  ;;  %v567_v16 = vadd.f32 %v566_v13, %v1241_v22 }
 0x12a   :  { %v660_v17 = vmax.f32 %v634_v11, 0.0  ;;  %v638_v18 = vadd.f32 %v637_v10, %v565_v12 }
 0x12b   :  { %v661_v19 = vmax.f32 %v636_v15, 0.0  ;;  %v640_v20 = vadd.f32 %v639_v14, %v567_v16 }
 0x12c   :  { %v662_v23 = vmax.f32 %v638_v18, 0.0 }
 0x12d   :  { %v820_v24 = vpack.c.bf16 %v661_v19, %v660_v17  ;;  %v663_v25 = vmax.f32 %v640_v20, 0.0  ;;  %v570_v26 = vpop.f32.mrb[12].mxu1 }
 0x12e   :  { %v643_v27 = vpop.f32.mrb[12].mxu0  ;;  %v571_v28 = vadd.f32 %v570_v26, %v1239_v21  ;;  %v572_v29 = vpop.f32.mrb[13].mxu1 }
 0x12f   :  { %v645_v30 = vpop.f32.mrb[13].mxu0  ;;  %720 = vst [vmem:[%s1286_s3 + $0x20] sm:$0xff] %v820_v24  ;;  %v821_v31 = vpack.c.bf16 %v663_v25, %v662_v23  ;;  %v573_v32 = vadd.f32 %v572_v29, %v1241_v22  ;;  %v574_v33 = vpop.f32.mrb[14].mxu1 }
 0x130   :  { %v647_v34 = vpop.f32.mrb[14].mxu0  ;;  %v644_v35 = vadd.f32 %v643_v27, %v571_v28  ;;  %v575_v36 = vadd.f32 %v574_v33, %v1239_v21  ;;  %v576_v37 = vpop.f32.mrb[15].mxu1 }
 0x131   :  { %v649_v38 = vpop.f32.mrb[15].mxu0  ;;  %721 = vst [vmem:[%s1286_s3 + $0x28] sm:$0xff] %v821_v31  ;;  %v646_v39 = vadd.f32 %v645_v30, %v573_v32  ;;  %v577_v40 = vadd.f32 %v576_v37, %v1241_v22 }
 0x132   :  { %v664_v41 = vmax.f32 %v644_v35, 0.0  ;;  %v648_v42 = vadd.f32 %v647_v34, %v575_v36 }
 0x133   :  { %v665_v43 = vmax.f32 %v646_v39, 0.0  ;;  %v650_v44 = vadd.f32 %v649_v38, %v577_v40 }
 0x134   :  { %v666_v45 = vmax.f32 %v648_v42, 0.0 }
 0x135   :  { %v822_v46 = vpack.c.bf16 %v665_v43, %v664_v41  ;;  %v667_v47 = vmax.f32 %v650_v44, 0.0 }
 0x137   :  { %722 = vst [vmem:[%s1286_s3 + $0x30] sm:$0xff] %v822_v46  ;;  %v823_v21 = vpack.c.bf16 %v667_v47, %v666_v45 }
 0x139   :  { %723 = vst [vmem:[%s1286_s3 + $0x38] sm:$0xff] %v823_v21 }

// kernel: vae_forward.11
= control target key start
LH: loop header
LB: loop body
LE: loop exit
PB: predicated region body
PF: predicated region fallthrough
CT: control target
= control target key end

     0   :  { %s3670_s1 = inlined_call_operand.vmem [shape: bf16[2048,256], index: 1, kind: input, shape index: {}]   ;;  %s3671_s0 = inlined_call_operand.vmem [shape: bf16[16,2048], index: 0, kind: input, shape index: {}]   ;;  %s3672_s2 = inlined_call_operand.vmem [shape: f32[1,256], index: 2, kind: input, shape index: {}]   ;;  %s3673_s4 = inlined_call_operand.vmem [shape: f32[16,128], index: 4, kind: output, shape index: {0}]   ;;  %s3674_s5 = inlined_call_operand.vmem [shape: f32[16,128], index: 5, kind: output, shape index: {1}]   ;;  %s3675_s3 = inlined_call_operand.vmem [shape: f32[16,128], index: 3, kind: input, shape index: {}]   ;;  %s3676_s6 = inlined_call_operand.vmem [shape: bf16[16,128], index: 6, kind: output, shape index: {2}]  }
   0x1   :  { %v2359_v0 = vld [vmem:[%s3670_s1 + $0x4] ss:$8 sps:$4 sm:$0xff]   ;;  %v2363_v2 = vld [vmem:[%s3670_s1] ss:$8 sps:$4 sm:$0xff]   ;;  %v2365_v4 = vld [vmem:[%s3670_s1 + $0x14] ss:$8 sps:$4 sm:$0xff]  }
   0x2   :  { %v2361_v1 = vld [vmem:[%s3670_s1 + $0x404] ss:$8 sps:$4 sm:$0xff]   ;;  %1664 = vmatprep.subr.bf16.mxu1 %v2359_v0  ;;  %v2364_v3 = vld [vmem:[%s3670_s1 + $0x400] ss:$8 sps:$4 sm:$0xff]   ;;  %v2367_v5 = vld [vmem:[%s3670_s1 + $0x414] ss:$8 sps:$4 sm:$0xff]  }
   0x3   :  { %1836 = vmatprep.subr.bf16.mxu0 %v2361_v1  ;;  %1665 = vmatpush1.bf16.msra.mxu1 %v2363_v2  ;;  %v2369_v6 = vld [vmem:[%s3670_s1 + $0x10] ss:$8 sps:$4 sm:$0xff]   ;;  %v2371_v8 = vld [vmem:[%s3670_s1 + $0x24] ss:$8 sps:$4 sm:$0xff]   ;;  %v2375_v10 = vld [vmem:[%s3670_s1 + $0x20] ss:$8 sps:$4 sm:$0xff]  }
   0x4   :  { %1837 = vmatpush1.bf16.msra.mxu0 %v2364_v3  ;;  %1666 = vmatprep.subr.bf16.mxu1 %v2365_v4  ;;  %v2370_v7 = vld [vmem:[%s3670_s1 + $0x410] ss:$8 sps:$4 sm:$0xff]   ;;  %v2373_v9 = vld [vmem:[%s3670_s1 + $0x424] ss:$8 sps:$4 sm:$0xff]   ;;  %v2376_v11 = vld [vmem:[%s3670_s1 + $0x420] ss:$8 sps:$4 sm:$0xff]  }
   0x5   :  { %1838 = vmatprep.subr.bf16.mxu0 %v2367_v5  ;;  %v2377_v12 = vld [vmem:[%s3670_s1 + $0x34] ss:$8 sps:$4 sm:$0xff]   ;;  %v2381_v14 = vld [vmem:[%s3670_s1 + $0x30] ss:$8 sps:$4 sm:$0xff]   ;;  %v2383_v16 = vld [vmem:[%s3670_s1 + $0x44] ss:$8 sps:$4 sm:$0xff]  }
   0x6   :  { %v2379_v13 = vld [vmem:[%s3670_s1 + $0x434] ss:$8 sps:$4 sm:$0xff]   ;;  %v2382_v15 = vld [vmem:[%s3670_s1 + $0x430] ss:$8 sps:$4 sm:$0xff]   ;;  %v2385_v17 = vld [vmem:[%s3670_s1 + $0x444] ss:$8 sps:$4 sm:$0xff]  }
   0x7   :  { %1667 = vmatpush1.bf16.msra.mxu1 %v2369_v6  ;;  %v2387_v18 = vld [vmem:[%s3670_s1 + $0x40] ss:$8 sps:$4 sm:$0xff]   ;;  %v2389_v20 = vld [vmem:[%s3670_s1 + $0x54] ss:$8 sps:$4 sm:$0xff]   ;;  %v2393_v22 = vld [vmem:[%s3670_s1 + $0x50] ss:$8 sps:$4 sm:$0xff]  }
   0x8   :  { %1839 = vmatpush1.bf16.msra.mxu0 %v2370_v7  ;;  %1668 = vmatprep.subr.bf16.mxu1 %v2371_v8  ;;  %v2388_v19 = vld [vmem:[%s3670_s1 + $0x440] ss:$8 sps:$4 sm:$0xff]   ;;  %v2391_v21 = vld [vmem:[%s3670_s1 + $0x454] ss:$8 sps:$4 sm:$0xff]   ;;  %v2394_v23 = vld [vmem:[%s3670_s1 + $0x450] ss:$8 sps:$4 sm:$0xff]  }
   0x9   :  { %1840 = vmatprep.subr.bf16.mxu0 %v2373_v9  ;;  %v2395_v24 = vld [vmem:[%s3670_s1 + $0x64] ss:$8 sps:$4 sm:$0xff]   ;;  %v2399_v26 = vld [vmem:[%s3670_s1 + $0x60] ss:$8 sps:$4 sm:$0xff]   ;;  %v2401_v28 = vld [vmem:[%s3670_s1 + $0x74] ss:$8 sps:$4 sm:$0xff]  }
   0xa   :  { %v2397_v25 = vld [vmem:[%s3670_s1 + $0x464] ss:$8 sps:$4 sm:$0xff]   ;;  %v2400_v27 = vld [vmem:[%s3670_s1 + $0x460] ss:$8 sps:$4 sm:$0xff]   ;;  %v2403_v29 = vld [vmem:[%s3670_s1 + $0x474] ss:$8 sps:$4 sm:$0xff]  }
   0xb   :  { %1669 = vmatpush1.bf16.msra.mxu1 %v2375_v10  ;;  %v2405_v30 = vld [vmem:[%s3670_s1 + $0x70] ss:$8 sps:$4 sm:$0xff]   ;;  %v2407_v32 = vld [vmem:[%s3670_s1 + $0x84] ss:$8 sps:$4 sm:$0xff]   ;;  %v2411_v34 = vld [vmem:[%s3670_s1 + $0x80] ss:$8 sps:$4 sm:$0xff]  }
   0xc   :  { %1841 = vmatpush1.bf16.msra.mxu0 %v2376_v11  ;;  %1670 = vmatprep.subr.bf16.mxu1 %v2377_v12  ;;  %v2406_v31 = vld [vmem:[%s3670_s1 + $0x470] ss:$8 sps:$4 sm:$0xff]   ;;  %v2409_v33 = vld [vmem:[%s3670_s1 + $0x484] ss:$8 sps:$4 sm:$0xff]   ;;  %v2412_v35 = vld [vmem:[%s3670_s1 + $0x480] ss:$8 sps:$4 sm:$0xff]  }
   0xd   :  { %1842 = vmatprep.subr.bf16.mxu0 %v2379_v13  ;;  %v2413_v36 = vld [vmem:[%s3670_s1 + $0x94] ss:$8 sps:$4 sm:$0xff]   ;;  %v2417_v38 = vld [vmem:[%s3670_s1 + $0x90] ss:$8 sps:$4 sm:$0xff]   ;;  %v2419_v40 = vld [vmem:[%s3670_s1 + $0xa4] ss:$8 sps:$4 sm:$0xff]  }
   0xe   :  { %v2415_v37 = vld [vmem:[%s3670_s1 + $0x494] ss:$8 sps:$4 sm:$0xff]   ;;  %v2418_v39 = vld [vmem:[%s3670_s1 + $0x490] ss:$8 sps:$4 sm:$0xff]   ;;  %v2421_v41 = vld [vmem:[%s3670_s1 + $0x4a4] ss:$8 sps:$4 sm:$0xff]  }
   0xf   :  { %1671 = vmatpush1.bf16.msra.mxu1 %v2381_v14  ;;  %v2423_v42 = vld [vmem:[%s3670_s1 + $0xa0] ss:$8 sps:$4 sm:$0xff]   ;;  %v2425_v44 = vld [vmem:[%s3670_s1 + $0xb4] ss:$8 sps:$4 sm:$0xff]   ;;  %v2429_v46 = vld [vmem:[%s3670_s1 + $0xb0] ss:$8 sps:$4 sm:$0xff]  }
  0x10   :  { %1843 = vmatpush1.bf16.msra.mxu0 %v2382_v15  ;;  %1672 = vmatprep.subr.bf16.mxu1 %v2383_v16  ;;  %v2424_v43 = vld [vmem:[%s3670_s1 + $0x4a0] ss:$8 sps:$4 sm:$0xff]   ;;  %v2427_v45 = vld [vmem:[%s3670_s1 + $0x4b4] ss:$8 sps:$4 sm:$0xff]   ;;  %v2430_v47 = vld [vmem:[%s3670_s1 + $0x4b0] ss:$8 sps:$4 sm:$0xff]  }
  0x11   :  { %1844 = vmatprep.subr.bf16.mxu0 %v2385_v17  ;;  %v20_v48 = vld [vmem:[%s3671_s0] sm:$0xff]  ;;  %v2437_v58 = vld [vmem:[%s3670_s1 + $0xd4] ss:$8 sps:$4 sm:$0xff]   ;;  %v2441_v60 = vld [vmem:[%s3670_s1 + $0xd0] ss:$8 sps:$4 sm:$0xff]  }
  0x12   :  { %v28_v49 = vld [vmem:[%s3671_s0 + $0x40] sm:$0xff]  ;;  %v2439_v59 = vld [vmem:[%s3670_s1 + $0x4d4] ss:$8 sps:$4 sm:$0xff]   ;;  %v2442_v61 = vld [vmem:[%s3670_s1 + $0x4d0] ss:$8 sps:$4 sm:$0xff]  }
  0x13   :  { %1673 = vmatpush1.bf16.msra.mxu1 %v2387_v18  ;;  %v2431_v50 = vld [vmem:[%s3670_s1 + $0xc4] ss:$8 sps:$4 sm:$0xff]   ;;  %v2047_v52 = vcombine.high %v20_v48, %v28_v49  ;;  %v2435_v56 = vld [vmem:[%s3670_s1 + $0xc0] ss:$8 sps:$4 sm:$0xff]   ;;  %v2449_v2 = vld [vmem:[%s3670_s1 + $0xf4] ss:$8 sps:$4 sm:$0xff]   ;;  %v2046_v8 = vcombine.low %v20_v48, %v28_v49 }
  0x14   :  { %1845 = vmatpush1.bf16.msra.mxu0 %v2388_v19  ;;  %1674 = vmatprep.subr.bf16.mxu1 %v2389_v20  ;;  %v2433_v51 = vld [vmem:[%s3670_s1 + $0x4c4] ss:$8 sps:$4 sm:$0xff]   ;;  %v2436_v57 = vld [vmem:[%s3670_s1 + $0x4c0] ss:$8 sps:$4 sm:$0xff]   ;;  %v2451_v3 = vld [vmem:[%s3670_s1 + $0x4f4] ss:$8 sps:$4 sm:$0xff]  }
  0x15   :  { %1846 = vmatprep.subr.bf16.mxu0 %v2391_v21  ;;  %v24_v53 = vld [vmem:[%s3671_s0 + $0x20] sm:$0xff]  ;;  %1696 = vmatprep.mubr.bf16.mxu1 %v2047_v52  ;;  %v2453_v4 = vld [vmem:[%s3670_s1 + $0xf0] ss:$8 sps:$4 sm:$0xff]   ;;  %v2463_v12 = vld [vmem:[%s3670_s1 + $0x114] ss:$8 sps:$4 sm:$0xff]  }
  0x16   :  { %v32_v54 = vld [vmem:[%s3671_s0 + $0x60] sm:$0xff]  ;;  %v2454_v5 = vld [vmem:[%s3670_s1 + $0x4f0] ss:$8 sps:$4 sm:$0xff]   ;;  %v2466_v13 = vld [vmem:[%s3670_s1 + $0x514] ss:$8 sps:$4 sm:$0xff]  }
  0x17   :  { %1675 = vmatpush1.bf16.msra.mxu1 %v2393_v22  ;;  %v2055_v55 = vcombine.high %v24_v53, %v32_v54  ;;  %v2443_v62 = vld [vmem:[%s3670_s1 + $0xe4] ss:$8 sps:$4 sm:$0xff]   ;;  %v2447_v0 = vld [vmem:[%s3670_s1 + $0xe0] ss:$8 sps:$4 sm:$0xff]   ;;  %v2054_v10 = vcombine.low %v24_v53, %v32_v54  ;;  %v2461_v14 = vld [vmem:[%s3670_s1 + $0x110] ss:$8 sps:$4 sm:$0xff]  }
  0x18   :  { %1847 = vmatpush1.bf16.msra.mxu0 %v2394_v23  ;;  %1676 = vmatprep.subr.bf16.mxu1 %v2395_v24  ;;  %v2445_v63 = vld [vmem:[%s3670_s1 + $0x4e4] ss:$8 sps:$4 sm:$0xff]   ;;  %v2448_v1 = vld [vmem:[%s3670_s1 + $0x4e0] ss:$8 sps:$4 sm:$0xff]   ;;  %v2464_v15 = vld [vmem:[%s3670_s1 + $0x510] ss:$8 sps:$4 sm:$0xff]  }
  0x19   :  { %1848 = vmatprep.subr.bf16.mxu0 %v2397_v25  ;;  %1868 = vmatprep.mubr.bf16.mxu0 %v2055_v55  ;;  %v2457_v6 = vld [vmem:[%s3670_s1 + $0x104] ss:$8 sps:$4 sm:$0xff]   ;;  %v2455_v9 = vld [vmem:[%s3670_s1 + $0x100] ss:$8 sps:$4 sm:$0xff]   ;;  %v2475_v20 = vld [vmem:[%s3670_s1 + $0x134] ss:$8 sps:$4 sm:$0xff]  }
  0x1a   :  { %v2460_v7 = vld [vmem:[%s3670_s1 + $0x504] ss:$8 sps:$4 sm:$0xff]   ;;  %v2458_v11 = vld [vmem:[%s3670_s1 + $0x500] ss:$8 sps:$4 sm:$0xff]   ;;  %v2478_v21 = vld [vmem:[%s3670_s1 + $0x534] ss:$8 sps:$4 sm:$0xff]  }
  0x1b   :  { %1677 = vmatpush1.bf16.msra.mxu1 %v2399_v26  ;;  %v2469_v16 = vld [vmem:[%s3670_s1 + $0x124] ss:$8 sps:$4 sm:$0xff]   ;;  %v2467_v18 = vld [vmem:[%s3670_s1 + $0x120] ss:$8 sps:$4 sm:$0xff]   ;;  %v2473_v22 = vld [vmem:[%s3670_s1 + $0x130] ss:$8 sps:$4 sm:$0xff]  }
  0x1c   :  { %1849 = vmatpush1.bf16.msra.mxu0 %v2400_v27  ;;  %1678 = vmatprep.subr.bf16.mxu1 %v2401_v28  ;;  %v2472_v17 = vld [vmem:[%s3670_s1 + $0x524] ss:$8 sps:$4 sm:$0xff]   ;;  %v2470_v19 = vld [vmem:[%s3670_s1 + $0x520] ss:$8 sps:$4 sm:$0xff]   ;;  %v2476_v23 = vld [vmem:[%s3670_s1 + $0x530] ss:$8 sps:$4 sm:$0xff]  }
  0x1d   :  { %1850 = vmatprep.subr.bf16.mxu0 %v2403_v29  ;;  %v2481_v24 = vld [vmem:[%s3670_s1 + $0x144] ss:$8 sps:$4 sm:$0xff]   ;;  %v2479_v26 = vld [vmem:[%s3670_s1 + $0x140] ss:$8 sps:$4 sm:$0xff]   ;;  %v2487_v28 = vld [vmem:[%s3670_s1 + $0x154] ss:$8 sps:$4 sm:$0xff]  }
  0x1e   :  { %v2484_v25 = vld [vmem:[%s3670_s1 + $0x544] ss:$8 sps:$4 sm:$0xff]   ;;  %v2482_v27 = vld [vmem:[%s3670_s1 + $0x540] ss:$8 sps:$4 sm:$0xff]   ;;  %v2490_v29 = vld [vmem:[%s3670_s1 + $0x554] ss:$8 sps:$4 sm:$0xff]  }
  0x1f   :  { %1679 = vmatpush1.bf16.msra.mxu1 %v2405_v30  ;;  %v2485_v30 = vld [vmem:[%s3670_s1 + $0x150] ss:$8 sps:$4 sm:$0xff]   ;;  %v2503_v48 = vld [vmem:[%s3670_s1 + $0x180] ss:$8 sps:$4 sm:$0xff]   ;;  %v2517_v54 = vld [vmem:[%s3670_s1 + $0x1a4] ss:$8 sps:$4 sm:$0xff]  }
  0x20   :  { %1851 = vmatpush1.bf16.msra.mxu0 %v2406_v31  ;;  %1680 = vmatprep.subr.bf16.mxu1 %v2407_v32  ;;  %v2488_v31 = vld [vmem:[%s3670_s1 + $0x550] ss:$8 sps:$4 sm:$0xff]   ;;  %v2493_v32 = vld [vmem:[%s3670_s1 + $0x164] ss:$8 sps:$4 sm:$0xff]   ;;  %v2506_v49 = vld [vmem:[%s3670_s1 + $0x580] ss:$8 sps:$4 sm:$0xff]  }
  0x21   :  { %1852 = vmatprep.subr.bf16.mxu0 %v2409_v33  ;;  %v2496_v33 = vld [vmem:[%s3670_s1 + $0x564] ss:$8 sps:$4 sm:$0xff]   ;;  %v2509_v52 = vld [vmem:[%s3670_s1 + $0x190] ss:$8 sps:$4 sm:$0xff]  }
  0x22   :  { %v2512_v53 = vld [vmem:[%s3670_s1 + $0x590] ss:$8 sps:$4 sm:$0xff]   ;;  %v2520_v55 = vld [vmem:[%s3670_s1 + $0x5a4] ss:$8 sps:$4 sm:$0xff]  }
  0x23   :  { %1681 = vmatpush1.bf16.msra.mxu1 %v2411_v34  ;;  %v2491_v34 = vld [vmem:[%s3670_s1 + $0x160] ss:$8 sps:$4 sm:$0xff]  }
  0x24   :  { %1853 = vmatpush1.bf16.msra.mxu0 %v2412_v35  ;;  %1682 = vmatprep.subr.bf16.mxu1 %v2413_v36  ;;  %v2494_v35 = vld [vmem:[%s3670_s1 + $0x560] ss:$8 sps:$4 sm:$0xff]  }
  0x25   :  { %1854 = vmatprep.subr.bf16.mxu0 %v2415_v37  ;;  %v3073_v36 = vld [vmem:[%s3671_s0 + $0x8] sm:$0xff] }
  0x26   :  { %v3078_v37 = vld [vmem:[%s3671_s0 + $0x48] sm:$0xff] }
  0x27   :  { %1683 = vmatpush1.bf16.msra.mxu1 %v2417_v38  ;;  %v2499_v38 = vld [vmem:[%s3670_s1 + $0x174] ss:$8 sps:$4 sm:$0xff]  }
  0x28   :  { %1855 = vmatpush1.bf16.msra.mxu0 %v2418_v39  ;;  %1684 = vmatprep.subr.bf16.mxu1 %v2419_v40  ;;  %v2502_v39 = vld [vmem:[%s3670_s1 + $0x574] ss:$8 sps:$4 sm:$0xff]   ;;  %v2049_v40 = vcombine.high %v3073_v36, %v3078_v37 }
  0x29   :  { %1856 = vmatprep.subr.bf16.mxu0 %v2421_v41  ;;  %v3091_v41 = vld [vmem:[%s3671_s0 + $0x28] sm:$0xff] }
  0x2b   :  { %1685 = vmatpush1.bf16.msra.mxu1 %v2423_v42  ;;  %v3096_v42 = vld [vmem:[%s3671_s0 + $0x68] sm:$0xff] }
  0x2c   :  { %1857 = vmatpush1.bf16.msra.mxu0 %v2424_v43  ;;  %1686 = vmatprep.subr.bf16.mxu1 %v2425_v44  ;;  %v2057_v43 = vcombine.high %v3091_v41, %v3096_v42  ;;  %v2497_v44 = vld [vmem:[%s3670_s1 + $0x170] ss:$8 sps:$4 sm:$0xff]  }
  0x2d   :  { %1858 = vmatprep.subr.bf16.mxu0 %v2427_v45  ;;  %v2500_v45 = vld [vmem:[%s3670_s1 + $0x570] ss:$8 sps:$4 sm:$0xff]  }
  0x2f   :  { %1687 = vmatpush1.bf16.msra.mxu1 %v2429_v46  ;;  %v2505_v46 = vld [vmem:[%s3670_s1 + $0x184] ss:$8 sps:$4 sm:$0xff]  }
  0x30   :  { %1859 = vmatpush1.bf16.msra.mxu0 %v2430_v47  ;;  %1688 = vmatprep.subr.bf16.mxu1 %v2431_v50  ;;  %v2508_v47 = vld [vmem:[%s3670_s1 + $0x584] ss:$8 sps:$4 sm:$0xff]   ;;  %v2511_v50 = vld [vmem:[%s3670_s1 + $0x194] ss:$8 sps:$4 sm:$0xff]  }
  0x31   :  { %1860 = vmatprep.subr.bf16.mxu0 %v2433_v51  ;;  %v2514_v51 = vld [vmem:[%s3670_s1 + $0x594] ss:$8 sps:$4 sm:$0xff]  }
  0x33   :  { %1689 = vmatpush1.bf16.msra.mxu1 %v2435_v56  ;;  %v2515_v56 = vld [vmem:[%s3670_s1 + $0x1a0] ss:$8 sps:$4 sm:$0xff]  }
  0x34   :  { %1861 = vmatpush1.bf16.msra.mxu0 %v2436_v57  ;;  %1690 = vmatprep.subr.bf16.mxu1 %v2437_v58  ;;  %v2518_v57 = vld [vmem:[%s3670_s1 + $0x5a0] ss:$8 sps:$4 sm:$0xff]   ;;  %v2523_v58 = vld [vmem:[%s3670_s1 + $0x1b4] ss:$8 sps:$4 sm:$0xff]  }
  0x35   :  { %1862 = vmatprep.subr.bf16.mxu0 %v2439_v59  ;;  %v2526_v59 = vld [vmem:[%s3670_s1 + $0x5b4] ss:$8 sps:$4 sm:$0xff]  }
  0x37   :  { %1691 = vmatpush1.bf16.msra.mxu1 %v2441_v60  ;;  %v2521_v60 = vld [vmem:[%s3670_s1 + $0x1b0] ss:$8 sps:$4 sm:$0xff]  }
  0x38   :  { %1863 = vmatpush1.bf16.msra.mxu0 %v2442_v61  ;;  %1692 = vmatprep.subr.bf16.mxu1 %v2443_v62  ;;  %v2524_v61 = vld [vmem:[%s3670_s1 + $0x5b0] ss:$8 sps:$4 sm:$0xff]   ;;  %v2529_v62 = vld [vmem:[%s3670_s1 + $0x1c4] ss:$8 sps:$4 sm:$0xff]  }
  0x39   :  { %1864 = vmatprep.subr.bf16.mxu0 %v2445_v63  ;;  %v2532_v63 = vld [vmem:[%s3670_s1 + $0x5c4] ss:$8 sps:$4 sm:$0xff]  }
  0x3b   :  { %1693 = vmatpush1.bf16.msra.mxu1 %v2447_v0  ;;  %v2527_v0 = vld [vmem:[%s3670_s1 + $0x1c0] ss:$8 sps:$4 sm:$0xff]  }
  0x3c   :  { %1865 = vmatpush1.bf16.msra.mxu0 %v2448_v1  ;;  %1694 = vmatprep.subr.bf16.mxu1 %v2449_v2  ;;  %v2530_v1 = vld [vmem:[%s3670_s1 + $0x5c0] ss:$8 sps:$4 sm:$0xff]   ;;  %v2535_v2 = vld [vmem:[%s3670_s1 + $0x1d4] ss:$8 sps:$4 sm:$0xff]  }
  0x3d   :  { %1866 = vmatprep.subr.bf16.mxu0 %v2451_v3  ;;  %v2538_v3 = vld [vmem:[%s3670_s1 + $0x5d4] ss:$8 sps:$4 sm:$0xff]  }
  0x3f   :  { %1695 = vmatpush1.bf16.msra.mxu1 %v2453_v4  ;;  %v2533_v4 = vld [vmem:[%s3670_s1 + $0x1d0] ss:$8 sps:$4 sm:$0xff]  }
  0x40   :  { %1867 = vmatpush1.bf16.msra.mxu0 %v2454_v5  ;;  %1707 = vmatprep.subr.bf16.mxu1 %v2457_v6  ;;  %v2536_v5 = vld [vmem:[%s3670_s1 + $0x5d0] ss:$8 sps:$4 sm:$0xff]   ;;  %v2541_v6 = vld [vmem:[%s3670_s1 + $0x1e4] ss:$8 sps:$4 sm:$0xff]  }
  0x41   :  { %1879 = vmatprep.subr.bf16.mxu0 %v2460_v7  ;;  %v2544_v7 = vld [vmem:[%s3670_s1 + $0x5e4] ss:$8 sps:$4 sm:$0xff]  }
  0x42   :  { %1697 = vmatmul.mubr.bf16.vlgmr.msra.gmra.mrb[0].mxu1 %v2046_v8  ;;  %v2539_v8 = vld [vmem:[%s3670_s1 + $0x1e0] ss:$8 sps:$4 sm:$0xff]  }
  0x43   :  { %1869 = vmatmul.mubr.bf16.vlgmr.msra.gmra.mrb[0].mxu0 %v2054_v10  ;;  %1708 = vmatpush1.bf16.msra.mxu1 %v2455_v9  ;;  %v2542_v9 = vld [vmem:[%s3670_s1 + $0x5e0] ss:$8 sps:$4 sm:$0xff]   ;;  %v2547_v10 = vld [vmem:[%s3670_s1 + $0x1f4] ss:$8 sps:$4 sm:$0xff]  }
  0x44   :  { %1880 = vmatpush1.bf16.msra.mxu0 %v2458_v11  ;;  %1709 = vmatprep.subr.bf16.mxu1 %v2463_v12  ;;  %v2550_v11 = vld [vmem:[%s3670_s1 + $0x5f4] ss:$8 sps:$4 sm:$0xff]   ;;  %v2545_v12 = vld [vmem:[%s3670_s1 + $0x1f0] ss:$8 sps:$4 sm:$0xff]  }
  0x45   :  { %1881 = vmatprep.subr.bf16.mxu0 %v2466_v13  ;;  %1739 = vmatprep.mubr.bf16.mxu1 %v2049_v40  ;;  %v2548_v13 = vld [vmem:[%s3670_s1 + $0x5f0] ss:$8 sps:$4 sm:$0xff]   ;;  %v2575_v40 = vld [vmem:[%s3670_s1 + $0x240] ss:$8 sps:$4 sm:$0xff]  }
  0x46   :  { %1911 = vmatprep.mubr.bf16.mxu0 %v2057_v43  ;;  %v2586_v43 = vld [vmem:[%s3670_s1 + $0x654] ss:$8 sps:$4 sm:$0xff]  }
  0x47   :  { %1710 = vmatpush1.bf16.msra.mxu1 %v2461_v14  ;;  %v2553_v14 = vld [vmem:[%s3670_s1 + $0x204] ss:$8 sps:$4 sm:$0xff]  }
  0x48   :  { %1882 = vmatpush1.bf16.msra.mxu0 %v2464_v15  ;;  %1711 = vmatprep.subr.bf16.mxu1 %v2469_v16  ;;  %v2556_v15 = vld [vmem:[%s3670_s1 + $0x604] ss:$8 sps:$4 sm:$0xff]   ;;  %v2048_v16 = vcombine.low %v3073_v36, %v3078_v37  ;;  %v2569_v36 = vld [vmem:[%s3670_s1 + $0x230] ss:$8 sps:$4 sm:$0xff]  }
  0x49   :  { %1883 = vmatprep.subr.bf16.mxu0 %v2472_v17  ;;  %v2551_v17 = vld [vmem:[%s3670_s1 + $0x200] ss:$8 sps:$4 sm:$0xff]   ;;  %v2572_v37 = vld [vmem:[%s3670_s1 + $0x630] ss:$8 sps:$4 sm:$0xff]  }
  0x4b   :  { %1712 = vmatpush1.bf16.msra.mxu1 %v2467_v18  ;;  %v2056_v18 = vcombine.low %v3091_v41, %v3096_v42  ;;  %v2578_v41 = vld [vmem:[%s3670_s1 + $0x640] ss:$8 sps:$4 sm:$0xff]   ;;  %v2583_v42 = vld [vmem:[%s3670_s1 + $0x254] ss:$8 sps:$4 sm:$0xff]  }
  0x4c   :  { %1884 = vmatpush1.bf16.msra.mxu0 %v2470_v19  ;;  %1713 = vmatprep.subr.bf16.mxu1 %v2475_v20  ;;  %v2554_v19 = vld [vmem:[%s3670_s1 + $0x600] ss:$8 sps:$4 sm:$0xff]   ;;  %v2559_v20 = vld [vmem:[%s3670_s1 + $0x214] ss:$8 sps:$4 sm:$0xff]  }
  0x4d   :  { %1885 = vmatprep.subr.bf16.mxu0 %v2478_v21  ;;  %v2562_v21 = vld [vmem:[%s3670_s1 + $0x614] ss:$8 sps:$4 sm:$0xff]  }
  0x4f   :  { %1714 = vmatpush1.bf16.msra.mxu1 %v2473_v22  ;;  %v2557_v22 = vld [vmem:[%s3670_s1 + $0x210] ss:$8 sps:$4 sm:$0xff]  }
  0x50   :  { %1886 = vmatpush1.bf16.msra.mxu0 %v2476_v23  ;;  %1715 = vmatprep.subr.bf16.mxu1 %v2481_v24  ;;  %v2560_v23 = vld [vmem:[%s3670_s1 + $0x610] ss:$8 sps:$4 sm:$0xff]  }
  0x51   :  { %1887 = vmatprep.subr.bf16.mxu0 %v2484_v25  ;;  %v3233_v24 = vld [vmem:[%s3671_s0 + $0x10] sm:$0xff] }
  0x52   :  { %v3238_v25 = vld [vmem:[%s3671_s0 + $0x50] sm:$0xff] }
  0x53   :  { %1716 = vmatpush1.bf16.msra.mxu1 %v2479_v26  ;;  %v2565_v26 = vld [vmem:[%s3670_s1 + $0x224] ss:$8 sps:$4 sm:$0xff]  }
  0x54   :  { %1888 = vmatpush1.bf16.msra.mxu0 %v2482_v27  ;;  %1717 = vmatprep.subr.bf16.mxu1 %v2487_v28  ;;  %v2568_v27 = vld [vmem:[%s3670_s1 + $0x624] ss:$8 sps:$4 sm:$0xff]   ;;  %v2051_v28 = vcombine.high %v3233_v24, %v3238_v25 }
  0x55   :  { %1889 = vmatprep.subr.bf16.mxu0 %v2490_v29  ;;  %v3251_v29 = vld [vmem:[%s3671_s0 + $0x30] sm:$0xff] }
  0x57   :  { %1718 = vmatpush1.bf16.msra.mxu1 %v2485_v30  ;;  %v3256_v30 = vld [vmem:[%s3671_s0 + $0x70] sm:$0xff] }
  0x58   :  { %1890 = vmatpush1.bf16.msra.mxu0 %v2488_v31  ;;  %1719 = vmatprep.subr.bf16.mxu1 %v2493_v32  ;;  %v2059_v31 = vcombine.high %v3251_v29, %v3256_v30  ;;  %v2563_v32 = vld [vmem:[%s3670_s1 + $0x220] ss:$8 sps:$4 sm:$0xff]  }
  0x59   :  { %1891 = vmatprep.subr.bf16.mxu0 %v2496_v33  ;;  %v2566_v33 = vld [vmem:[%s3670_s1 + $0x620] ss:$8 sps:$4 sm:$0xff]  }
  0x5b   :  { %1720 = vmatpush1.bf16.msra.mxu1 %v2491_v34  ;;  %v2571_v34 = vld [vmem:[%s3670_s1 + $0x234] ss:$8 sps:$4 sm:$0xff]  }
  0x5c   :  { %1892 = vmatpush1.bf16.msra.mxu0 %v2494_v35  ;;  %1721 = vmatprep.subr.bf16.mxu1 %v2499_v38  ;;  %v2574_v35 = vld [vmem:[%s3670_s1 + $0x634] ss:$8 sps:$4 sm:$0xff]   ;;  %v2577_v38 = vld [vmem:[%s3670_s1 + $0x244] ss:$8 sps:$4 sm:$0xff]  }
  0x5d   :  { %1893 = vmatprep.subr.bf16.mxu0 %v2502_v39  ;;  %v2580_v39 = vld [vmem:[%s3670_s1 + $0x644] ss:$8 sps:$4 sm:$0xff]  }
  0x5f   :  { %1722 = vmatpush1.bf16.msra.mxu1 %v2497_v44  ;;  %v2581_v44 = vld [vmem:[%s3670_s1 + $0x250] ss:$8 sps:$4 sm:$0xff]  }
  0x60   :  { %1894 = vmatpush1.bf16.msra.mxu0 %v2500_v45  ;;  %1723 = vmatprep.subr.bf16.mxu1 %v2505_v46  ;;  %v2584_v45 = vld [vmem:[%s3670_s1 + $0x650] ss:$8 sps:$4 sm:$0xff]   ;;  %v2589_v46 = vld [vmem:[%s3670_s1 + $0x264] ss:$8 sps:$4 sm:$0xff]  }
  0x61   :  { %1895 = vmatprep.subr.bf16.mxu0 %v2508_v47  ;;  %v2592_v47 = vld [vmem:[%s3670_s1 + $0x664] ss:$8 sps:$4 sm:$0xff]  }
  0x63   :  { %1724 = vmatpush1.bf16.msra.mxu1 %v2503_v48  ;;  %v2587_v48 = vld [vmem:[%s3670_s1 + $0x260] ss:$8 sps:$4 sm:$0xff]  }
  0x64   :  { %1896 = vmatpush1.bf16.msra.mxu0 %v2506_v49  ;;  %1725 = vmatprep.subr.bf16.mxu1 %v2511_v50  ;;  %v2590_v49 = vld [vmem:[%s3670_s1 + $0x660] ss:$8 sps:$4 sm:$0xff]   ;;  %v2595_v50 = vld [vmem:[%s3670_s1 + $0x274] ss:$8 sps:$4 sm:$0xff]  }
  0x65   :  { %1897 = vmatprep.subr.bf16.mxu0 %v2514_v51  ;;  %v2598_v51 = vld [vmem:[%s3670_s1 + $0x674] ss:$8 sps:$4 sm:$0xff]  }
  0x67   :  { %1726 = vmatpush1.bf16.msra.mxu1 %v2509_v52  ;;  %v2593_v52 = vld [vmem:[%s3670_s1 + $0x270] ss:$8 sps:$4 sm:$0xff]  }
  0x68   :  { %1898 = vmatpush1.bf16.msra.mxu0 %v2512_v53  ;;  %1727 = vmatprep.subr.bf16.mxu1 %v2517_v54  ;;  %v2596_v53 = vld [vmem:[%s3670_s1 + $0x670] ss:$8 sps:$4 sm:$0xff]   ;;  %v2601_v54 = vld [vmem:[%s3670_s1 + $0x284] ss:$8 sps:$4 sm:$0xff]  }
  0x69   :  { %1899 = vmatprep.subr.bf16.mxu0 %v2520_v55  ;;  %v2604_v55 = vld [vmem:[%s3670_s1 + $0x684] ss:$8 sps:$4 sm:$0xff]  }
  0x6b   :  { %1728 = vmatpush1.bf16.msra.mxu1 %v2515_v56  ;;  %v2599_v56 = vld [vmem:[%s3670_s1 + $0x280] ss:$8 sps:$4 sm:$0xff]  }
  0x6c   :  { %1900 = vmatpush1.bf16.msra.mxu0 %v2518_v57  ;;  %1729 = vmatprep.subr.bf16.mxu1 %v2523_v58  ;;  %v2602_v57 = vld [vmem:[%s3670_s1 + $0x680] ss:$8 sps:$4 sm:$0xff]   ;;  %v2607_v58 = vld [vmem:[%s3670_s1 + $0x294] ss:$8 sps:$4 sm:$0xff]  }
  0x6d   :  { %1901 = vmatprep.subr.bf16.mxu0 %v2526_v59  ;;  %v2610_v59 = vld [vmem:[%s3670_s1 + $0x694] ss:$8 sps:$4 sm:$0xff]  }
  0x6f   :  { %1730 = vmatpush1.bf16.msra.mxu1 %v2521_v60  ;;  %v2605_v60 = vld [vmem:[%s3670_s1 + $0x290] ss:$8 sps:$4 sm:$0xff]  }
  0x70   :  { %1902 = vmatpush1.bf16.msra.mxu0 %v2524_v61  ;;  %1731 = vmatprep.subr.bf16.mxu1 %v2529_v62  ;;  %v2608_v61 = vld [vmem:[%s3670_s1 + $0x690] ss:$8 sps:$4 sm:$0xff]   ;;  %v2613_v62 = vld [vmem:[%s3670_s1 + $0x2a4] ss:$8 sps:$4 sm:$0xff]  }
  0x71   :  { %1903 = vmatprep.subr.bf16.mxu0 %v2532_v63  ;;  %v2616_v63 = vld [vmem:[%s3670_s1 + $0x6a4] ss:$8 sps:$4 sm:$0xff]  }
  0x73   :  { %1732 = vmatpush1.bf16.msra.mxu1 %v2527_v0  ;;  %v2611_v0 = vld [vmem:[%s3670_s1 + $0x2a0] ss:$8 sps:$4 sm:$0xff]  }
  0x74   :  { %1904 = vmatpush1.bf16.msra.mxu0 %v2530_v1  ;;  %1733 = vmatprep.subr.bf16.mxu1 %v2535_v2  ;;  %v2614_v1 = vld [vmem:[%s3670_s1 + $0x6a0] ss:$8 sps:$4 sm:$0xff]   ;;  %v2619_v2 = vld [vmem:[%s3670_s1 + $0x2b4] ss:$8 sps:$4 sm:$0xff]  }
  0x75   :  { %1905 = vmatprep.subr.bf16.mxu0 %v2538_v3  ;;  %v2622_v3 = vld [vmem:[%s3670_s1 + $0x6b4] ss:$8 sps:$4 sm:$0xff]  }
  0x77   :  { %1734 = vmatpush1.bf16.msra.mxu1 %v2533_v4  ;;  %v2617_v4 = vld [vmem:[%s3670_s1 + $0x2b0] ss:$8 sps:$4 sm:$0xff]  }
  0x78   :  { %1906 = vmatpush1.bf16.msra.mxu0 %v2536_v5  ;;  %1735 = vmatprep.subr.bf16.mxu1 %v2541_v6  ;;  %v2620_v5 = vld [vmem:[%s3670_s1 + $0x6b0] ss:$8 sps:$4 sm:$0xff]   ;;  %v2625_v6 = vld [vmem:[%s3670_s1 + $0x2c4] ss:$8 sps:$4 sm:$0xff]  }
  0x79   :  { %1907 = vmatprep.subr.bf16.mxu0 %v2544_v7  ;;  %v2628_v7 = vld [vmem:[%s3670_s1 + $0x6c4] ss:$8 sps:$4 sm:$0xff]  }
  0x7b   :  { %1736 = vmatpush1.bf16.msra.mxu1 %v2539_v8  ;;  %v2623_v8 = vld [vmem:[%s3670_s1 + $0x2c0] ss:$8 sps:$4 sm:$0xff]  }
  0x7c   :  { %1908 = vmatpush1.bf16.msra.mxu0 %v2542_v9  ;;  %1737 = vmatprep.subr.bf16.mxu1 %v2547_v10  ;;  %v2626_v9 = vld [vmem:[%s3670_s1 + $0x6c0] ss:$8 sps:$4 sm:$0xff]   ;;  %v2631_v10 = vld [vmem:[%s3670_s1 + $0x2d4] ss:$8 sps:$4 sm:$0xff]  }
  0x7d   :  { %1909 = vmatprep.subr.bf16.mxu0 %v2550_v11  ;;  %v2634_v11 = vld [vmem:[%s3670_s1 + $0x6d4] ss:$8 sps:$4 sm:$0xff]  }
  0x7f   :  { %1738 = vmatpush1.bf16.msra.mxu1 %v2545_v12  ;;  %v2629_v12 = vld [vmem:[%s3670_s1 + $0x2d0] ss:$8 sps:$4 sm:$0xff]  }
  0x80   :  { %1910 = vmatpush1.bf16.msra.mxu0 %v2548_v13  ;;  %1750 = vmatprep.subr.bf16.mxu1 %v2553_v14  ;;  %v2632_v13 = vld [vmem:[%s3670_s1 + $0x6d0] ss:$8 sps:$4 sm:$0xff]   ;;  %v2637_v14 = vld [vmem:[%s3670_s1 + $0x2e4] ss:$8 sps:$4 sm:$0xff]  }
  0x81   :  { %1922 = vmatprep.subr.bf16.mxu0 %v2556_v15  ;;  %v2640_v15 = vld [vmem:[%s3670_s1 + $0x6e4] ss:$8 sps:$4 sm:$0xff]  }
  0x82   :  { %1740 = vmatmul.mubr.bf16.vlgmr.msra.gmra.mrb[0].mxu1 %v2048_v16  ;;  %v2635_v16 = vld [vmem:[%s3670_s1 + $0x2e0] ss:$8 sps:$4 sm:$0xff]  }
  0x83   :  { %1912 = vmatmul.mubr.bf16.vlgmr.msra.gmra.mrb[0].mxu0 %v2056_v18  ;;  %1751 = vmatpush1.bf16.msra.mxu1 %v2551_v17  ;;  %v2638_v17 = vld [vmem:[%s3670_s1 + $0x6e0] ss:$8 sps:$4 sm:$0xff]   ;;  %v2643_v18 = vld [vmem:[%s3670_s1 + $0x2f4] ss:$8 sps:$4 sm:$0xff]  }
  0x84   :  { %1923 = vmatpush1.bf16.msra.mxu0 %v2554_v19  ;;  %1752 = vmatprep.subr.bf16.mxu1 %v2559_v20  ;;  %v2646_v19 = vld [vmem:[%s3670_s1 + $0x6f4] ss:$8 sps:$4 sm:$0xff]   ;;  %v2641_v20 = vld [vmem:[%s3670_s1 + $0x2f0] ss:$8 sps:$4 sm:$0xff]  }
  0x85   :  { %1924 = vmatprep.subr.bf16.mxu0 %v2562_v21  ;;  %1782 = vmatprep.mubr.bf16.mxu1 %v2051_v28  ;;  %v2644_v21 = vld [vmem:[%s3670_s1 + $0x6f0] ss:$8 sps:$4 sm:$0xff]   ;;  %v2058_v28 = vcombine.low %v3251_v29, %v3256_v30  ;;  %v2655_v29 = vld [vmem:[%s3670_s1 + $0x314] ss:$8 sps:$4 sm:$0xff]  }
  0x86   :  { %1954 = vmatprep.mubr.bf16.mxu0 %v2059_v31  ;;  %v3440_v31 = vld [vmem:[%s3671_s0 + $0x58] sm:$0xff] }
  0x87   :  { %1753 = vmatpush1.bf16.msra.mxu1 %v2557_v22  ;;  %v2649_v22 = vld [vmem:[%s3670_s1 + $0x304] ss:$8 sps:$4 sm:$0xff]   ;;  %v2658_v30 = vld [vmem:[%s3670_s1 + $0x714] ss:$8 sps:$4 sm:$0xff]  }
  0x88   :  { %1925 = vmatpush1.bf16.msra.mxu0 %v2560_v23  ;;  %1754 = vmatprep.subr.bf16.mxu1 %v2565_v26  ;;  %v2652_v23 = vld [vmem:[%s3670_s1 + $0x704] ss:$8 sps:$4 sm:$0xff]   ;;  %v3431_v26 = vld [vmem:[%s3671_s0 + $0x18] sm:$0xff] }
  0x89   :  { %1926 = vmatprep.subr.bf16.mxu0 %v2568_v27  ;;  %v2050_v27 = vcombine.low %v3233_v24, %v3238_v25  ;;  %v2647_v24 = vld [vmem:[%s3670_s1 + $0x300] ss:$8 sps:$4 sm:$0xff]  }
  0x8a   :  { %v2650_v25 = vld [vmem:[%s3670_s1 + $0x700] ss:$8 sps:$4 sm:$0xff]  }
  0x8b   :  { %1755 = vmatpush1.bf16.msra.mxu1 %v2563_v32  ;;  %v3445_v32 = vld [vmem:[%s3671_s0 + $0x38] sm:$0xff] }
  0x8c   :  { %1927 = vmatpush1.bf16.msra.mxu0 %v2566_v33  ;;  %1756 = vmatprep.subr.bf16.mxu1 %v2571_v34  ;;  %v3450_v33 = vld [vmem:[%s3671_s0 + $0x78] sm:$0xff]  ;;  %v2053_v34 = vcombine.high %v3431_v26, %v3440_v31 }
  0x8d   :  { %1928 = vmatprep.subr.bf16.mxu0 %v2574_v35  ;;  %v2061_v35 = vcombine.high %v3445_v32, %v3450_v33 }
  0x8f   :  { %1757 = vmatpush1.bf16.msra.mxu1 %v2569_v36  ;;  %v2653_v36 = vld [vmem:[%s3670_s1 + $0x310] ss:$8 sps:$4 sm:$0xff]  }
  0x90   :  { %1929 = vmatpush1.bf16.msra.mxu0 %v2572_v37  ;;  %1758 = vmatprep.subr.bf16.mxu1 %v2577_v38  ;;  %v2656_v37 = vld [vmem:[%s3670_s1 + $0x710] ss:$8 sps:$4 sm:$0xff]   ;;  %v2661_v38 = vld [vmem:[%s3670_s1 + $0x324] ss:$8 sps:$4 sm:$0xff]  }
  0x91   :  { %1930 = vmatprep.subr.bf16.mxu0 %v2580_v39  ;;  %v2664_v39 = vld [vmem:[%s3670_s1 + $0x724] ss:$8 sps:$4 sm:$0xff]  }
  0x93   :  { %1759 = vmatpush1.bf16.msra.mxu1 %v2575_v40  ;;  %v2659_v40 = vld [vmem:[%s3670_s1 + $0x320] ss:$8 sps:$4 sm:$0xff]  }
  0x94   :  { %1931 = vmatpush1.bf16.msra.mxu0 %v2578_v41  ;;  %1760 = vmatprep.subr.bf16.mxu1 %v2583_v42  ;;  %v2662_v41 = vld [vmem:[%s3670_s1 + $0x720] ss:$8 sps:$4 sm:$0xff]   ;;  %v2667_v42 = vld [vmem:[%s3670_s1 + $0x334] ss:$8 sps:$4 sm:$0xff]  }
  0x95   :  { %1932 = vmatprep.subr.bf16.mxu0 %v2586_v43  ;;  %v2670_v43 = vld [vmem:[%s3670_s1 + $0x734] ss:$8 sps:$4 sm:$0xff]  }
  0x97   :  { %1761 = vmatpush1.bf16.msra.mxu1 %v2581_v44  ;;  %v2665_v44 = vld [vmem:[%s3670_s1 + $0x330] ss:$8 sps:$4 sm:$0xff]  }
  0x98   :  { %1933 = vmatpush1.bf16.msra.mxu0 %v2584_v45  ;;  %1762 = vmatprep.subr.bf16.mxu1 %v2589_v46  ;;  %v2668_v45 = vld [vmem:[%s3670_s1 + $0x730] ss:$8 sps:$4 sm:$0xff]   ;;  %v2673_v46 = vld [vmem:[%s3670_s1 + $0x344] ss:$8 sps:$4 sm:$0xff]  }
  0x99   :  { %1934 = vmatprep.subr.bf16.mxu0 %v2592_v47  ;;  %v2676_v47 = vld [vmem:[%s3670_s1 + $0x744] ss:$8 sps:$4 sm:$0xff]  }
  0x9b   :  { %1763 = vmatpush1.bf16.msra.mxu1 %v2587_v48  ;;  %v2671_v48 = vld [vmem:[%s3670_s1 + $0x340] ss:$8 sps:$4 sm:$0xff]  }
  0x9c   :  { %1935 = vmatpush1.bf16.msra.mxu0 %v2590_v49  ;;  %1764 = vmatprep.subr.bf16.mxu1 %v2595_v50  ;;  %v2674_v49 = vld [vmem:[%s3670_s1 + $0x740] ss:$8 sps:$4 sm:$0xff]   ;;  %v2679_v50 = vld [vmem:[%s3670_s1 + $0x354] ss:$8 sps:$4 sm:$0xff]  }
  0x9d   :  { %1936 = vmatprep.subr.bf16.mxu0 %v2598_v51  ;;  %v2682_v51 = vld [vmem:[%s3670_s1 + $0x754] ss:$8 sps:$4 sm:$0xff]  }
  0x9f   :  { %1765 = vmatpush1.bf16.msra.mxu1 %v2593_v52  ;;  %v2677_v52 = vld [vmem:[%s3670_s1 + $0x350] ss:$8 sps:$4 sm:$0xff]  }
  0xa0   :  { %1937 = vmatpush1.bf16.msra.mxu0 %v2596_v53  ;;  %1766 = vmatprep.subr.bf16.mxu1 %v2601_v54  ;;  %v2680_v53 = vld [vmem:[%s3670_s1 + $0x750] ss:$8 sps:$4 sm:$0xff]   ;;  %v2685_v54 = vld [vmem:[%s3670_s1 + $0x364] ss:$8 sps:$4 sm:$0xff]  }
  0xa1   :  { %1938 = vmatprep.subr.bf16.mxu0 %v2604_v55  ;;  %v2688_v55 = vld [vmem:[%s3670_s1 + $0x764] ss:$8 sps:$4 sm:$0xff]  }
  0xa3   :  { %1767 = vmatpush1.bf16.msra.mxu1 %v2599_v56  ;;  %v2683_v56 = vld [vmem:[%s3670_s1 + $0x360] ss:$8 sps:$4 sm:$0xff]  }
  0xa4   :  { %1939 = vmatpush1.bf16.msra.mxu0 %v2602_v57  ;;  %1768 = vmatprep.subr.bf16.mxu1 %v2607_v58  ;;  %v2686_v57 = vld [vmem:[%s3670_s1 + $0x760] ss:$8 sps:$4 sm:$0xff]   ;;  %v2691_v58 = vld [vmem:[%s3670_s1 + $0x374] ss:$8 sps:$4 sm:$0xff]  }
  0xa5   :  { %1940 = vmatprep.subr.bf16.mxu0 %v2610_v59  ;;  %v2694_v59 = vld [vmem:[%s3670_s1 + $0x774] ss:$8 sps:$4 sm:$0xff]  }
  0xa7   :  { %1769 = vmatpush1.bf16.msra.mxu1 %v2605_v60  ;;  %v2689_v60 = vld [vmem:[%s3670_s1 + $0x370] ss:$8 sps:$4 sm:$0xff]  }
  0xa8   :  { %1941 = vmatpush1.bf16.msra.mxu0 %v2608_v61  ;;  %1770 = vmatprep.subr.bf16.mxu1 %v2613_v62  ;;  %v2692_v61 = vld [vmem:[%s3670_s1 + $0x770] ss:$8 sps:$4 sm:$0xff]   ;;  %v2697_v62 = vld [vmem:[%s3670_s1 + $0x384] ss:$8 sps:$4 sm:$0xff]  }
  0xa9   :  { %1942 = vmatprep.subr.bf16.mxu0 %v2616_v63  ;;  %v2700_v63 = vld [vmem:[%s3670_s1 + $0x784] ss:$8 sps:$4 sm:$0xff]  }
  0xab   :  { %1771 = vmatpush1.bf16.msra.mxu1 %v2611_v0  ;;  %v2695_v0 = vld [vmem:[%s3670_s1 + $0x380] ss:$8 sps:$4 sm:$0xff]  }
  0xac   :  { %1943 = vmatpush1.bf16.msra.mxu0 %v2614_v1  ;;  %1772 = vmatprep.subr.bf16.mxu1 %v2619_v2  ;;  %v2698_v1 = vld [vmem:[%s3670_s1 + $0x780] ss:$8 sps:$4 sm:$0xff]   ;;  %v2703_v2 = vld [vmem:[%s3670_s1 + $0x394] ss:$8 sps:$4 sm:$0xff]  }
  0xad   :  { %1944 = vmatprep.subr.bf16.mxu0 %v2622_v3  ;;  %v2706_v3 = vld [vmem:[%s3670_s1 + $0x794] ss:$8 sps:$4 sm:$0xff]  }
  0xaf   :  { %1773 = vmatpush1.bf16.msra.mxu1 %v2617_v4  ;;  %v2701_v4 = vld [vmem:[%s3670_s1 + $0x390] ss:$8 sps:$4 sm:$0xff]  }
  0xb0   :  { %1945 = vmatpush1.bf16.msra.mxu0 %v2620_v5  ;;  %1774 = vmatprep.subr.bf16.mxu1 %v2625_v6  ;;  %v2704_v5 = vld [vmem:[%s3670_s1 + $0x790] ss:$8 sps:$4 sm:$0xff]   ;;  %v2709_v6 = vld [vmem:[%s3670_s1 + $0x3a4] ss:$8 sps:$4 sm:$0xff]  }
  0xb1   :  { %1946 = vmatprep.subr.bf16.mxu0 %v2628_v7  ;;  %v2712_v7 = vld [vmem:[%s3670_s1 + $0x7a4] ss:$8 sps:$4 sm:$0xff]  }
  0xb3   :  { %1775 = vmatpush1.bf16.msra.mxu1 %v2623_v8  ;;  %v2707_v8 = vld [vmem:[%s3670_s1 + $0x3a0] ss:$8 sps:$4 sm:$0xff]  }
  0xb4   :  { %1947 = vmatpush1.bf16.msra.mxu0 %v2626_v9  ;;  %1776 = vmatprep.subr.bf16.mxu1 %v2631_v10  ;;  %v2710_v9 = vld [vmem:[%s3670_s1 + $0x7a0] ss:$8 sps:$4 sm:$0xff]   ;;  %v2715_v10 = vld [vmem:[%s3670_s1 + $0x3b4] ss:$8 sps:$4 sm:$0xff]  }
  0xb5   :  { %1948 = vmatprep.subr.bf16.mxu0 %v2634_v11  ;;  %v2718_v11 = vld [vmem:[%s3670_s1 + $0x7b4] ss:$8 sps:$4 sm:$0xff]  }
  0xb7   :  { %1777 = vmatpush1.bf16.msra.mxu1 %v2629_v12  ;;  %v2713_v12 = vld [vmem:[%s3670_s1 + $0x3b0] ss:$8 sps:$4 sm:$0xff]  }
  0xb8   :  { %1949 = vmatpush1.bf16.msra.mxu0 %v2632_v13  ;;  %1778 = vmatprep.subr.bf16.mxu1 %v2637_v14  ;;  %v2716_v13 = vld [vmem:[%s3670_s1 + $0x7b0] ss:$8 sps:$4 sm:$0xff]   ;;  %v2721_v14 = vld [vmem:[%s3670_s1 + $0x3c4] ss:$8 sps:$4 sm:$0xff]  }
  0xb9   :  { %1950 = vmatprep.subr.bf16.mxu0 %v2640_v15  ;;  %v2724_v15 = vld [vmem:[%s3670_s1 + $0x7c4] ss:$8 sps:$4 sm:$0xff]  }
  0xbb   :  { %1779 = vmatpush1.bf16.msra.mxu1 %v2635_v16  ;;  %v2719_v16 = vld [vmem:[%s3670_s1 + $0x3c0] ss:$8 sps:$4 sm:$0xff]  }
  0xbc   :  { %1951 = vmatpush1.bf16.msra.mxu0 %v2638_v17  ;;  %1780 = vmatprep.subr.bf16.mxu1 %v2643_v18  ;;  %v2722_v17 = vld [vmem:[%s3670_s1 + $0x7c0] ss:$8 sps:$4 sm:$0xff]   ;;  %v2727_v18 = vld [vmem:[%s3670_s1 + $0x3d4] ss:$8 sps:$4 sm:$0xff]  }
  0xbd   :  { %1952 = vmatprep.subr.bf16.mxu0 %v2646_v19  ;;  %v2730_v19 = vld [vmem:[%s3670_s1 + $0x7d4] ss:$8 sps:$4 sm:$0xff]  }
  0xbf   :  { %1781 = vmatpush1.bf16.msra.mxu1 %v2641_v20  ;;  %v2725_v20 = vld [vmem:[%s3670_s1 + $0x3d0] ss:$8 sps:$4 sm:$0xff]  }
  0xc0   :  { %1953 = vmatpush1.bf16.msra.mxu0 %v2644_v21  ;;  %1793 = vmatprep.subr.bf16.mxu1 %v2649_v22  ;;  %v2728_v21 = vld [vmem:[%s3670_s1 + $0x7d0] ss:$8 sps:$4 sm:$0xff]   ;;  %v2733_v22 = vld [vmem:[%s3670_s1 + $0x3e4] ss:$8 sps:$4 sm:$0xff]  }
  0xc1   :  { %1965 = vmatprep.subr.bf16.mxu0 %v2652_v23  ;;  %v2736_v23 = vld [vmem:[%s3670_s1 + $0x7e4] ss:$8 sps:$4 sm:$0xff]  }
  0xc2   :  { %1783 = vmatmul.mubr.bf16.vlgmr.msra.gmra.mrb[0].mxu1 %v2050_v27  ;;  %v2731_v27 = vld [vmem:[%s3670_s1 + $0x3e0] ss:$8 sps:$4 sm:$0xff]  }
  0xc3   :  { %1955 = vmatmul.mubr.bf16.vlgmr.msra.gmra.mrb[0].mxu0 %v2058_v28  ;;  %1794 = vmatpush1.bf16.msra.mxu1 %v2647_v24  ;;  %v2734_v28 = vld [vmem:[%s3670_s1 + $0x7e0] ss:$8 sps:$4 sm:$0xff]   ;;  %v2739_v24 = vld [vmem:[%s3670_s1 + $0x3f4] ss:$8 sps:$4 sm:$0xff]  }
  0xc4   :  { %1966 = vmatpush1.bf16.msra.mxu0 %v2650_v25  ;;  %1795 = vmatprep.subr.bf16.mxu1 %v2655_v29  ;;  %v2742_v25 = vld [vmem:[%s3670_s1 + $0x7f4] ss:$8 sps:$4 sm:$0xff]   ;;  %v2737_v29 = vld [vmem:[%s3670_s1 + $0x3f0] ss:$8 sps:$4 sm:$0xff]  }
  0xc5   :  { %1967 = vmatprep.subr.bf16.mxu0 %v2658_v30  ;;  %1825 = vmatprep.mubr.bf16.mxu1 %v2053_v34  ;;  %v2740_v30 = vld [vmem:[%s3670_s1 + $0x7f0] ss:$8 sps:$4 sm:$0xff]   ;;  %v2052_v34 = vcombine.low %v3431_v26, %v3440_v31 }
  0xc6   :  { %1997 = vmatprep.mubr.bf16.mxu0 %v2061_v35  ;;  %v2060_v35 = vcombine.low %v3445_v32, %v3450_v33 }
  0xc7   :  { %1796 = vmatpush1.bf16.msra.mxu1 %v2653_v36  ;;  %v294_v36 = vlaneseq }
  0xc8   :  { %1968 = vmatpush1.bf16.msra.mxu0 %v2656_v37  ;;  %1797 = vmatprep.subr.bf16.mxu1 %v2661_v38 }
  0xc9   :  { %1969 = vmatprep.subr.bf16.mxu0 %v2664_v39  ;;  %v295_v37 = vshrl.u32 %v294_v36, 7  ;;  %v292_v39 = vld [vmem:[%s3672_s2] sm:$0x3] }
  0xcb   :  { %1798 = vmatpush1.bf16.msra.mxu1 %v2659_v40  ;;  %v296_v38 = vsub.s32 0, %v295_v37  ;;  %v300_v40 = vsub.s32 1, %v295_v37 }
  0xcc   :  { %1970 = vmatpush1.bf16.msra.mxu0 %v2662_v41  ;;  %1799 = vmatprep.subr.bf16.mxu1 %v2667_v42 }
  0xcd   :  { %1971 = vmatprep.subr.bf16.mxu0 %v2670_v43  ;;  %v297_v41 = vrot.slane %v292_v39, %v296_v38  ;;  %v301_v42 = vrot.slane %v292_v39, %v300_v40 }
  0xcf   :  { %1800 = vmatpush1.bf16.msra.mxu1 %v2665_v44 }
  0xd0   :  { %1972 = vmatpush1.bf16.msra.mxu0 %v2668_v45  ;;  %1801 = vmatprep.subr.bf16.mxu1 %v2673_v46 }
  0xd1   :  { %1973 = vmatprep.subr.bf16.mxu0 %v2676_v47 }
  0xd3   :  { %1802 = vmatpush1.bf16.msra.mxu1 %v2671_v48 }
  0xd4   :  { %1974 = vmatpush1.bf16.msra.mxu0 %v2674_v49  ;;  %1803 = vmatprep.subr.bf16.mxu1 %v2679_v50 }
  0xd5   :  { %1975 = vmatprep.subr.bf16.mxu0 %v2682_v51 }
  0xd7   :  { %1804 = vmatpush1.bf16.msra.mxu1 %v2677_v52 }
  0xd8   :  { %1976 = vmatpush1.bf16.msra.mxu0 %v2680_v53  ;;  %1805 = vmatprep.subr.bf16.mxu1 %v2685_v54 }
  0xd9   :  { %1977 = vmatprep.subr.bf16.mxu0 %v2688_v55 }
  0xdb   :  { %1806 = vmatpush1.bf16.msra.mxu1 %v2683_v56 }
  0xdc   :  { %1978 = vmatpush1.bf16.msra.mxu0 %v2686_v57  ;;  %1807 = vmatprep.subr.bf16.mxu1 %v2691_v58 }
  0xdd   :  { %1979 = vmatprep.subr.bf16.mxu0 %v2694_v59  ;;  %v2008_v59 = vld [vmem:[%s3675_s3] sm:$0xff] }
  0xdf   :  { %1808 = vmatpush1.bf16.msra.mxu1 %v2689_v60 }
  0xe0   :  { %1980 = vmatpush1.bf16.msra.mxu0 %v2692_v61  ;;  %1809 = vmatprep.subr.bf16.mxu1 %v2697_v62  ;;  %v2009_v61 = vld [vmem:[%s3675_s3 + $0x8] sm:$0xff] }
  0xe1   :  { %1981 = vmatprep.subr.bf16.mxu0 %v2700_v63 }
  0xe3   :  { %1810 = vmatpush1.bf16.msra.mxu1 %v2695_v0 }
  0xe4   :  { %1982 = vmatpush1.bf16.msra.mxu0 %v2698_v1  ;;  %1811 = vmatprep.subr.bf16.mxu1 %v2703_v2 }
  0xe5   :  { %1983 = vmatprep.subr.bf16.mxu0 %v2706_v3 }
  0xe7   :  { %1812 = vmatpush1.bf16.msra.mxu1 %v2701_v4 }
  0xe8   :  { %1984 = vmatpush1.bf16.msra.mxu0 %v2704_v5  ;;  %1813 = vmatprep.subr.bf16.mxu1 %v2709_v6 }
  0xe9   :  { %1985 = vmatprep.subr.bf16.mxu0 %v2712_v7 }
  0xeb   :  { %1814 = vmatpush1.bf16.msra.mxu1 %v2707_v8 }
  0xec   :  { %1986 = vmatpush1.bf16.msra.mxu0 %v2710_v9  ;;  %1815 = vmatprep.subr.bf16.mxu1 %v2715_v10 }
  0xed   :  { %1987 = vmatprep.subr.bf16.mxu0 %v2718_v11 }
  0xef   :  { %1816 = vmatpush1.bf16.msra.mxu1 %v2713_v12 }
  0xf0   :  { %1988 = vmatpush1.bf16.msra.mxu0 %v2716_v13  ;;  %1817 = vmatprep.subr.bf16.mxu1 %v2721_v14 }
  0xf1   :  { %1989 = vmatprep.subr.bf16.mxu0 %v2724_v15 }
  0xf3   :  { %1818 = vmatpush1.bf16.msra.mxu1 %v2719_v16 }
  0xf4   :  { %1990 = vmatpush1.bf16.msra.mxu0 %v2722_v17  ;;  %1819 = vmatprep.subr.bf16.mxu1 %v2727_v18 }
  0xf5   :  { %1991 = vmatprep.subr.bf16.mxu0 %v2730_v19 }
  0xf7   :  { %1820 = vmatpush1.bf16.msra.mxu1 %v2725_v20 }
  0xf8   :  { %1992 = vmatpush1.bf16.msra.mxu0 %v2728_v21  ;;  %1821 = vmatprep.subr.bf16.mxu1 %v2733_v22 }
  0xf9   :  { %1993 = vmatprep.subr.bf16.mxu0 %v2736_v23 }
  0xfb   :  { %1822 = vmatpush1.bf16.msra.mxu1 %v2731_v27 }
  0xfc   :  { %1994 = vmatpush1.bf16.msra.mxu0 %v2734_v28  ;;  %1823 = vmatprep.subr.bf16.mxu1 %v2739_v24 }
  0xfd   :  { %1995 = vmatprep.subr.bf16.mxu0 %v2742_v25 }
  0xff   :  { %1824 = vmatpush1.bf16.msra.mxu1 %v2737_v29 }
 0x100   :  { %1996 = vmatpush1.bf16.msra.mxu0 %v2740_v30 }
 0x102   :  { %1826 = vmatmul.mubr.bf16.vlgmr.msra.gmra.mrb[0].mxu1 %v2052_v34 }
 0x103   :  { %1998 = vmatmul.mubr.bf16.vlgmr.msra.gmra.mrb[0].mxu0 %v2060_v35 }
 0x1d5   :  { %v1827_v43 = vpop.f32.mrb[0].mxu1 }
 0x1d6   :  { %v1999_v44 = vpop.f32.mrb[0].mxu0  ;;  %v2327_v26 = vadd.f32 %v1827_v43, %v297_v41  ;;  %v1829_v31 = vpop.f32.mrb[1].mxu1 }
 0x1d7   :  { %v2001_v45 = vpop.f32.mrb[1].mxu0  ;;  %v2329_v32 = vadd.f32 %v1829_v31, %v301_v42  ;;  %v1831_v33 = vpop.f32.mrb[2].mxu1 }
 0x1d8   :  { %v2003_v46 = vpop.f32.mrb[2].mxu0  ;;  %v2328_v47 = vadd.f32 %v2327_v26, %v1999_v44  ;;  %v2331_v48 = vadd.f32 %v1831_v33, %v297_v41  ;;  %v1833_v49 = vpop.f32.mrb[3].mxu1 }
 0x1d9   :  { %v2005_v50 = vpop.f32.mrb[3].mxu0  ;;  %v2330_v51 = vadd.f32 %v2329_v32, %v2001_v45  ;;  %v2333_v52 = vadd.f32 %v1833_v49, %v301_v42 }
 0x1da   :  { %2020 = vst [vmem:[%s3673_s4] sm:$0xff] %v2328_v47  ;;  %v2332_v53 = vadd.f32 %v2331_v48, %v2003_v46 }
 0x1db   :  { %v2010_v54 = vmul.f32 0.5, %v2330_v51  ;;  %2022 = vst [vmem:[%s3674_s5] sm:$0xff] %v2330_v51  ;;  %v2334_v55 = vadd.f32 %v2333_v52, %v2005_v50 }
 0x1dc   :  { %2021 = vst [vmem:[%s3673_s4 + $0x8] sm:$0xff] %v2332_v53 }
 0x1dd   :  { %v2012_v56 = vmul.f32 1.442695, %v2010_v54  ;;  %v2011_v57 = vmul.f32 0.5, %v2334_v55  ;;  %2023 = vst [vmem:[%s3674_s5 + $0x8] sm:$0xff] %v2334_v55 }
 0x1df   :  { %2743 = vpow2.f32 %v2012_v56  ;;  %v2014_v58 = vmul.f32 1.442695, %v2011_v57 }
 0x1e1   :  { %2745 = vpow2.f32 %v2014_v58 }
 0x1e9   :  { %v2744_v60 = vpop.eup %2743 }
 0x1ea   :  { %v2016_v62 = vmul.f32 %v2744_v60, %v2008_v59 }
 0x1eb   :  { %v2746_v63 = vpop.eup %2745 }
 0x1ec   :  { %v2018_v0 = vadd.f32 %v2328_v47, %v2016_v62  ;;  %v2017_v1 = vmul.f32 %v2746_v63, %v2009_v61 }
 0x1ee   :  { %v2019_v2 = vadd.f32 %v2332_v53, %v2017_v1 }
 0x1f0   :  { %v2325_v3 = vpack.c.bf16 %v2019_v2, %v2018_v0 }
 0x1f2   :  { %2326 = vst [vmem:[%s3676_s6] sm:$0xff] %v2325_v3  }

// kernel: vae_forward.14
= control target key start
LH: loop header
LB: loop body
LE: loop exit
PB: predicated region body
PF: predicated region fallthrough
CT: control target
= control target key end

     0   :  { %s1028_s1 = inlined_call_operand.vmem [shape: bf16[256,128], index: 1, kind: input, shape index: {}]   ;;  %s1029_s0 = inlined_call_operand.vmem [shape: bf16[176,256], index: 0, kind: input, shape index: {}]   ;;  %s1030_s2 = inlined_call_operand.vmem [shape: f32[1,128], index: 2, kind: input, shape index: {}]   ;;  %s1031_s3 = inlined_call_operand.vmem [shape: bf16[176,128], index: 3, kind: output, shape index: {}]  }
   0x1   :  { %v785_v0 = vld [vmem:[%s1028_s1 + $0x40] sm:$0xff]   ;;  %v787_v2 = vld [vmem:[%s1028_s1 + $0x48] sm:$0xff]   ;;  %v789_v4 = vld [vmem:[%s1028_s1 + $0x50] sm:$0xff]  }
   0x2   :  { %v786_v1 = vld [vmem:[%s1028_s1] sm:$0xff]   ;;  %687 = vmatprep.subr.bf16.mxu0 %v785_v0  ;;  %769 = vmatprep.subr.bf16.mxu1 %v785_v0  ;;  %v788_v3 = vld [vmem:[%s1028_s1 + $0x8] sm:$0xff]   ;;  %v790_v5 = vld [vmem:[%s1028_s1 + $0x10] sm:$0xff]  }
   0x3   :  { %688 = vmatpush3.bf16.msra.mxu0 %v786_v1  ;;  %777 = vmatpush3.bf16.msra.mxu1 %v786_v1  ;;  %v791_v6 = vld [vmem:[%s1028_s1 + $0x58] sm:$0xff]   ;;  %v793_v8 = vld [vmem:[%s1028_s1 + $0x60] sm:$0xff]   ;;  %v795_v10 = vld [vmem:[%s1028_s1 + $0x68] sm:$0xff]  }
   0x4   :  { %689 = vmatprep.subr.bf16.mxu0 %v787_v2  ;;  %770 = vmatprep.subr.bf16.mxu1 %v787_v2  ;;  %v792_v7 = vld [vmem:[%s1028_s1 + $0x18] sm:$0xff]   ;;  %v794_v9 = vld [vmem:[%s1028_s1 + $0x20] sm:$0xff]   ;;  %v796_v13 = vld [vmem:[%s1028_s1 + $0x28] sm:$0xff]  }
   0x5   :  { %v803_v11 = vld [vmem:[%s1029_s0 + $0x4] ss:$8 sps:$4 sm:$0xff]   ;;  %v797_v14 = vld [vmem:[%s1028_s1 + $0x70] sm:$0xff]   ;;  %v799_v16 = vld [vmem:[%s1028_s1 + $0x78] sm:$0xff]  }
   0x6   :  { %v806_v12 = vld [vmem:[%s1029_s0 + $0x64] ss:$8 sps:$4 sm:$0xff]   ;;  %314 = vmatprep.mubr.bf16.mxu0 %v803_v11  ;;  %v798_v15 = vld [vmem:[%s1028_s1 + $0x30] sm:$0xff]   ;;  %v800_v17 = vld [vmem:[%s1028_s1 + $0x38] sm:$0xff]  }
   0x7   :  { %690 = vmatpush3.bf16.msra.mxu0 %v788_v3  ;;  %778 = vmatpush3.bf16.msra.mxu1 %v788_v3  ;;  %v801_v18 = vld [vmem:[%s1029_s0] ss:$8 sps:$4 sm:$0xff]   ;;  %v807_v20 = vld [vmem:[%s1029_s0 + $0x14] ss:$8 sps:$4 sm:$0xff]   ;;  %v809_v22 = vld [vmem:[%s1029_s0 + $0x10] ss:$8 sps:$4 sm:$0xff]  }
   0x8   :  { %691 = vmatprep.subr.bf16.mxu0 %v789_v4  ;;  %771 = vmatprep.subr.bf16.mxu1 %v789_v4  ;;  %v804_v19 = vld [vmem:[%s1029_s0 + $0x60] ss:$8 sps:$4 sm:$0xff]   ;;  %v810_v21 = vld [vmem:[%s1029_s0 + $0x74] ss:$8 sps:$4 sm:$0xff]   ;;  %v812_v23 = vld [vmem:[%s1029_s0 + $0x70] ss:$8 sps:$4 sm:$0xff]  }
   0x9   :  { %362 = vmatprep.mubr.bf16.mxu1 %v806_v12  ;;  %v813_v24 = vld [vmem:[%s1029_s0 + $0x24] ss:$8 sps:$4 sm:$0xff]   ;;  %v815_v26 = vld [vmem:[%s1029_s0 + $0x20] ss:$8 sps:$4 sm:$0xff]   ;;  %v819_v28 = vld [vmem:[%s1029_s0 + $0x34] ss:$8 sps:$4 sm:$0xff]  }
   0xa   :  { %v816_v25 = vld [vmem:[%s1029_s0 + $0x84] ss:$8 sps:$4 sm:$0xff]   ;;  %v818_v27 = vld [vmem:[%s1029_s0 + $0x80] ss:$8 sps:$4 sm:$0xff]   ;;  %v822_v29 = vld [vmem:[%s1029_s0 + $0x94] ss:$8 sps:$4 sm:$0xff]  }
   0xb   :  { %692 = vmatpush3.bf16.msra.mxu0 %v790_v5  ;;  %779 = vmatpush3.bf16.msra.mxu1 %v790_v5  ;;  %v821_v30 = vld [vmem:[%s1029_s0 + $0x30] ss:$8 sps:$4 sm:$0xff]   ;;  %v825_v32 = vld [vmem:[%s1029_s0 + $0x44] ss:$8 sps:$4 sm:$0xff]   ;;  %v827_v34 = vld [vmem:[%s1029_s0 + $0x40] ss:$8 sps:$4 sm:$0xff]  }
   0xc   :  { %693 = vmatprep.subr.bf16.mxu0 %v791_v6  ;;  %772 = vmatprep.subr.bf16.mxu1 %v791_v6  ;;  %v824_v31 = vld [vmem:[%s1029_s0 + $0x90] ss:$8 sps:$4 sm:$0xff]   ;;  %v828_v33 = vld [vmem:[%s1029_s0 + $0xa4] ss:$8 sps:$4 sm:$0xff]   ;;  %v830_v35 = vld [vmem:[%s1029_s0 + $0xa0] ss:$8 sps:$4 sm:$0xff]  }
   0xd   :  { %v831_v36 = vld [vmem:[%s1029_s0 + $0x54] ss:$8 sps:$4 sm:$0xff]   ;;  %v833_v37 = vld [vmem:[%s1029_s0 + $0x50] ss:$8 sps:$4 sm:$0xff]   ;;  %v971_v40 = vld [vmem:[%s1030_s2] ss:$0 sm:$0xff] }
   0xf   :  { %694 = vmatpush3.bf16.msra.mxu0 %v792_v7  ;;  %780 = vmatpush3.bf16.msra.mxu1 %v792_v7 }
  0x10   :  { %695 = vmatprep.subr.bf16.mxu0 %v793_v8  ;;  %773 = vmatprep.subr.bf16.mxu1 %v793_v8 }
  0x13   :  { %696 = vmatpush3.bf16.msra.mxu0 %v794_v9  ;;  %781 = vmatpush3.bf16.msra.mxu1 %v794_v9 }
  0x14   :  { %697 = vmatprep.subr.bf16.mxu0 %v795_v10  ;;  %774 = vmatprep.subr.bf16.mxu1 %v795_v10 }
  0x17   :  { %698 = vmatpush3.bf16.msra.mxu0 %v796_v13  ;;  %782 = vmatpush3.bf16.msra.mxu1 %v796_v13 }
  0x18   :  { %699 = vmatprep.subr.bf16.mxu0 %v797_v14  ;;  %775 = vmatprep.subr.bf16.mxu1 %v797_v14 }
  0x1b   :  { %700 = vmatpush3.bf16.msra.mxu0 %v798_v15  ;;  %783 = vmatpush3.bf16.msra.mxu1 %v798_v15 }
  0x1c   :  { %701 = vmatprep.subr.bf16.mxu0 %v799_v16  ;;  %776 = vmatprep.subr.bf16.mxu1 %v799_v16 }
  0x1f   :  { %702 = vmatpush3.bf16.msra.mxu0 %v800_v17  ;;  %784 = vmatpush3.bf16.msra.mxu1 %v800_v17 }
  0x22   :  { %315 = vmatmul.mubr.bf16.vlgmr.msra.gmra.mrb[0].mxu0 %v801_v18  ;;  %363 = vmatmul.mubr.bf16.vlgmr.msra.gmra.mrb[0].mxu1 %v804_v19 }
  0x23   :  { %322 = vmatprep.mubr.bf16.mxu0 %v807_v20  ;;  %370 = vmatprep.mubr.bf16.mxu1 %v810_v21 }
  0x2a   :  { %323 = vmatmul.mubr.bf16.gmra.mrb[4].mxu0 %v809_v22  ;;  %371 = vmatmul.mubr.bf16.gmra.mrb[4].mxu1 %v812_v23 }
  0x2b   :  { %330 = vmatprep.mubr.bf16.mxu0 %v813_v24  ;;  %378 = vmatprep.mubr.bf16.mxu1 %v816_v25 }
  0x32   :  { %331 = vmatmul.mubr.bf16.gmra.mrb[8].mxu0 %v815_v26  ;;  %379 = vmatmul.mubr.bf16.gmra.mrb[8].mxu1 %v818_v27 }
  0x33   :  { %338 = vmatprep.mubr.bf16.mxu0 %v819_v28  ;;  %386 = vmatprep.mubr.bf16.mxu1 %v822_v29 }
  0x3a   :  { %339 = vmatmul.mubr.bf16.gmra.mrb[12].mxu0 %v821_v30  ;;  %387 = vmatmul.mubr.bf16.gmra.mrb[12].mxu1 %v824_v31 }
  0x3b   :  { %346 = vmatprep.mubr.bf16.mxu0 %v825_v32  ;;  %394 = vmatprep.mubr.bf16.mxu1 %v828_v33 }
  0x42   :  { %347 = vmatmul.mubr.bf16.gmra.mrb[16].mxu0 %v827_v34  ;;  %395 = vmatmul.mubr.bf16.gmra.mrb[16].mxu1 %v830_v35 }
  0x43   :  { %354 = vmatprep.mubr.bf16.mxu0 %v831_v36 }
  0x4a   :  { %355 = vmatmul.mubr.bf16.gmra.mrb[20].mxu0 %v833_v37 }
  0xf5   :  { %v703_v38 = vpop.f32.mrb[0].mxu0  ;;  %v739_v39 = vpop.f32.mrb[0].mxu1 }
  0xf6   :  { %v704_v41 = vpop.f32.mrb[1].mxu0  ;;  %v740_v42 = vpop.f32.mrb[1].mxu1 }
  0xf7   :  { %v705_v43 = vadd.f32 %v704_v41, %v703_v38  ;;  %v706_v44 = vpop.f32.mrb[2].mxu0  ;;  %v741_v45 = vadd.f32 %v740_v42, %v739_v39  ;;  %v742_v46 = vpop.f32.mrb[2].mxu1 }
  0xf8   :  { %v707_v47 = vpop.f32.mrb[3].mxu0  ;;  %v743_v48 = vpop.f32.mrb[3].mxu1 }
  0xf9   :  { %v317_v49 = vadd.f32 %v705_v43, %v971_v40  ;;  %v708_v50 = vadd.f32 %v707_v47, %v706_v44  ;;  %v365_v51 = vadd.f32 %v741_v45, %v971_v40  ;;  %v744_v52 = vadd.f32 %v743_v48, %v742_v46 }
  0xfb   :  { %v320_v53 = vadd.f32 %v708_v50, %v971_v40  ;;  %v415_v54 = vmax.f32 %v365_v51, 0.0  ;;  %v368_v55 = vadd.f32 %v744_v52, %v971_v40  ;;  %v403_v56 = vmax.f32 %v317_v49, 0.0 }
  0xfd   :  { %v404_v57 = vmax.f32 %v320_v53, 0.0  ;;  %v709_v58 = vpop.f32.mrb[4].mxu0  ;;  %v416_v59 = vmax.f32 %v368_v55, 0.0  ;;  %v745_v60 = vpop.f32.mrb[4].mxu1 }
  0xfe   :  { %v710_v61 = vpop.f32.mrb[5].mxu0  ;;  %v746_v62 = vpop.f32.mrb[5].mxu1 }
  0xff   :  { %v625_v63 = vpack.c.bf16 %v404_v57, %v403_v56  ;;  %v655_v0 = vpack.c.bf16 %v416_v59, %v415_v54  ;;  %v711_v1 = vadd.f32 %v710_v61, %v709_v58  ;;  %v712_v2 = vpop.f32.mrb[6].mxu0  ;;  %v747_v3 = vadd.f32 %v746_v62, %v745_v60  ;;  %v748_v4 = vpop.f32.mrb[6].mxu1 }
 0x100   :  { %v713_v5 = vpop.f32.mrb[7].mxu0  ;;  %v749_v6 = vpop.f32.mrb[7].mxu1 }
 0x101   :  { %626 = vst [vmem:[%s1031_s3] sm:$0xff] %v625_v63   ;;  %682 = vst [vmem:[%s1031_s3 + $0x30] sm:$0xff] %v655_v0   ;;  %v325_v7 = vadd.f32 %v711_v1, %v971_v40  ;;  %v714_v8 = vadd.f32 %v713_v5, %v712_v2  ;;  %v373_v9 = vadd.f32 %v747_v3, %v971_v40 }
 0x102   :  { %v750_v10 = vadd.f32 %v749_v6, %v748_v4 }
 0x103   :  { %v328_v11 = vadd.f32 %v714_v8, %v971_v40  ;;  %v417_v12 = vmax.f32 %v373_v9, 0.0  ;;  %v405_v14 = vmax.f32 %v325_v7, 0.0 }
 0x104   :  { %v376_v13 = vadd.f32 %v750_v10, %v971_v40 }
 0x105   :  { %v406_v15 = vmax.f32 %v328_v11, 0.0  ;;  %v715_v16 = vpop.f32.mrb[8].mxu0  ;;  %v751_v18 = vpop.f32.mrb[8].mxu1 }
 0x106   :  { %v418_v17 = vmax.f32 %v376_v13, 0.0  ;;  %v716_v19 = vpop.f32.mrb[9].mxu0  ;;  %v752_v20 = vpop.f32.mrb[9].mxu1 }
 0x107   :  { %v630_v21 = vpack.c.bf16 %v406_v15, %v405_v14  ;;  %v717_v23 = vadd.f32 %v716_v19, %v715_v16  ;;  %v718_v24 = vpop.f32.mrb[10].mxu0  ;;  %v753_v25 = vadd.f32 %v752_v20, %v751_v18  ;;  %v754_v26 = vpop.f32.mrb[10].mxu1 }
 0x108   :  { %v660_v22 = vpack.c.bf16 %v418_v17, %v417_v12  ;;  %v719_v27 = vpop.f32.mrb[11].mxu0  ;;  %v755_v28 = vpop.f32.mrb[11].mxu1 }
 0x109   :  { %677 = vst [vmem:[%s1031_s3 + $0x8] sm:$0xff] %v630_v21   ;;  %v333_v29 = vadd.f32 %v717_v23, %v971_v40  ;;  %v720_v30 = vadd.f32 %v719_v27, %v718_v24  ;;  %v381_v31 = vadd.f32 %v753_v25, %v971_v40  ;;  %v756_v32 = vadd.f32 %v755_v28, %v754_v26 }
 0x10a   :  { %683 = vst [vmem:[%s1031_s3 + $0x38] sm:$0xff] %v660_v22  }
 0x10b   :  { %v336_v33 = vadd.f32 %v720_v30, %v971_v40  ;;  %v419_v34 = vmax.f32 %v381_v31, 0.0  ;;  %v384_v35 = vadd.f32 %v756_v32, %v971_v40  ;;  %v407_v36 = vmax.f32 %v333_v29, 0.0 }
 0x10d   :  { %v408_v37 = vmax.f32 %v336_v33, 0.0  ;;  %v721_v38 = vpop.f32.mrb[12].mxu0  ;;  %v420_v39 = vmax.f32 %v384_v35, 0.0  ;;  %v757_v41 = vpop.f32.mrb[12].mxu1 }
 0x10e   :  { %v722_v42 = vpop.f32.mrb[13].mxu0  ;;  %v758_v43 = vpop.f32.mrb[13].mxu1 }
 0x10f   :  { %v635_v44 = vpack.c.bf16 %v408_v37, %v407_v36  ;;  %v665_v45 = vpack.c.bf16 %v420_v39, %v419_v34  ;;  %v723_v46 = vadd.f32 %v722_v42, %v721_v38  ;;  %v724_v47 = vpop.f32.mrb[14].mxu0  ;;  %v759_v48 = vadd.f32 %v758_v43, %v757_v41  ;;  %v760_v49 = vpop.f32.mrb[14].mxu1 }
 0x110   :  { %v725_v50 = vpop.f32.mrb[15].mxu0  ;;  %v761_v51 = vpop.f32.mrb[15].mxu1 }
 0x111   :  { %678 = vst [vmem:[%s1031_s3 + $0x10] sm:$0xff] %v635_v44   ;;  %684 = vst [vmem:[%s1031_s3 + $0x40] sm:$0xff] %v665_v45   ;;  %v341_v52 = vadd.f32 %v723_v46, %v971_v40  ;;  %v726_v53 = vadd.f32 %v725_v50, %v724_v47  ;;  %v389_v54 = vadd.f32 %v759_v48, %v971_v40 }
 0x112   :  { %v762_v55 = vadd.f32 %v761_v51, %v760_v49 }
 0x113   :  { %v344_v56 = vadd.f32 %v726_v53, %v971_v40  ;;  %v421_v57 = vmax.f32 %v389_v54, 0.0  ;;  %v409_v59 = vmax.f32 %v341_v52, 0.0 }
 0x114   :  { %v392_v58 = vadd.f32 %v762_v55, %v971_v40 }
 0x115   :  { %v410_v60 = vmax.f32 %v344_v56, 0.0  ;;  %v727_v61 = vpop.f32.mrb[16].mxu0  ;;  %v763_v63 = vpop.f32.mrb[16].mxu1 }
 0x116   :  { %v422_v62 = vmax.f32 %v392_v58, 0.0  ;;  %v728_v0 = vpop.f32.mrb[17].mxu0  ;;  %v764_v1 = vpop.f32.mrb[17].mxu1 }
 0x117   :  { %v640_v2 = vpack.c.bf16 %v410_v60, %v409_v59  ;;  %v729_v4 = vadd.f32 %v728_v0, %v727_v61  ;;  %v730_v5 = vpop.f32.mrb[18].mxu0  ;;  %v765_v6 = vadd.f32 %v764_v1, %v763_v63  ;;  %v766_v7 = vpop.f32.mrb[18].mxu1 }
 0x118   :  { %v670_v3 = vpack.c.bf16 %v422_v62, %v421_v57  ;;  %v731_v8 = vpop.f32.mrb[19].mxu0  ;;  %v767_v9 = vpop.f32.mrb[19].mxu1 }
 0x119   :  { %679 = vst [vmem:[%s1031_s3 + $0x18] sm:$0xff] %v640_v2   ;;  %v349_v10 = vadd.f32 %v729_v4, %v971_v40  ;;  %v732_v11 = vadd.f32 %v731_v8, %v730_v5  ;;  %v397_v12 = vadd.f32 %v765_v6, %v971_v40  ;;  %v768_v13 = vadd.f32 %v767_v9, %v766_v7 }
 0x11a   :  { %685 = vst [vmem:[%s1031_s3 + $0x48] sm:$0xff] %v670_v3  }
 0x11b   :  { %v352_v14 = vadd.f32 %v732_v11, %v971_v40  ;;  %v423_v15 = vmax.f32 %v397_v12, 0.0  ;;  %v400_v16 = vadd.f32 %v768_v13, %v971_v40  ;;  %v411_v17 = vmax.f32 %v349_v10, 0.0 }
 0x11d   :  { %v412_v18 = vmax.f32 %v352_v14, 0.0  ;;  %v733_v19 = vpop.f32.mrb[20].mxu0  ;;  %v424_v20 = vmax.f32 %v400_v16, 0.0 }
 0x11e   :  { %v734_v21 = vpop.f32.mrb[21].mxu0 }
 0x11f   :  { %v645_v22 = vpack.c.bf16 %v412_v18, %v411_v17  ;;  %v675_v23 = vpack.c.bf16 %v424_v20, %v423_v15  ;;  %v735_v24 = vadd.f32 %v734_v21, %v733_v19  ;;  %v736_v25 = vpop.f32.mrb[22].mxu0 }
 0x120   :  { %v737_v26 = vpop.f32.mrb[23].mxu0 }
 0x121   :  { %680 = vst [vmem:[%s1031_s3 + $0x20] sm:$0xff] %v645_v22   ;;  %686 = vst [vmem:[%s1031_s3 + $0x50] sm:$0xff] %v675_v23   ;;  %v357_v27 = vadd.f32 %v735_v24, %v971_v40  ;;  %v738_v28 = vadd.f32 %v737_v26, %v736_v25 }
 0x123   :  { %v360_v29 = vadd.f32 %v738_v28, %v971_v40  ;;  %v413_v30 = vmax.f32 %v357_v27, 0.0 }
 0x125   :  { %v414_v31 = vmax.f32 %v360_v29, 0.0 }
 0x127   :  { %v650_v32 = vpack.c.bf16 %v414_v31, %v413_v30 }
 0x129   :  { %681 = vst [vmem:[%s1031_s3 + $0x28] sm:$0xff] %v650_v32  }

// kernel: vae_forward.15
= control target key start
LH: loop header
LB: loop body
LE: loop exit
PB: predicated region body
PF: predicated region fallthrough
CT: control target
= control target key end

     0   :  { %s1095_s12 = smov 0   ;;  %s1247_s0 = inlined_call_operand.vmem [shape: bf16[768,128], index: 0, kind: input, shape index: {}]   ;;  %s1248_s1 = inlined_call_operand.vmem [shape: bf16[128,128], index: 1, kind: input, shape index: {}]   ;;  %s1249_s2 = inlined_call_operand.vmem [shape: f32[1,128], index: 2, kind: input, shape index: {}]   ;;  %s1250_s3 = inlined_call_operand.vmem [shape: f32[768,128], index: 3, kind: output, shape index: {}]  }
   0x1 LB: > { %s783_s13 = sadd.s32 4294967295, %s1073_s12   ;;  %p787_p0 = scmp.ge.s32.totalorder %s1073_s12, 1  ;;  %s1073_s12 = sphi %s1095_s12, %s13_s12  }
   0x2   : > { %p138_p1 = scmp.lt.s32.totalorder %s1073_s12, 4 }
   0x4   : > { %p139_p2 = pnand %p787_p0, %p138_p1 }
   0x5   : > { %v915_v0 = vld [vmem:[%s1248_s1] sm:$0xff] (!%p139_p2)   ;;  %s788_s16 = sshll.u32 (!%p139_p2), %s783_s13, 5  ;;  %v916_v1 = vld [vmem:[%s1248_s1 + $0x8] sm:$0xff] (!%p139_p2)   ;;  %v917_v2 = vld [vmem:[%s1248_s1 + $0x10] sm:$0xff] (!%p139_p2)  }
   0x6   : > { %142 = sbr.rel (%p139_p2) target bundleno = 340 (0x154), region = 32  ;;  %p163_p3 = scmp.lt.s32.totalorder (!%p139_p2), %s788_s16, 95  ;;  %843 = vmatprep.subr.bf16.mxu0 (!%p139_p2), %v915_v0  ;;  %891 = vmatprep.subr.bf16.mxu1 (!%p139_p2), %v915_v0  ;;  %v918_v3 = vld [vmem:[%s1248_s1 + $0x18] sm:$0xff] (!%p139_p2)   ;;  %v919_v6 = vld [vmem:[%s1248_s1 + $0x20] sm:$0xff] (!%p139_p2)   ;;  %v920_v7 = vld [vmem:[%s1248_s1 + $0x28] sm:$0xff] (!%p139_p2)  }
   0x7   : > { %844 = vmatpush3.bf16.msra.mxu0 (!%p139_p2), %v915_v0  ;;  %899 = vmatpush3.bf16.msra.mxu1 (!%p139_p2), %v915_v0  ;;  %v921_v8 = vld [vmem:[%s1248_s1 + $0x30] sm:$0xff] (!%p139_p2)   ;;  %v922_v9 = vld [vmem:[%s1248_s1 + $0x38] sm:$0xff] (!%p139_p2)   ;;  %v1154_v24 = vld [vmem:[%s1249_s2] ss:$0 sm:$0xff] (!%p139_p2) }
   0x8   : > { %845 = vmatprep.subr.bf16.mxu0 (!%p139_p2), %v916_v1  ;;  %892 = vmatprep.subr.bf16.mxu1 (!%p139_p2), %v916_v1 }
   0xb   : > { %846 = vmatpush3.bf16.msra.mxu0 (!%p139_p2), %v916_v1  ;;  %900 = vmatpush3.bf16.msra.mxu1 (!%p139_p2), %v916_v1 }
   0xc   : > { %847 = vmatprep.subr.bf16.mxu0 (!%p139_p2), %v917_v2  ;;  %893 = vmatprep.subr.bf16.mxu1 (!%p139_p2), %v917_v2 }
   0xd   : > { %s1252_s16 = smov (!%p163_p3, %s788_s16), 95 }
   0xe   : > { %s789_s21 = sshll.u32 %s1252_s16, 2  ;;  %s791_s10 = sshll.u32 %s1252_s16, 3 }
   0xf   : > { %s1118_s24 = scalar_lea.vmem %s1247_s0, %s789_s21  ;;  %848 = vmatpush3.bf16.msra.mxu0 %v917_v2  ;;  %901 = vmatpush3.bf16.msra.mxu1 %v917_v2  ;;  %s1192_s14 = scalar_lea.vmem %s1250_s3, %s791_s10 }
  0x10   : > { %v923_v4 = vld [vmem:[%s1118_s24] sm:$0xff]   ;;  %849 = vmatprep.subr.bf16.mxu0 %v918_v3  ;;  %894 = vmatprep.subr.bf16.mxu1 %v918_v3  ;;  %v925_v10 = vld [vmem:[%s1118_s24 + $0x8] sm:$0xff]   ;;  %v927_v12 = vld [vmem:[%s1118_s24 + $0x10] sm:$0xff]  }
  0x11   : > { %v924_v5 = vld [vmem:[%s1118_s24 + $0x40] sm:$0xff]   ;;  %859 = vmatprep.mubr.bf16.mxu0 %v923_v4  ;;  %v926_v11 = vld [vmem:[%s1118_s24 + $0x48] sm:$0xff]   ;;  %v928_v13 = vld [vmem:[%s1118_s24 + $0x50] sm:$0xff]  }
  0x12   : > { %875 = vmatprep.mubr.bf16.mxu1 %v924_v5  ;;  %v929_v14 = vld [vmem:[%s1118_s24 + $0x18] sm:$0xff]   ;;  %v931_v16 = vld [vmem:[%s1118_s24 + $0x20] sm:$0xff]   ;;  %v933_v18 = vld [vmem:[%s1118_s24 + $0x28] sm:$0xff]  }
  0x13   : > { %850 = vmatpush3.bf16.msra.mxu0 %v918_v3  ;;  %902 = vmatpush3.bf16.msra.mxu1 %v918_v3  ;;  %v930_v15 = vld [vmem:[%s1118_s24 + $0x58] sm:$0xff]   ;;  %v932_v17 = vld [vmem:[%s1118_s24 + $0x60] sm:$0xff]   ;;  %v934_v19 = vld [vmem:[%s1118_s24 + $0x68] sm:$0xff]  }
  0x14   : > { %851 = vmatprep.subr.bf16.mxu0 %v919_v6  ;;  %895 = vmatprep.subr.bf16.mxu1 %v919_v6  ;;  %v935_v20 = vld [vmem:[%s1118_s24 + $0x30] sm:$0xff]   ;;  %v937_v22 = vld [vmem:[%s1118_s24 + $0x38] sm:$0xff]  }
  0x15   : > { %v936_v21 = vld [vmem:[%s1118_s24 + $0x70] sm:$0xff]   ;;  %v938_v23 = vld [vmem:[%s1118_s24 + $0x78] sm:$0xff]  }
  0x17   : > { %852 = vmatpush3.bf16.msra.mxu0 %v919_v6  ;;  %903 = vmatpush3.bf16.msra.mxu1 %v919_v6 }
  0x18   : > { %853 = vmatprep.subr.bf16.mxu0 %v920_v7  ;;  %896 = vmatprep.subr.bf16.mxu1 %v920_v7 }
  0x1b   : > { %854 = vmatpush3.bf16.msra.mxu0 %v920_v7  ;;  %904 = vmatpush3.bf16.msra.mxu1 %v920_v7 }
  0x1c   : > { %855 = vmatprep.subr.bf16.mxu0 %v921_v8  ;;  %897 = vmatprep.subr.bf16.mxu1 %v921_v8 }
  0x1f   : > { %856 = vmatpush3.bf16.msra.mxu0 %v921_v8  ;;  %905 = vmatpush3.bf16.msra.mxu1 %v921_v8 }
  0x20   : > { %857 = vmatprep.subr.bf16.mxu0 %v922_v9  ;;  %898 = vmatprep.subr.bf16.mxu1 %v922_v9 }
  0x23   : > { %858 = vmatpush3.bf16.msra.mxu0 %v922_v9  ;;  %906 = vmatpush3.bf16.msra.mxu1 %v922_v9 }
  0x26   : > { %860 = vmatmul.mubr.bf16.vlgmr.msra.gmra.mrb[0].mxu0 %v925_v10  ;;  %876 = vmatmul.mubr.bf16.vlgmr.msra.gmra.mrb[0].mxu1 %v926_v11 }
  0x27   : > { %863 = vmatprep.mubr.bf16.mxu0 %v927_v12  ;;  %879 = vmatprep.mubr.bf16.mxu1 %v928_v13 }
  0x2e   : > { %864 = vmatmul.mubr.bf16.gmra.mrb[4].mxu0 %v929_v14  ;;  %880 = vmatmul.mubr.bf16.gmra.mrb[4].mxu1 %v930_v15 }
  0x2f   : > { %867 = vmatprep.mubr.bf16.mxu0 %v931_v16  ;;  %883 = vmatprep.mubr.bf16.mxu1 %v932_v17 }
  0x36   : > { %868 = vmatmul.mubr.bf16.gmra.mrb[8].mxu0 %v933_v18  ;;  %884 = vmatmul.mubr.bf16.gmra.mrb[8].mxu1 %v934_v19 }
  0x37   : > { %871 = vmatprep.mubr.bf16.mxu0 %v935_v20  ;;  %887 = vmatprep.mubr.bf16.mxu1 %v936_v21 }
  0x3e   : > { %872 = vmatmul.mubr.bf16.gmra.mrb[12].mxu0 %v937_v22  ;;  %888 = vmatmul.mubr.bf16.gmra.mrb[12].mxu1 %v938_v23 }
  0xf9   : > { %v861_v25 = vpop.f32.mrb[0].mxu0  ;;  %v877_v26 = vpop.f32.mrb[0].mxu1 }
  0xfa   : > { %v417_v27 = vadd.f32 %v861_v25, %v1154_v24  ;;  %v481_v28 = vadd.f32 %v877_v26, %v1154_v24  ;;  %v408_v29 = vpop.f32.mrb[1].mxu0  ;;  %v472_v30 = vpop.f32.mrb[1].mxu1 }
  0xfb   : > { %v409_v31 = vadd.f32 %v1154_v24, %v408_v29  ;;  %v473_v32 = vadd.f32 %v1154_v24, %v472_v30  ;;  %v862_v33 = vpop.f32.mrb[2].mxu0  ;;  %v878_v34 = vpop.f32.mrb[2].mxu1 }
  0xfc   : > { %v537_v35 = vsub.f32 0.0, %v417_v27  ;;  %v553_v36 = vsub.f32 0.0, %v481_v28  ;;  %v420_v37 = vadd.f32 %v862_v33, %v1154_v24  ;;  %v484_v38 = vadd.f32 %v878_v34, %v1154_v24  ;;  %v411_v39 = vpop.f32.mrb[3].mxu0  ;;  %v475_v40 = vpop.f32.mrb[3].mxu1 }
  0xfd   : > { %v535_v41 = vsub.f32 0.0, %v409_v31  ;;  %v551_v42 = vsub.f32 0.0, %v473_v32  ;;  %v412_v43 = vadd.f32 %v1154_v24, %v411_v39  ;;  %v476_v44 = vadd.f32 %v1154_v24, %v475_v40 }
  0xfe   : > { %v571_v45 = vmul.f32 1.442695, %v537_v35  ;;  %v603_v46 = vmul.f32 1.442695, %v553_v36  ;;  %v538_v47 = vsub.f32 0.0, %v420_v37  ;;  %v554_v48 = vsub.f32 0.0, %v484_v38 }
  0xff   : > { %v567_v49 = vmul.f32 1.442695, %v535_v41  ;;  %v599_v50 = vmul.f32 1.442695, %v551_v42  ;;  %v536_v51 = vsub.f32 0.0, %v412_v43  ;;  %v552_v52 = vsub.f32 0.0, %v476_v44 }
 0x100   : > { %939 = vpow2.f32 %v571_v45  ;;  %v573_v53 = vmul.f32 1.442695, %v538_v47  ;;  %v605_v54 = vmul.f32 1.442695, %v554_v48 }
 0x101   : > { %941 = vpow2.f32 %v603_v46  ;;  %v865_v55 = vpop.f32.mrb[4].mxu0  ;;  %v881_v56 = vpop.f32.mrb[4].mxu1  ;;  %v569_v57 = vmul.f32 1.442695, %v536_v51  ;;  %v601_v62 = vmul.f32 1.442695, %v552_v52 }
 0x102   : > { %943 = vpow2.f32 %v567_v49  ;;  %v433_v58 = vadd.f32 %v865_v55, %v1154_v24  ;;  %v497_v59 = vadd.f32 %v881_v56, %v1154_v24  ;;  %v424_v60 = vpop.f32.mrb[5].mxu0  ;;  %v488_v61 = vpop.f32.mrb[5].mxu1 }
 0x103   : > { %945 = vpow2.f32 %v599_v50  ;;  %v425_v63 = vadd.f32 %v1154_v24, %v424_v60  ;;  %v489_v0 = vadd.f32 %v1154_v24, %v488_v61  ;;  %v866_v1 = vpop.f32.mrb[6].mxu0  ;;  %v882_v2 = vpop.f32.mrb[6].mxu1 }
 0x104   : > { %947 = vpow2.f32 %v573_v53  ;;  %v541_v3 = vsub.f32 0.0, %v433_v58  ;;  %v557_v4 = vsub.f32 0.0, %v497_v59  ;;  %v436_v5 = vadd.f32 %v866_v1, %v1154_v24  ;;  %v427_v6 = vpop.f32.mrb[7].mxu0  ;;  %v491_v7 = vpop.f32.mrb[7].mxu1 }
 0x105   : > { %949 = vpow2.f32 %v605_v54  ;;  %v539_v8 = vsub.f32 0.0, %v425_v63  ;;  %v555_v9 = vsub.f32 0.0, %v489_v0  ;;  %v500_v19 = vadd.f32 %v882_v2, %v1154_v24 }
 0x106   : > { %951 = vpow2.f32 %v569_v57  ;;  %v579_v10 = vmul.f32 1.442695, %v541_v3  ;;  %v611_v11 = vmul.f32 1.442695, %v557_v4  ;;  %v542_v12 = vsub.f32 0.0, %v436_v5 }
 0x107   : > { %953 = vpow2.f32 %v601_v62  ;;  %v575_v13 = vmul.f32 1.442695, %v539_v8  ;;  %v607_v14 = vmul.f32 1.442695, %v555_v9  ;;  %v428_v29 = vadd.f32 %v1154_v24, %v427_v6 }
 0x108   : > { %955 = vpow2.f32 %v579_v10  ;;  %v581_v15 = vmul.f32 1.442695, %v542_v12  ;;  %v558_v36 = vsub.f32 0.0, %v500_v19  ;;  %v492_v39 = vadd.f32 %v1154_v24, %v491_v7 }
 0x109   : > { %957 = vpow2.f32 %v611_v11  ;;  %v869_v16 = vpop.f32.mrb[8].mxu0  ;;  %v885_v17 = vpop.f32.mrb[8].mxu1  ;;  %v540_v42 = vsub.f32 0.0, %v428_v29 }
 0x10a   : > { %v940_v18 = vpop.eup %939  ;;  %959 = vpow2.f32 %v575_v13  ;;  %v440_v20 = vpop.f32.mrb[9].mxu0  ;;  %v449_v45 = vadd.f32 %v869_v16, %v1154_v24  ;;  %v613_v50 = vmul.f32 1.442695, %v558_v36  ;;  %v513_v51 = vadd.f32 %v885_v17, %v1154_v24 }
 0x10b   : > { %v504_v21 = vpop.f32.mrb[9].mxu1  ;;  %v942_v22 = vpop.eup %941  ;;  %v633_v23 = vadd.f32 1.0, %v940_v18  ;;  %961 = vpow2.f32 %v607_v14  ;;  %v556_v56 = vsub.f32 0.0, %v492_v39  ;;  %v441_v57 = vadd.f32 %v1154_v24, %v440_v20 }
 0x10c   : > { %v870_v25 = vpop.f32.mrb[10].mxu0  ;;  %v886_v26 = vpop.f32.mrb[10].mxu1  ;;  %v649_v28 = vadd.f32 1.0, %v942_v22  ;;  %963 = vpow2.f32 %v581_v15  ;;  %v577_v62 = vmul.f32 1.442695, %v540_v42  ;;  %v505_v63 = vadd.f32 %v1154_v24, %v504_v21 }
 0x10d   : > { %v944_v27 = vpop.eup %943  ;;  %v443_v30 = vpop.f32.mrb[11].mxu0  ;;  %965 = vrcp.f32 %v633_v23  ;;  %v545_v4 = vsub.f32 0.0, %v449_v45  ;;  %v452_v5 = vadd.f32 %v870_v25, %v1154_v24  ;;  %v561_v8 = vsub.f32 0.0, %v513_v51 }
 0x10e   : > { %v946_v31 = vpop.eup %945  ;;  %v631_v32 = vadd.f32 1.0, %v944_v27  ;;  %v507_v33 = vpop.f32.mrb[11].mxu1  ;;  %967 = vrcp.f32 %v649_v28  ;;  %v516_v9 = vadd.f32 %v886_v26, %v1154_v24  ;;  %v543_v12 = vsub.f32 0.0, %v441_v57 }
 0x10f   : > { %v948_v34 = vpop.eup %947  ;;  %v647_v35 = vadd.f32 1.0, %v946_v31  ;;  %v444_v13 = vadd.f32 %v1154_v24, %v443_v30  ;;  %v609_v15 = vmul.f32 1.442695, %v556_v56  ;;  %v559_v16 = vsub.f32 0.0, %v505_v63 }
 0x110   : > { %v950_v37 = vpop.eup %949  ;;  %969 = vrcp.f32 %v631_v32  ;;  %v634_v38 = vadd.f32 1.0, %v948_v34  ;;  %v508_v17 = vadd.f32 %v1154_v24, %v507_v33  ;;  %v587_v19 = vmul.f32 1.442695, %v545_v4 }
 0x111   : > { %v952_v40 = vpop.eup %951  ;;  %971 = vrcp.f32 %v647_v35  ;;  %v650_v41 = vadd.f32 1.0, %v950_v37  ;;  %v873_v46 = vpop.f32.mrb[12].mxu0  ;;  %v546_v20 = vsub.f32 0.0, %v452_v5  ;;  %v619_v23 = vmul.f32 1.442695, %v561_v8 }
 0x112   : > { %v954_v43 = vpop.eup %953  ;;  %973 = vrcp.f32 %v634_v38  ;;  %v632_v44 = vadd.f32 1.0, %v952_v40  ;;  %v889_v47 = vpop.f32.mrb[12].mxu1  ;;  %v465_v21 = vadd.f32 %v873_v46, %v1154_v24  ;;  %v562_v25 = vsub.f32 0.0, %v516_v9 }
 0x113   : > { %v956_v48 = vpop.eup %955  ;;  %975 = vrcp.f32 %v650_v41  ;;  %v648_v49 = vadd.f32 1.0, %v954_v43  ;;  %v1175_v52 = vpop.f32.mrb[13].mxu0  ;;  %v529_v26 = vadd.f32 %v889_v47, %v1154_v24  ;;  %v583_v28 = vmul.f32 1.442695, %v543_v12 }
 0x114   : > { %v1177_v53 = vpop.f32.mrb[13].mxu1  ;;  %v958_v54 = vpop.eup %957  ;;  %977 = vrcp.f32 %v632_v44  ;;  %v637_v55 = vadd.f32 1.0, %v956_v48  ;;  %v544_v29 = vsub.f32 0.0, %v444_v13  ;;  %v615_v31 = vmul.f32 1.442695, %v559_v16 }
 0x115   : > { %v1180_v58 = vpop.f32.mrb[14].mxu0  ;;  %v1182_v59 = vpop.f32.mrb[14].mxu1  ;;  %979 = vrcp.f32 %v648_v49  ;;  %v653_v61 = vadd.f32 1.0, %v958_v54  ;;  %v560_v32 = vsub.f32 0.0, %v508_v17  ;;  %v589_v34 = vmul.f32 1.442695, %v546_v20 }
 0x116   : > { %v960_v60 = vpop.eup %959  ;;  %v1185_v0 = vpop.f32.mrb[15].mxu0  ;;  %981 = vrcp.f32 %v637_v55  ;;  %v549_v35 = vsub.f32 0.0, %v465_v21  ;;  %v621_v37 = vmul.f32 1.442695, %v562_v25  ;;  %v565_v38 = vsub.f32 0.0, %v529_v26 }
 0x117   : > { %v1187_v1 = vpop.f32.mrb[15].mxu1  ;;  %v962_v2 = vpop.eup %961  ;;  %v635_v3 = vadd.f32 1.0, %v960_v60  ;;  %983 = vrcp.f32 %v653_v61  ;;  %v585_v40 = vmul.f32 1.442695, %v544_v29  ;;  %v617_v42 = vmul.f32 1.442695, %v560_v32 }
 0x118   : > { %v964_v6 = vpop.eup %963  ;;  %v651_v7 = vadd.f32 1.0, %v962_v2  ;;  %v595_v44 = vmul.f32 1.442695, %v549_v35  ;;  %v627_v46 = vmul.f32 1.442695, %v565_v38  ;;  %v457_v61 = vadd.f32 %v1154_v24, %v1175_v52 }
 0x119   : > { %v966_v10 = vpop.eup %965  ;;  %985 = vrcp.f32 %v635_v3  ;;  %v638_v11 = vadd.f32 1.0, %v964_v6  ;;  %v521_v2 = vadd.f32 %v1154_v24, %v1177_v53  ;;  %v468_v5 = vadd.f32 %v1180_v58, %v1154_v24 }
 0x11a   : > { %v968_v14 = vpop.eup %967  ;;  %697 = vst [vmem:[%s1192_s14 + $0x10] sm:$0xff] %v966_v10  ;;  %987 = vrcp.f32 %v651_v7  ;;  %v532_v8 = vadd.f32 %v1182_v59, %v1154_v24  ;;  %v547_v10 = vsub.f32 0.0, %v457_v61  ;;  %v524_v58 = vadd.f32 %v1154_v24, %v1187_v1 }
 0x11b   : > { %v970_v18 = vpop.eup %969  ;;  %713 = vst [vmem:[%s1192_s14 + $0x90] sm:$0xff] %v968_v14  ;;  %989 = vrcp.f32 %v638_v11  ;;  %v460_v11 = vadd.f32 %v1154_v24, %v1185_v0  ;;  %v563_v13 = vsub.f32 0.0, %v521_v2  ;;  %v550_v16 = vsub.f32 0.0, %v468_v5 }
 0x11c   : > { %v972_v22 = vpop.eup %971  ;;  %695 = vst [vmem:[%s1192_s14] sm:$0xff] %v970_v18  ;;  %991 = vpow2.f32 %v613_v50  ;;  %v566_v18 = vsub.f32 0.0, %v532_v8  ;;  %v591_v20 = vmul.f32 1.442695, %v547_v10  ;;  %v564_v1 = vsub.f32 0.0, %v524_v58 }
 0x11d   : > { %v974_v27 = vpop.eup %973  ;;  %711 = vst [vmem:[%s1192_s14 + $0x80] sm:$0xff] %v972_v22  ;;  %993 = vpow2.f32 %v577_v62  ;;  %v548_v21 = vsub.f32 0.0, %v460_v11  ;;  %v623_v24 = vmul.f32 1.442695, %v563_v13  ;;  %v597_v26 = vmul.f32 1.442695, %v550_v16 }
 0x11e   : > { %v976_v30 = vpop.eup %975  ;;  %698 = vst [vmem:[%s1192_s14 + $0x18] sm:$0xff] %v974_v27  ;;  %995 = vpow2.f32 %v609_v15  ;;  %v625_v32 = vmul.f32 1.442695, %v564_v1 }
 0x11f   : > { %v978_v33 = vpop.eup %977  ;;  %714 = vst [vmem:[%s1192_s14 + $0x98] sm:$0xff] %v976_v30  ;;  %997 = vpow2.f32 %v587_v19  ;;  %v593_v30 = vmul.f32 1.442695, %v548_v21 }
 0x120   : > { %v980_v36 = vpop.eup %979  ;;  %696 = vst [vmem:[%s1192_s14 + $0x8] sm:$0xff] %v978_v33  ;;  %999 = vpow2.f32 %v619_v23 }
 0x121   : > { %v982_v39 = vpop.eup %981  ;;  %712 = vst [vmem:[%s1192_s14 + $0x88] sm:$0xff] %v980_v36  ;;  %1001 = vpow2.f32 %v583_v28  ;;  %v629_v28 = vmul.f32 1.442695, %v566_v18 }
 0x122   : > { %v984_v41 = vpop.eup %983  ;;  %701 = vst [vmem:[%s1192_s14 + $0x30] sm:$0xff] %v982_v39  ;;  %1003 = vpow2.f32 %v615_v31 }
 0x123   : > { %v986_v43 = vpop.eup %985  ;;  %717 = vst [vmem:[%s1192_s14 + $0xb0] sm:$0xff] %v984_v41  ;;  %1005 = vpow2.f32 %v589_v34 }
 0x124   : > { %v988_v45 = vpop.eup %987  ;;  %699 = vst [vmem:[%s1192_s14 + $0x20] sm:$0xff] %v986_v43  ;;  %1007 = vpow2.f32 %v621_v37 }
 0x125   : > { %v990_v47 = vpop.eup %989  ;;  %715 = vst [vmem:[%s1192_s14 + $0xa0] sm:$0xff] %v988_v45  ;;  %1009 = vpow2.f32 %v585_v40 }
 0x126   : > { %v992_v48 = vpop.eup %991  ;;  %702 = vst [vmem:[%s1192_s14 + $0x38] sm:$0xff] %v990_v47  ;;  %1011 = vpow2.f32 %v617_v42 }
 0x127   : > { %v994_v49 = vpop.eup %993  ;;  %v654_v50 = vadd.f32 1.0, %v992_v48  ;;  %1013 = vpow2.f32 %v595_v44 }
 0x128   : > { %v996_v51 = vpop.eup %995  ;;  %v636_v54 = vadd.f32 1.0, %v994_v49  ;;  %1015 = vpow2.f32 %v627_v46 }
 0x129   : > { %v998_v55 = vpop.eup %997  ;;  %1017 = vrcp.f32 %v654_v50  ;;  %v652_v56 = vadd.f32 1.0, %v996_v51 }
 0x12a   : > { %v1000_v57 = vpop.eup %999  ;;  %1019 = vrcp.f32 %v636_v54  ;;  %v641_v60 = vadd.f32 1.0, %v998_v55 }
 0x12b   : > { %v1002_v62 = vpop.eup %1001  ;;  %1021 = vrcp.f32 %v652_v56  ;;  %v657_v63 = vadd.f32 1.0, %v1000_v57 }
 0x12c   : > { %v1004_v3 = vpop.eup %1003  ;;  %1023 = vrcp.f32 %v641_v60  ;;  %v639_v4 = vadd.f32 1.0, %v1002_v62 }
 0x12d   : > { %v1006_v6 = vpop.eup %1005  ;;  %1025 = vrcp.f32 %v657_v63  ;;  %v655_v7 = vadd.f32 1.0, %v1004_v3 }
 0x12e   : > { %v1008_v9 = vpop.eup %1007  ;;  %1027 = vrcp.f32 %v639_v4  ;;  %v642_v52 = vadd.f32 1.0, %v1006_v6 }
 0x12f   : > { %v1010_v53 = vpop.eup %1009  ;;  %1029 = vrcp.f32 %v655_v7  ;;  %v658_v12 = vadd.f32 1.0, %v1008_v9 }
 0x130   : > { %v1012_v14 = vpop.eup %1011  ;;  %1031 = vrcp.f32 %v642_v52  ;;  %v640_v15 = vadd.f32 1.0, %v1010_v53 }
 0x131   : > { %v1014_v59 = vpop.eup %1013  ;;  %1033 = vrcp.f32 %v658_v12  ;;  %v656_v17 = vadd.f32 1.0, %v1012_v14 }
 0x132   : > { %v1016_v19 = vpop.eup %1015  ;;  %1035 = vrcp.f32 %v640_v15  ;;  %v645_v0 = vadd.f32 1.0, %v1014_v59 }
 0x133   : > { %v1018_v22 = vpop.eup %1017  ;;  %1037 = vrcp.f32 %v656_v17  ;;  %v661_v23 = vadd.f32 1.0, %v1016_v19 }
 0x134   : > { %v1020_v25 = vpop.eup %1019  ;;  %718 = vst [vmem:[%s1192_s14 + $0xb8] sm:$0xff] %v1018_v22  ;;  %1039 = vrcp.f32 %v645_v0 }
 0x135   : > { %v1022_v27 = vpop.eup %1021  ;;  %700 = vst [vmem:[%s1192_s14 + $0x28] sm:$0xff] %v1020_v25  ;;  %1041 = vrcp.f32 %v661_v23 }
 0x136   : > { %v1024_v29 = vpop.eup %1023  ;;  %716 = vst [vmem:[%s1192_s14 + $0xa8] sm:$0xff] %v1022_v27  ;;  %1043 = vpow2.f32 %v591_v20 }
 0x137   : > { %v1026_v31 = vpop.eup %1025  ;;  %705 = vst [vmem:[%s1192_s14 + $0x50] sm:$0xff] %v1024_v29  ;;  %1045 = vpow2.f32 %v623_v24 }
 0x138   : > { %v1028_v33 = vpop.eup %1027  ;;  %721 = vst [vmem:[%s1192_s14 + $0xd0] sm:$0xff] %v1026_v31  ;;  %1047 = vpow2.f32 %v597_v26 }
 0x139   : > { %v1030_v34 = vpop.eup %1029  ;;  %703 = vst [vmem:[%s1192_s14 + $0x40] sm:$0xff] %v1028_v33  ;;  %1049 = vpow2.f32 %v629_v28 }
 0x13a   : > { %v1032_v35 = vpop.eup %1031  ;;  %719 = vst [vmem:[%s1192_s14 + $0xc0] sm:$0xff] %v1030_v34  ;;  %1051 = vpow2.f32 %v593_v30 }
 0x13b   : > { %v1034_v36 = vpop.eup %1033  ;;  %706 = vst [vmem:[%s1192_s14 + $0x58] sm:$0xff] %v1032_v35  ;;  %1053 = vpow2.f32 %v625_v32 }
 0x13c   : > { %v1036_v37 = vpop.eup %1035  ;;  %722 = vst [vmem:[%s1192_s14 + $0xd8] sm:$0xff] %v1034_v36 }
 0x13d   : > { %v1038_v38 = vpop.eup %1037  ;;  %704 = vst [vmem:[%s1192_s14 + $0x48] sm:$0xff] %v1036_v37 }
 0x13e   : > { %v1040_v39 = vpop.eup %1039  ;;  %720 = vst [vmem:[%s1192_s14 + $0xc8] sm:$0xff] %v1038_v38 }
 0x13f   : > { %v1042_v40 = vpop.eup %1041  ;;  %709 = vst [vmem:[%s1192_s14 + $0x70] sm:$0xff] %v1040_v39 }
 0x140   : > { %v1044_v41 = vpop.eup %1043  ;;  %725 = vst [vmem:[%s1192_s14 + $0xf0] sm:$0xff] %v1042_v40 }
 0x141   : > { %v1046_v42 = vpop.eup %1045  ;;  %v643_v43 = vadd.f32 1.0, %v1044_v41 }
 0x142   : > { %v1048_v44 = vpop.eup %1047  ;;  %v659_v45 = vadd.f32 1.0, %v1046_v42 }
 0x143   : > { %v1050_v46 = vpop.eup %1049  ;;  %1055 = vrcp.f32 %v643_v43  ;;  %v646_v47 = vadd.f32 1.0, %v1048_v44 }
 0x144   : > { %v1052_v48 = vpop.eup %1051  ;;  %1057 = vrcp.f32 %v659_v45  ;;  %v662_v49 = vadd.f32 1.0, %v1050_v46 }
 0x145   : > { %v1054_v50 = vpop.eup %1053  ;;  %1059 = vrcp.f32 %v646_v47  ;;  %v644_v51 = vadd.f32 1.0, %v1052_v48 }
 0x146   : > { %1061 = vrcp.f32 %v662_v49  ;;  %v660_v54 = vadd.f32 1.0, %v1054_v50 }
 0x147   : > { %1063 = vrcp.f32 %v644_v51 }
 0x148   : > { %1065 = vrcp.f32 %v660_v54 }
 0x14d   : > { %v1056_v55 = vpop.eup %1055 }
 0x14e   : > { %v1058_v56 = vpop.eup %1057  ;;  %707 = vst [vmem:[%s1192_s14 + $0x60] sm:$0xff] %v1056_v55 }
 0x14f   : > { %v1060_v57 = vpop.eup %1059  ;;  %723 = vst [vmem:[%s1192_s14 + $0xe0] sm:$0xff] %v1058_v56 }
 0x150   : > { %v1062_v60 = vpop.eup %1061  ;;  %710 = vst [vmem:[%s1192_s14 + $0x78] sm:$0xff] %v1060_v57 }
 0x151   : > { %v1064_v61 = vpop.eup %1063  ;;  %726 = vst [vmem:[%s1192_s14 + $0xf8] sm:$0xff] %v1062_v60 }
 0x152   : > { %v1066_v62 = vpop.eup %1065  ;;  %708 = vst [vmem:[%s1192_s14 + $0x68] sm:$0xff] %v1064_v61 }
 0x153   : > { %724 = vst [vmem:[%s1192_s14 + $0xe8] sm:$0xff] %v1066_v62 }
 0x154 PF: > { %s13_s12 = sadd.s32 1, %s1073_s12  }
 0x155   : > { %p10_p4 = scmp.ge.s32.totalorder %s13_s12, 5  }
 0x157   :  { %12 = sbr.rel (!%p10_p4) target bundleno = 1 (0x1), region = 62 }

</bundles_post_ra>
